<compile_context>
chip_gen: v5e
topology: v5e:2x2
jax: 0.10.0
libtpu: 0.0.40
codegen_flags: <defaults>
</compile_context>

<pallas_src>
import functools

import numpy as np
import jax
import jax.numpy as jnp
from jax.experimental import pallas as pl
from jax.experimental.pallas import tpu as pltpu


# ----------------------------------------------------------------------------
# Bilinear-2x interpolation matrix (PyTorch nn.Upsample, align_corners=False)
# ----------------------------------------------------------------------------
def bilinear_upsample_matrix(n, scale=2):
    out_n = n * scale
    A = np.zeros((out_n, n), np.float32)
    for i in range(out_n):
        src = (i + 0.5) / scale - 0.5
        src = max(src, 0.0)
        i0 = min(int(np.floor(src)), n - 1)
        i1 = min(i0 + 1, n - 1)
        frac = src - i0
        A[i, i0] += 1.0 - frac
        A[i, i1] += frac
    return A


# ----------------------------------------------------------------------------
# Pallas kernel: whole DecoderBlockSCSE forward for one batch element
# ----------------------------------------------------------------------------
def _decoder_kernel(x_ref, ah3_ref, m1_ref, b1_ref, m2_ref, b2_ref,
                    wl1_ref, bl1_ref, wl2_ref, bl2_ref, ws_ref, bs_ref,
                    o_ref, *, H, W, Cin, Cmid, Cout):
    H2, W2 = 2 * H, 2 * W
    f32 = jnp.float32

    xd = x_ref[0]                                              # (H, W*Cin)

    # --- conv1 + fused bilinear 2x upsample --------------------------------
    # up_tap[r] = ah3[r] @ x : H-upsampled row (y2 + r - 1), zero when OOB.
    # h1 = relu(sum_r up_tap[r] @ M1[r] + b1); M1 folds Aw + the x-taps.
    up0 = jnp.dot(ah3_ref[0], xd, preferred_element_type=f32)  # (H2, W*Cin)
    up1 = jnp.dot(ah3_ref[1], xd, preferred_element_type=f32)
    up2 = jnp.dot(ah3_ref[2], xd, preferred_element_type=f32)
    h1 = (jnp.dot(up0, m1_ref[0], preferred_element_type=f32)
          + jnp.dot(up1, m1_ref[1], preferred_element_type=f32)
          + jnp.dot(up2, m1_ref[2], preferred_element_type=f32))
    h1 = jnp.maximum(h1 + b1_ref[...], 0.0)                    # (H2, W2*Cmid)

    # --- conv2 --------------------------------------------------------------
    # y-taps via tiny row shifts (sublane-only), x-taps inside the banded M2.
    zrow = jnp.zeros((1, W2 * Cmid), f32)
    h1_up = jnp.concatenate([zrow, h1[:H2 - 1]], axis=0)        # row y-1
    h1_dn = jnp.concatenate([h1[1:], zrow], axis=0)             # row y+1
    h2 = (jnp.dot(h1_up, m2_ref[0], preferred_element_type=f32)
          + jnp.dot(h1, m2_ref[1], preferred_element_type=f32)
          + jnp.dot(h1_dn, m2_ref[2], preferred_element_type=f32))
    h2 = jnp.maximum(h2 + b2_ref[...], 0.0)                     # (H2, W2*Cout)

    # --- SCSE: out = h2 * (cSE_gate + sSE_gate) -----------------------------
    rowsum = jnp.sum(h2, axis=0, keepdims=True)                 # (1, W2*Cout)
    z = jnp.maximum(
        jnp.dot(rowsum, wl1_ref[...], preferred_element_type=f32)
        + bl1_ref[...], 0.0)                                    # (1, Cr)
    s = jax.nn.sigmoid(
        jnp.dot(z, wl2_ref[...], preferred_element_type=f32)
        + bl2_ref[...])                                         # (1, W2*Cout)
    q = jax.nn.sigmoid(
        jnp.dot(h2, ws_ref[...], preferred_element_type=f32)
        + bs_ref[...])                                          # (H2, W2*Cout)

    o_ref[0] = h2 * (q + s)          # lane-dense, unmasked full-lane stores


# ----------------------------------------------------------------------------
# Wrapper-side operand folding (runs once, outside the kernel)
# ----------------------------------------------------------------------------
def _prepare_operands(params, H, W):
    H2, W2 = 2 * H, 2 * W
    w1 = params["w1"].astype(jnp.float32)          # (3, 3, Cin, Cmid) HWIO
    w2 = params["w2"].astype(jnp.float32)          # (3, 3, Cmid, Cout) HWIO
    Cin, Cmid = w1.shape[2], w1.shape[3]
    Cout = w2.shape[3]

    Ah = jnp.asarray(bilinear_upsample_matrix(H))  # (H2, H)
    Aw = jnp.asarray(bilinear_upsample_matrix(W))  # (W2, W)

    # H-upsample row-tap matrices: ah3[r] @ x == up_h[y2 + r - 1] (zero OOB).
    zr = jnp.zeros((1, H), jnp.float32)
    ah3 = jnp.stack([jnp.concatenate([zr, Ah[:-1]], axis=0),
                     Ah,
                     jnp.concatenate([Ah[1:], zr], axis=0)], axis=0)  # (3,H2,H)

    # Conv1 matrices with the W-direction upsample folded in:
    #   M1[r][w*Cin+ci, x2*Cmid+cm] = sum_dx Aw[x2+dx, w] * w1[r, dx+1, ci, cm]
    AwZ = jnp.concatenate([jnp.zeros((1, W), jnp.float32), Aw,
                           jnp.zeros((1, W), jnp.float32)], axis=0)   # (W2+2,W)
    T = jnp.stack([AwZ[k:k + W2] for k in range(3)], axis=1)          # (W2,3,W)
    m1 = jnp.einsum("xkw,rkcm->rwcxm", T, w1).reshape(3, W * Cin, W2 * Cmid)

    # Conv2 matrices: block-banded x-taps (x zero-padding baked in).
    #   M2[r][xp*Cmid+cm, x2*Cout+co] = w2[r, xp-x2+1, cm, co]  if |xp-x2|<=1
    band = jnp.stack([jnp.eye(W2, k=1 - k, dtype=jnp.float32)
                      for k in range(3)], axis=0)                     # (3,W2,W2)
    m2 = jnp.einsum("kpx,rkmo->rpmxo", band, w2).reshape(3, W2 * Cmid, W2 * Cout)

    b1_d = jnp.tile(params["b1"].astype(jnp.float32), (1, W2))  # (1, W2*Cmid)
    b2_d = jnp.tile(params["b2"].astype(jnp.float32), (1, W2))  # (1, W2*Cout)

    # cSE: spatial mean folded into the first linear layer.
    pool = jnp.tile(jnp.eye(Cout, dtype=jnp.float32), (W2, 1)) / float(H2 * W2)
    wl1_d = pool @ params["wl1"].astype(jnp.float32)                 # (W2*Cout, Cr)
    bl1 = params["bl1"].astype(jnp.float32)                          # (1, Cr)
    wl2_d = jnp.tile(params["wl2"].astype(jnp.float32), (1, W2))     # (Cr, W2*Cout)
    bl2_d = jnp.tile(params["bl2"].astype(jnp.float32), (1, W2))     # (1, W2*Cout)

    # sSE: 1x1 conv as a lane-dense block-diagonal matmul.
    ws_d = jnp.kron(jnp.eye(W2, dtype=jnp.float32),
                    params["ws"].astype(jnp.float32))                # (W2*Cout,)*2
    bs_d = jnp.tile(params["bs"].astype(jnp.float32), (1, W2))       # (1, W2*Cout)

    return dict(ah3=ah3, m1=m1, b1=b1_d, m2=m2, b2=b2_d,
                wl1=wl1_d, bl1=bl1, wl2=wl2_d, bl2=bl2_d, ws=ws_d, bs=bs_d,
                dims=(Cin, Cmid, Cout))


# ----------------------------------------------------------------------------
# Wrapper
# ----------------------------------------------------------------------------
def decoder_block_scse(x, params):
    """x: (B, H, W, Cin) NHWC float32 -> (B, 2H, 2W, Cout)."""
    B, H, W, Cin = x.shape
    H2, W2 = 2 * H, 2 * W
    ops = _prepare_operands(params, H, W)
    _, Cmid, Cout = ops["dims"]
    Cr = params["wl1"].shape[1]

    xd = x.reshape(B, H, W * Cin)     # lane-dense input (free row-major merge)

    kernel = functools.partial(_decoder_kernel, H=H, W=W,
                               Cin=Cin, Cmid=Cmid, Cout=Cout)

    const2 = lambda b: (0, 0)
    const3 = lambda b: (0, 0, 0)

    # TODO(synk): all weight operands have constant index maps; pl.Buffered(1)
    # on them would drop their second pipeline buffer (negligible at this size).
    grid_spec = pltpu.PrefetchScalarGridSpec(
        num_scalar_prefetch=0,
        grid=(B,),
        in_specs=[
            pl.BlockSpec((1, H, W * Cin), lambda b: (b, 0, 0)),
            pl.BlockSpec((3, H2, H), const3),
            pl.BlockSpec((3, W * Cin, W2 * Cmid), const3),
            pl.BlockSpec((1, W2 * Cmid), const2),
            pl.BlockSpec((3, W2 * Cmid, W2 * Cout), const3),
            pl.BlockSpec((1, W2 * Cout), const2),
            pl.BlockSpec((W2 * Cout, Cr), const2),
            pl.BlockSpec((1, Cr), const2),
            pl.BlockSpec((Cr, W2 * Cout), const2),
            pl.BlockSpec((1, W2 * Cout), const2),
            pl.BlockSpec((W2 * Cout, W2 * Cout), const2),
            pl.BlockSpec((1, W2 * Cout), const2),
        ],
        out_specs=pl.BlockSpec((1, H2, W2 * Cout), lambda b: (b, 0, 0)),
    )

    out = pl.pallas_call(
        kernel,
        out_shape=jax.ShapeDtypeStruct((B, H2, W2 * Cout), jnp.float32),
        grid_spec=grid_spec,
        compiler_params=pltpu.CompilerParams(
            dimension_semantics=("parallel",)),
    )(xd, ops["ah3"], ops["m1"], ops["b1"], ops["m2"], ops["b2"],
      ops["wl1"], ops["bl1"], ops["wl2"], ops["bl2"], ops["ws"], ops["bs"])

    return out.reshape(B, H2, W2, Cout)


# ----------------------------------------------------------------------------
# Pure-JAX reference (for correctness check)
# ----------------------------------------------------------------------------
def ref_forward(x, params, Ah, Aw):
    up = jnp.einsum("uh,vw,bhwc->buvc", Ah, Aw, x)
    dn = ("NHWC", "HWIO", "NHWC")
    h1 = jax.nn.relu(jax.lax.conv_general_dilated(
        up, params["w1"], (1, 1), "SAME", dimension_numbers=dn) + params["b1"])
    h2 = jax.nn.relu(jax.lax.conv_general_dilated(
        h1, params["w2"], (1, 1), "SAME", dimension_numbers=dn) + params["b2"])
    m = h2.mean(axis=(1, 2))                                     # (B, Cout)
    s = jax.nn.sigmoid(
        jax.nn.relu(m @ params["wl1"] + params["bl1"]) @ params["wl2"]
        + params["bl2"])
    cse = h2 * s[:, None, None, :]
    q = jax.nn.sigmoid(jnp.einsum("bhwc,cd->bhwd", h2, params["ws"])
                       + params["bs"])
    return cse + h2 * q


# ----------------------------------------------------------------------------
# Main
# ----------------------------------------------------------------------------
if __name__ == "__main__":
    # DecoderBlockSCSE(in_channels=8, middle_channels=16, out_channels=32)
    B, H, W = 2, 8, 8
    Cin, Cmid, Cout, r = 8, 16, 32, 16
    Cr = Cout // r

    key = jax.random.PRNGKey(0)
    ks = jax.random.split(key, 11)

    params = {
        "w1": jax.random.normal(ks[0], (3, 3, Cin, Cmid), jnp.float32) * 0.1,
        "b1": jax.random.normal(ks[1], (1, Cmid), jnp.float32) * 0.05,
        "w2": jax.random.normal(ks[2], (3, 3, Cmid, Cout), jnp.float32) * 0.1,
        "b2": jax.random.normal(ks[3], (1, Cout), jnp.float32) * 0.05,
        "wl1": jax.random.normal(ks[4], (Cout, Cr), jnp.float32) * 0.1,
        "bl1": jax.random.normal(ks[5], (1, Cr), jnp.float32) * 0.05,
        "wl2": jax.random.normal(ks[6], (Cr, Cout), jnp.float32) * 0.1,
        "bl2": jax.random.normal(ks[7], (1, Cout), jnp.float32) * 0.05,
        "ws": jax.random.normal(ks[8], (Cout, Cout), jnp.float32) * 0.1,
        "bs": jax.random.normal(ks[9], (1, Cout), jnp.float32) * 0.05,
    }

    # NHWC input (PyTorch NCHW input would be transposed to this layout).
    x = jax.random.normal(ks[10], (B, H, W, Cin), jnp.float32)

    out = jax.block_until_ready(decoder_block_scse(x, params))

    Ah = jnp.asarray(bilinear_upsample_matrix(H))   # (2H, H) — reference only
    Aw = jnp.asarray(bilinear_upsample_matrix(W))   # (2W, W) — reference only
    ref = jax.block_until_ready(ref_forward(x, params, Ah, Aw))

    assert out.shape == (B, 2 * H, 2 * W, Cout)
    assert np.allclose(np.asarray(out), np.asarray(ref), atol=2e-3, rtol=2e-3), \
        "Pallas kernel does not match reference"

    print("KERNEL_OK")
</pallas_src>

<mosaic_0001>
module attributes {stable_mosaic.version = 11 : i64} {
  func.func @_decoder_kernel(%arg0: i32, %arg1: memref<1x8x64xf32, #tpu.memory_space<vmem>>, %arg2: memref<3x16x8xf32, #tpu.memory_space<vmem>>, %arg3: memref<3x64x256xf32, #tpu.memory_space<vmem>>, %arg4: memref<1x256xf32, #tpu.memory_space<vmem>>, %arg5: memref<3x256x512xf32, #tpu.memory_space<vmem>>, %arg6: memref<1x512xf32, #tpu.memory_space<vmem>>, %arg7: memref<512x2xf32, #tpu.memory_space<vmem>>, %arg8: memref<1x2xf32, #tpu.memory_space<vmem>>, %arg9: memref<2x512xf32, #tpu.memory_space<vmem>>, %arg10: memref<1x512xf32, #tpu.memory_space<vmem>>, %arg11: memref<512x512xf32, #tpu.memory_space<vmem>>, %arg12: memref<1x512xf32, #tpu.memory_space<vmem>>, %arg13: memref<1x16x512xf32, #tpu.memory_space<vmem>>) attributes {dimension_semantics = [#tpu.dimension_semantics<parallel>], iteration_bounds = array<i64: 2>, scalar_prefetch = 0 : i64, scratch_operands = 0 : i64, tpu.core_type = #tpu.core_type<tc>, window_params = [{transform_indices = @transform_0, window_bounds = array<i64: 1, 8, 64>}, {pipeline_mode = #tpu.pipeline_mode<synchronous>, transform_indices = @transform_1, window_bounds = array<i64: 3, 16, 8>}, {pipeline_mode = #tpu.pipeline_mode<synchronous>, transform_indices = @transform_2, window_bounds = array<i64: 3, 64, 256>}, {pipeline_mode = #tpu.pipeline_mode<synchronous>, transform_indices = @transform_3, window_bounds = array<i64: 1, 256>}, {pipeline_mode = #tpu.pipeline_mode<synchronous>, transform_indices = @transform_4, window_bounds = array<i64: 3, 256, 512>}, {pipeline_mode = #tpu.pipeline_mode<synchronous>, transform_indices = @transform_5, window_bounds = array<i64: 1, 512>}, {pipeline_mode = #tpu.pipeline_mode<synchronous>, transform_indices = @transform_6, window_bounds = array<i64: 512, 2>}, {pipeline_mode = #tpu.pipeline_mode<synchronous>, transform_indices = @transform_7, window_bounds = array<i64: 1, 2>}, {pipeline_mode = #tpu.pipeline_mode<synchronous>, transform_indices = @transform_8, window_bounds = array<i64: 2, 512>}, {pipeline_mode = #tpu.pipeline_mode<synchronous>, transform_indices = @transform_9, window_bounds = array<i64: 1, 512>}, {pipeline_mode = #tpu.pipeline_mode<synchronous>, transform_indices = @transform_10, window_bounds = array<i64: 512, 512>}, {pipeline_mode = #tpu.pipeline_mode<synchronous>, transform_indices = @transform_11, window_bounds = array<i64: 1, 512>}, {transform_indices = @transform_12, window_bounds = array<i64: 1, 16, 512>}]} {
    %c0 = arith.constant 0 : index
    %c0_0 = arith.constant 0 : index
    %c0_1 = arith.constant 0 : index
    %0 = vector.load %arg1[%c0, %c0_0, %c0_1] : memref<1x8x64xf32, #tpu.memory_space<vmem>>, vector<1x8x64xf32>
    %1 = vector.shape_cast %0 : vector<1x8x64xf32> to vector<8x64xf32>
    %c0_2 = arith.constant 0 : index
    %c0_3 = arith.constant 0 : index
    %c0_4 = arith.constant 0 : index
    %2 = vector.load %arg2[%c0_2, %c0_3, %c0_4] : memref<3x16x8xf32, #tpu.memory_space<vmem>>, vector<1x16x8xf32>
    %3 = vector.shape_cast %2 : vector<1x16x8xf32> to vector<16x8xf32>
    %cst = arith.constant dense<0.000000e+00> : vector<16x64xf32>
    %4 = tpu.matmul %3, %1, %cst {dimension_numbers = #tpu.dot_dimension_numbers<[1], [0], [0], [1], [0, 0, 1, 1], [], []>} : vector<16x8xf32>, vector<8x64xf32>, vector<16x64xf32> -> vector<16x64xf32>
    %c1 = arith.constant 1 : index
    %c0_5 = arith.constant 0 : index
    %c0_6 = arith.constant 0 : index
    %5 = vector.load %arg2[%c1, %c0_5, %c0_6] : memref<3x16x8xf32, #tpu.memory_space<vmem>>, vector<1x16x8xf32>
    %6 = vector.shape_cast %5 : vector<1x16x8xf32> to vector<16x8xf32>
    %cst_7 = arith.constant dense<0.000000e+00> : vector<16x64xf32>
    %7 = tpu.matmul %6, %1, %cst_7 {dimension_numbers = #tpu.dot_dimension_numbers<[1], [0], [0], [1], [0, 0, 1, 1], [], []>} : vector<16x8xf32>, vector<8x64xf32>, vector<16x64xf32> -> vector<16x64xf32>
    %c2 = arith.constant 2 : index
    %c0_8 = arith.constant 0 : index
    %c0_9 = arith.constant 0 : index
    %8 = vector.load %arg2[%c2, %c0_8, %c0_9] : memref<3x16x8xf32, #tpu.memory_space<vmem>>, vector<1x16x8xf32>
    %9 = vector.shape_cast %8 : vector<1x16x8xf32> to vector<16x8xf32>
    %cst_10 = arith.constant dense<0.000000e+00> : vector<16x64xf32>
    %10 = tpu.matmul %9, %1, %cst_10 {dimension_numbers = #tpu.dot_dimension_numbers<[1], [0], [0], [1], [0, 0, 1, 1], [], []>} : vector<16x8xf32>, vector<8x64xf32>, vector<16x64xf32> -> vector<16x64xf32>
    %c0_11 = arith.constant 0 : index
    %c0_12 = arith.constant 0 : index
    %c0_13 = arith.constant 0 : index
    %11 = vector.load %arg3[%c0_11, %c0_12, %c0_13] : memref<3x64x256xf32, #tpu.memory_space<vmem>>, vector<1x64x256xf32>
    %12 = vector.shape_cast %11 : vector<1x64x256xf32> to vector<64x256xf32>
    %cst_14 = arith.constant dense<0.000000e+00> : vector<16x256xf32>
    %13 = tpu.matmul %4, %12, %cst_14 {dimension_numbers = #tpu.dot_dimension_numbers<[1], [0], [0], [1], [0, 0, 1, 1], [], []>} : vector<16x64xf32>, vector<64x256xf32>, vector<16x256xf32> -> vector<16x256xf32>
    %c1_15 = arith.constant 1 : index
    %c0_16 = arith.constant 0 : index
    %c0_17 = arith.constant 0 : index
    %14 = vector.load %arg3[%c1_15, %c0_16, %c0_17] : memref<3x64x256xf32, #tpu.memory_space<vmem>>, vector<1x64x256xf32>
    %15 = vector.shape_cast %14 : vector<1x64x256xf32> to vector<64x256xf32>
    %cst_18 = arith.constant dense<0.000000e+00> : vector<16x256xf32>
    %16 = tpu.matmul %7, %15, %cst_18 {dimension_numbers = #tpu.dot_dimension_numbers<[1], [0], [0], [1], [0, 0, 1, 1], [], []>} : vector<16x64xf32>, vector<64x256xf32>, vector<16x256xf32> -> vector<16x256xf32>
    %17 = arith.addf %13, %16 : vector<16x256xf32>
    %c2_19 = arith.constant 2 : index
    %c0_20 = arith.constant 0 : index
    %c0_21 = arith.constant 0 : index
    %18 = vector.load %arg3[%c2_19, %c0_20, %c0_21] : memref<3x64x256xf32, #tpu.memory_space<vmem>>, vector<1x64x256xf32>
    %19 = vector.shape_cast %18 : vector<1x64x256xf32> to vector<64x256xf32>
    %cst_22 = arith.constant dense<0.000000e+00> : vector<16x256xf32>
    %20 = tpu.matmul %10, %19, %cst_22 {dimension_numbers = #tpu.dot_dimension_numbers<[1], [0], [0], [1], [0, 0, 1, 1], [], []>} : vector<16x64xf32>, vector<64x256xf32>, vector<16x256xf32> -> vector<16x256xf32>
    %21 = arith.addf %17, %20 : vector<16x256xf32>
    %c0_23 = arith.constant 0 : index
    %c0_24 = arith.constant 0 : index
    %22 = vector.load %arg4[%c0_23, %c0_24] : memref<1x256xf32, #tpu.memory_space<vmem>>, vector<1x256xf32>
    %23 = vector.broadcast %22 : vector<1x256xf32> to vector<16x256xf32>
    %24 = arith.addf %21, %23 : vector<16x256xf32>
    %cst_25 = arith.constant 0.000000e+00 : f32
    %25 = vector.broadcast %cst_25 : f32 to vector<16x256xf32>
    %26 = arith.maximumf %24, %25 : vector<16x256xf32>
    %cst_26 = arith.constant 0.000000e+00 : f32
    %27 = vector.broadcast %cst_26 : f32 to vector<1x256xf32>
    %28 = vector.extract_strided_slice %26 {offsets = [0, 0], sizes = [15, 256], strides = [1, 1]} : vector<16x256xf32> to vector<15x256xf32>
    %29 = tpu.concatenate %27, %28 in 0 : vector<1x256xf32>, vector<15x256xf32> -> vector<16x256xf32>
    %30 = vector.extract_strided_slice %26 {offsets = [1, 0], sizes = [15, 256], strides = [1, 1]} : vector<16x256xf32> to vector<15x256xf32>
    %31 = tpu.concatenate %30, %27 in 0 : vector<15x256xf32>, vector<1x256xf32> -> vector<16x256xf32>
    %c0_27 = arith.constant 0 : index
    %c0_28 = arith.constant 0 : index
    %c0_29 = arith.constant 0 : index
    %32 = vector.load %arg5[%c0_27, %c0_28, %c0_29] : memref<3x256x512xf32, #tpu.memory_space<vmem>>, vector<1x256x512xf32>
    %33 = vector.shape_cast %32 : vector<1x256x512xf32> to vector<256x512xf32>
    %cst_30 = arith.constant dense<0.000000e+00> : vector<16x512xf32>
    %34 = tpu.matmul %29, %33, %cst_30 {dimension_numbers = #tpu.dot_dimension_numbers<[1], [0], [0], [1], [0, 0, 1, 1], [], []>} : vector<16x256xf32>, vector<256x512xf32>, vector<16x512xf32> -> vector<16x512xf32>
    %c1_31 = arith.constant 1 : index
    %c0_32 = arith.constant 0 : index
    %c0_33 = arith.constant 0 : index
    %35 = vector.load %arg5[%c1_31, %c0_32, %c0_33] : memref<3x256x512xf32, #tpu.memory_space<vmem>>, vector<1x256x512xf32>
    %36 = vector.shape_cast %35 : vector<1x256x512xf32> to vector<256x512xf32>
    %cst_34 = arith.constant dense<0.000000e+00> : vector<16x512xf32>
    %37 = tpu.matmul %26, %36, %cst_34 {dimension_numbers = #tpu.dot_dimension_numbers<[1], [0], [0], [1], [0, 0, 1, 1], [], []>} : vector<16x256xf32>, vector<256x512xf32>, vector<16x512xf32> -> vector<16x512xf32>
    %38 = arith.addf %34, %37 : vector<16x512xf32>
    %c2_35 = arith.constant 2 : index
    %c0_36 = arith.constant 0 : index
    %c0_37 = arith.constant 0 : index
    %39 = vector.load %arg5[%c2_35, %c0_36, %c0_37] : memref<3x256x512xf32, #tpu.memory_space<vmem>>, vector<1x256x512xf32>
    %40 = vector.shape_cast %39 : vector<1x256x512xf32> to vector<256x512xf32>
    %cst_38 = arith.constant dense<0.000000e+00> : vector<16x512xf32>
    %41 = tpu.matmul %31, %40, %cst_38 {dimension_numbers = #tpu.dot_dimension_numbers<[1], [0], [0], [1], [0, 0, 1, 1], [], []>} : vector<16x256xf32>, vector<256x512xf32>, vector<16x512xf32> -> vector<16x512xf32>
    %42 = arith.addf %38, %41 : vector<16x512xf32>
    %c0_39 = arith.constant 0 : index
    %c0_40 = arith.constant 0 : index
    %43 = vector.load %arg6[%c0_39, %c0_40] : memref<1x512xf32, #tpu.memory_space<vmem>>, vector<1x512xf32>
    %44 = vector.broadcast %43 : vector<1x512xf32> to vector<16x512xf32>
    %45 = arith.addf %42, %44 : vector<16x512xf32>
    %cst_41 = arith.constant 0.000000e+00 : f32
    %46 = vector.broadcast %cst_41 : f32 to vector<16x512xf32>
    %47 = arith.maximumf %45, %46 : vector<16x512xf32>
    %cst_42 = arith.constant dense<0.000000e+00> : vector<512xf32>
    %48 = vector.multi_reduction <add>, %47, %cst_42 [0] : vector<16x512xf32> to vector<512xf32>
    %49 = vector.shape_cast %48 : vector<512xf32> to vector<1x512xf32>
    %c0_43 = arith.constant 0 : index
    %c0_44 = arith.constant 0 : index
    %50 = vector.load %arg7[%c0_43, %c0_44] : memref<512x2xf32, #tpu.memory_space<vmem>>, vector<512x2xf32>
    %cst_45 = arith.constant dense<0.000000e+00> : vector<1x2xf32>
    %51 = tpu.matmul %49, %50, %cst_45 {dimension_numbers = #tpu.dot_dimension_numbers<[1], [0], [0], [1], [0, 0, 1, 1], [], []>} : vector<1x512xf32>, vector<512x2xf32>, vector<1x2xf32> -> vector<1x2xf32>
    %c0_46 = arith.constant 0 : index
    %c0_47 = arith.constant 0 : index
    %52 = vector.load %arg8[%c0_46, %c0_47] : memref<1x2xf32, #tpu.memory_space<vmem>>, vector<1x2xf32>
    %53 = arith.addf %51, %52 : vector<1x2xf32>
    %cst_48 = arith.constant 0.000000e+00 : f32
    %54 = vector.broadcast %cst_48 : f32 to vector<1x2xf32>
    %55 = arith.maximumf %53, %54 : vector<1x2xf32>
    %c0_49 = arith.constant 0 : index
    %c0_50 = arith.constant 0 : index
    %56 = vector.load %arg9[%c0_49, %c0_50] : memref<2x512xf32, #tpu.memory_space<vmem>>, vector<2x512xf32>
    %cst_51 = arith.constant dense<0.000000e+00> : vector<1x512xf32>
    %57 = tpu.matmul %55, %56, %cst_51 {dimension_numbers = #tpu.dot_dimension_numbers<[1], [0], [0], [1], [0, 0, 1, 1], [], []>} : vector<1x2xf32>, vector<2x512xf32>, vector<1x512xf32> -> vector<1x512xf32>
    %c0_52 = arith.constant 0 : index
    %c0_53 = arith.constant 0 : index
    %58 = vector.load %arg10[%c0_52, %c0_53] : memref<1x512xf32, #tpu.memory_space<vmem>>, vector<1x512xf32>
    %59 = arith.addf %57, %58 : vector<1x512xf32>
    %60 = arith.negf %59 : vector<1x512xf32>
    %61 = math.exp %60 : vector<1x512xf32>
    %cst_54 = arith.constant 1.000000e+00 : f32
    %62 = vector.broadcast %cst_54 : f32 to vector<1x512xf32>
    %63 = arith.addf %62, %61 : vector<1x512xf32>
    %64 = arith.divf %62, %63 : vector<1x512xf32>
    %c0_55 = arith.constant 0 : index
    %c0_56 = arith.constant 0 : index
    %65 = vector.load %arg11[%c0_55, %c0_56] : memref<512x512xf32, #tpu.memory_space<vmem>>, vector<512x512xf32>
    %cst_57 = arith.constant dense<0.000000e+00> : vector<16x512xf32>
    %66 = tpu.matmul %47, %65, %cst_57 {dimension_numbers = #tpu.dot_dimension_numbers<[1], [0], [0], [1], [0, 0, 1, 1], [], []>} : vector<16x512xf32>, vector<512x512xf32>, vector<16x512xf32> -> vector<16x512xf32>
    %c0_58 = arith.constant 0 : index
    %c0_59 = arith.constant 0 : index
    %67 = vector.load %arg12[%c0_58, %c0_59] : memref<1x512xf32, #tpu.memory_space<vmem>>, vector<1x512xf32>
    %68 = vector.broadcast %67 : vector<1x512xf32> to vector<16x512xf32>
    %69 = arith.addf %66, %68 : vector<16x512xf32>
    %70 = arith.negf %69 : vector<16x512xf32>
    %71 = math.exp %70 : vector<16x512xf32>
    %cst_60 = arith.constant 1.000000e+00 : f32
    %72 = vector.broadcast %cst_60 : f32 to vector<16x512xf32>
    %73 = arith.addf %72, %71 : vector<16x512xf32>
    %74 = arith.divf %72, %73 : vector<16x512xf32>
    %75 = vector.broadcast %64 : vector<1x512xf32> to vector<16x512xf32>
    %76 = arith.addf %74, %75 : vector<16x512xf32>
    %77 = arith.mulf %47, %76 : vector<16x512xf32>
    %c0_61 = arith.constant 0 : index
    %c0_62 = arith.constant 0 : index
    %c0_63 = arith.constant 0 : index
    %78 = vector.load %arg13[%c0_61, %c0_62, %c0_63] : memref<1x16x512xf32, #tpu.memory_space<vmem>>, vector<1x16x512xf32>
    %79 = vector.shape_cast %78 : vector<1x16x512xf32> to vector<16x512xf32>
    %80 = vector.shape_cast %77 : vector<16x512xf32> to vector<1x16x512xf32>
    tpu.vector_store %arg13[%c0_61, %c0_62, %c0_63], %80 {strides = array<i32>} : memref<1x16x512xf32, #tpu.memory_space<vmem>>, vector<1x16x512xf32>,
    return
  }
  func.func @transform_0(%arg0: i32) -> (i32, i32, i32) {
    %c0_i32 = arith.constant 0 : i32
    %c0_i32_0 = arith.constant 0 : i32
    %c0_i32_1 = arith.constant 0 : i32
    return %arg0, %c0_i32, %c0_i32_0 : i32, i32, i32
  }
  func.func @transform_1(%arg0: i32) -> (i32, i32, i32) {
    %c0_i32 = arith.constant 0 : i32
    %c0_i32_0 = arith.constant 0 : i32
    %c0_i32_1 = arith.constant 0 : i32
    %c0_i32_2 = arith.constant 0 : i32
    return %c0_i32, %c0_i32_0, %c0_i32_1 : i32, i32, i32
  }
  func.func @transform_2(%arg0: i32) -> (i32, i32, i32) {
    %c0_i32 = arith.constant 0 : i32
    %c0_i32_0 = arith.constant 0 : i32
    %c0_i32_1 = arith.constant 0 : i32
    %c0_i32_2 = arith.constant 0 : i32
    return %c0_i32, %c0_i32_0, %c0_i32_1 : i32, i32, i32
  }
  func.func @transform_3(%arg0: i32) -> (i32, i32) {
    %c0_i32 = arith.constant 0 : i32
    %c0_i32_0 = arith.constant 0 : i32
    %c0_i32_1 = arith.constant 0 : i32
    return %c0_i32, %c0_i32_0 : i32, i32
  }
  func.func @transform_4(%arg0: i32) -> (i32, i32, i32) {
    %c0_i32 = arith.constant 0 : i32
    %c0_i32_0 = arith.constant 0 : i32
    %c0_i32_1 = arith.constant 0 : i32
    %c0_i32_2 = arith.constant 0 : i32
    return %c0_i32, %c0_i32_0, %c0_i32_1 : i32, i32, i32
  }
  func.func @transform_5(%arg0: i32) -> (i32, i32) {
    %c0_i32 = arith.constant 0 : i32
    %c0_i32_0 = arith.constant 0 : i32
    %c0_i32_1 = arith.constant 0 : i32
    return %c0_i32, %c0_i32_0 : i32, i32
  }
  func.func @transform_6(%arg0: i32) -> (i32, i32) {
    %c0_i32 = arith.constant 0 : i32
    %c0_i32_0 = arith.constant 0 : i32
    %c0_i32_1 = arith.constant 0 : i32
    return %c0_i32, %c0_i32_0 : i32, i32
  }
  func.func @transform_7(%arg0: i32) -> (i32, i32) {
    %c0_i32 = arith.constant 0 : i32
    %c0_i32_0 = arith.constant 0 : i32
    %c0_i32_1 = arith.constant 0 : i32
    return %c0_i32, %c0_i32_0 : i32, i32
  }
  func.func @transform_8(%arg0: i32) -> (i32, i32) {
    %c0_i32 = arith.constant 0 : i32
    %c0_i32_0 = arith.constant 0 : i32
    %c0_i32_1 = arith.constant 0 : i32
    return %c0_i32, %c0_i32_0 : i32, i32
  }
  func.func @transform_9(%arg0: i32) -> (i32, i32) {
    %c0_i32 = arith.constant 0 : i32
    %c0_i32_0 = arith.constant 0 : i32
    %c0_i32_1 = arith.constant 0 : i32
    return %c0_i32, %c0_i32_0 : i32, i32
  }
  func.func @transform_10(%arg0: i32) -> (i32, i32) {
    %c0_i32 = arith.constant 0 : i32
    %c0_i32_0 = arith.constant 0 : i32
    %c0_i32_1 = arith.constant 0 : i32
    return %c0_i32, %c0_i32_0 : i32, i32
  }
  func.func @transform_11(%arg0: i32) -> (i32, i32) {
    %c0_i32 = arith.constant 0 : i32
    %c0_i32_0 = arith.constant 0 : i32
    %c0_i32_1 = arith.constant 0 : i32
    return %c0_i32, %c0_i32_0 : i32, i32
  }
  func.func @transform_12(%arg0: i32) -> (i32, i32, i32) {
    %c0_i32 = arith.constant 0 : i32
    %c0_i32_0 = arith.constant 0 : i32
    %c0_i32_1 = arith.constant 0 : i32
    return %arg0, %c0_i32, %c0_i32_0 : i32, i32, i32
  }
}

</mosaic_0001>

<bundles_post_ra>
// kernel: tpu_custom_call.1
= control target key start
LH: loop header
LB: loop body
LE: loop exit
PB: predicated region body
PF: predicated region fallthrough
CT: control target
= control target key end

     0   :  { %s4744_s0 = inlined_call_operand.hbm [shape: f32[2,8,64], index: 0, kind: input, shape index: {}]   ;;  %s4745_s1 = inlined_call_operand.vmem [shape: f32[3,16,8], index: 1, kind: input, shape index: {}]   ;;  %s4746_s2 = inlined_call_operand.hbm [shape: f32[3,64,256], index: 2, kind: input, shape index: {}]   ;;  %s4747_s3 = inlined_call_operand.hbm [shape: f32[1,256], index: 3, kind: input, shape index: {}]   ;;  %s4748_s4 = inlined_call_operand.hbm [shape: f32[3,256,512], index: 4, kind: input, shape index: {}]   ;;  %s4749_s5 = inlined_call_operand.hbm [shape: f32[1,512], index: 5, kind: input, shape index: {}]   ;;  %s4750_s6 = inlined_call_operand.vmem [shape: f32[512,2], index: 6, kind: input, shape index: {}]   ;;  %s4751_s7 = inlined_call_operand.hbm [shape: f32[1,2], index: 7, kind: input, shape index: {}]   ;;  %s4752_s8 = inlined_call_operand.hbm [shape: f32[2,512], index: 8, kind: input, shape index: {}]   ;;  %s4753_s9 = inlined_call_operand.hbm [shape: f32[1,512], index: 9, kind: input, shape index: {}]   ;;  %s4754_s10 = inlined_call_operand.hbm [shape: f32[512,512], index: 10, kind: input, shape index: {}]   ;;  %s4755_s11 = inlined_call_operand.hbm [shape: f32[1,512], index: 11, kind: input, shape index: {}]   ;;  %s4756_s12 = inlined_call_operand.hbm [shape: f32[2,16,512], index: 12, kind: output, shape index: {}]  }
   0x1   :  { %4759 = sst [smem:[#allocation27_spill]] %s4746_s2 }
   0x2   :  { %4760 = sst [smem:[#allocation28_spill]] %s4747_s3 }
   0x3   :  { %4761 = sst [smem:[#allocation29_spill]] %s4748_s4 }
   0x4   :  { %4762 = sst [smem:[#allocation30_spill]] %s4749_s5 }
   0x5   :  { %4763 = sst [smem:[#allocation31_spill]] %s4750_s6 }
   0x6   :  { %4764 = sst [smem:[#allocation32_spill]] %s4756_s12 }
   0x7   :  { %17 = vsyncpa [#allocation3], 0 }
   0x8   :  { %19 = vsyncpa [#allocation3 + $0x1], 0 }
   0x9   :  { %20 = vsyncpa [#allocation6], 0 }
   0xa   :  { %21 = vsyncpa [#allocation9], 0 }
   0xb   :  { %22 = vsyncpa [#allocation12], 0 }
   0xc   :  { %23 = vsyncpa [#allocation15], 0 }
   0xd   :  { %24 = vsyncpa [#allocation18], 0 }
   0xe   :  { %25 = vsyncpa [#allocation4], 0 }
   0xf   :  { %27 = vsyncpa [#allocation4 + $0x1], 0  ;;  %s3998_s21 = smov 0   ;;  %s4000_s22 = smov 0  }
  0x10   :  { %s4002_s23 = smov 0   ;;  %s4004_s24 = smov 0  }
  0x11 LB: > { %s4765_s2 = sld [smem:[#allocation27_spill]]  ;;  %s4022_s28 = sadd.s32 4294967295, %s3916_s24   ;;  %s3916_s24 = sphi %s4004_s24, %s4783_s24   ;;  %s3912_s23 = sphi %s4002_s23, %s4782_s23   ;;  %s3908_s22 = sphi %s4000_s22, %s4781_s22   ;;  %s3904_s21 = sphi %s3998_s21, %s4780_s21  }
  0x12   : > { %p3242_p0 = scmp.ge.s32.totalorder %s3916_s24, 1  ;;  %p54_p1 = scmp.eq.s32.totalorder %s4022_s28, 0 }
  0x13   : > { %p321_p2 = scmp.lt.s32.totalorder %s3916_s24, 3  ;;  %s3918_s30 = smov [#allocation5]  }
  0x14   : > { %s337_s13 = sshll.u32 %s3918_s30, 4  ;;  %s4767_s4 = sld [smem:[#allocation29_spill]]  ;;  %s338_s13 = int_to_ptr.vmem [resolvable:$true] %s337_s13 }
  0x15   : > { %p4027_p3 = pnand %p3242_p0, %p321_p2  ;;  %s3919_s18 = smov [#allocation8]  }
  0x16   : > { %s363_s19 = sshll.u32 %s3919_s18, 4  ;;  %s3920_s20 = smov 256   ;;  %s364_s19 = int_to_ptr.vmem [resolvable:$true] %s363_s19 }
  0x17   : > { %s335_s27 = sshll.u32 %s4765_s2, 4  ;;  %p3379_p4 = pneg %p4027_p3  ;;  %s336_s27 = int_to_ptr.hbm [resolvable:$true] %s335_s27 }
  0x18   : > { %s3921_s25 = smov 16   ;;  %s3922_s26 = smov 512  }
  0x19   : > { %p4039_p6 = pnand %p3379_p4, %p54_p1  ;;  %s3923_s30 = smov 32  }
  0x1a   : > { %s361_s16 = sshll.u32 %s4767_s4, 4  ;;  %s391_s2 = sshll.u32 %s4751_s7, 4  ;;  %s362_s16 = int_to_ptr.hbm [resolvable:$true] %s361_s16  ;;  %s392_s2 = int_to_ptr.hbm [resolvable:$true] %s391_s2 }
  0x1b   : > { %3382 = dma.hbm_to_vmem [thread:$0]  (!%p4039_p6), %s336_s27, 6144, %s338_s13, [#allocation6], %s3920_s20, %s3920_s20, %s3921_s25  }
  0x1c   : > { %3388 = dma.hbm_to_vmem [thread:$0]  (!%p4039_p6), %s362_s16, 49152, %s364_s19, [#allocation9], %s3922_s26, %s3922_s26, %s3923_s30  }
  0x1d   : > { %s3924_s4 = smov [#allocation11]   ;;  %s415_s13 = sshll.u32 %s4753_s9, 4  ;;  %s416_s13 = int_to_ptr.hbm [resolvable:$true] %s415_s13 }
  0x1e   : > { %s393_s18 = sshll.u32 %s3924_s4, 4  ;;  %s3925_s20 = smov [#allocation14]   ;;  %s394_s18 = int_to_ptr.vmem [resolvable:$true] %s393_s18 }
  0x1f   : > { %3394 = dma.hbm_to_vmem [thread:$0]  (!%p4039_p6), %s392_s2, 16, %s394_s18, [#allocation12]  }
  0x20   : > { %s417_s25 = sshll.u32 %s3925_s20, 4  ;;  %s4769_s3 = sld [smem:[#allocation28_spill]]  ;;  %s418_s25 = int_to_ptr.vmem [resolvable:$true] %s417_s25 }
  0x21   : > { %3400 = dma.hbm_to_vmem [thread:$0]  (!%p4039_p6), %s416_s13, 64, %s418_s25, [#allocation15]  }
  0x22   : > { %s4770_s5 = sld [smem:[#allocation30_spill]]  ;;  %s3926_s12 = smov [#allocation7]  }
  0x23   : > { %s352_s27 = sshll.u32 %s3926_s12, 4  ;;  %s3927_s2 = smov [#allocation10]   ;;  %s353_s27 = int_to_ptr.vmem [resolvable:$true] %s352_s27 }
  0x24   : > { %s378_s18 = sshll.u32 %s3927_s2, 4  ;;  %s403_s16 = sshll.u32 %s4752_s8, 4  ;;  %s379_s18 = int_to_ptr.vmem [resolvable:$true] %s378_s18  ;;  %s404_s16 = int_to_ptr.hbm [resolvable:$true] %s403_s16 }
  0x25   : > { %s426_s4 = sshll.u32 %s4754_s10, 4  ;;  %s3928_s14 = smov [#allocation13]   ;;  %s427_s4 = int_to_ptr.hbm [resolvable:$true] %s426_s4 }
  0x26   : > { %s350_s19 = sshll.u32 %s4769_s3, 4  ;;  %s3929_s12 = smov [#allocation16]   ;;  %s351_s19 = int_to_ptr.hbm [resolvable:$true] %s350_s19 }
  0x27   : > { %3385 = dma.hbm_to_vmem [thread:$0]  (!%p4039_p6), %s351_s19, 32, %s353_s27, [#allocation6]  }
  0x28   : > { %s376_s15 = sshll.u32 %s4770_s5, 4  ;;  %s405_s19 = sshll.u32 %s3928_s14, 4  ;;  %s377_s15 = int_to_ptr.hbm [resolvable:$true] %s376_s15  ;;  %s406_s19 = int_to_ptr.vmem [resolvable:$true] %s405_s19 }
  0x29   : > { %3391 = dma.hbm_to_vmem [thread:$0]  (!%p4039_p6), %s377_s15, 64, %s379_s18, [#allocation9]  }
  0x2a   : > { %3397 = dma.hbm_to_vmem [thread:$0]  (!%p4039_p6), %s404_s16, 128, %s406_s19, [#allocation12]  }
  0x2b   : > { %s428_s15 = sshll.u32 %s3929_s12, 4  ;;  %s441_s18 = sshll.u32 %s4755_s11, 4  ;;  %s429_s15 = int_to_ptr.vmem [resolvable:$true] %s428_s15  ;;  %s442_s18 = int_to_ptr.hbm [resolvable:$true] %s441_s18 }
  0x2c   : > { %3403 = dma.hbm_to_vmem [thread:$0]  (!%p4039_p6), %s427_s4, 32768, %s429_s15, [#allocation15], %s3922_s26, %s3922_s26, %s3923_s30  }
  0x2d   : > { %s3930_s6 = smov [#allocation17]   ;;  %s3241_s16 = sadd.s32 4294967294, %s3916_s24  }
  0x2e   : > { %s443_s20 = sshll.u32 %s3930_s6, 4  ;;  %s4090_s13 = sadd.s32 1, %s3916_s24   ;;  %s444_s20 = int_to_ptr.vmem [resolvable:$true] %s443_s20 }
  0x2f   : > { %3406 = dma.hbm_to_vmem [thread:$0]  (!%p4039_p6), %s442_s18, 64, %s444_s20, [#allocation18]  }
  0x30   : > { %s40_s25 = sadd.s32 1, %s3912_s23  ;;  %s37_s14 = ssub.s32 %s3916_s24, %s4090_s13 }
  0x31   : > { %p47_p7 = scmp.ne.s32.totalorder %s3912_s23, %s3908_s22  ;;  %p38_p8 = scmp.eq.s32.totalorder %s37_s14, 0 }
  0x32   : > { %p48_p9 = scmp.eq.s32.totalorder %s3916_s24, 0  ;;  %p53_p10 = scmp.ne.s32.totalorder %s3908_s22, %s3904_s21 }
  0x33   : > { %p308_p11 = scmp.eq.s32.totalorder %s4022_s28, 1  ;;  %p314_p0 = scmp.eq.s32.totalorder %s3241_s16, 1 }
  0x34   : > { %s4102_s26 = scalar_select %p38_p8, %s3912_s23, %s40_s25  }
  0x35   : > { %p4106_p12 = por %p54_p1, %p53_p10  ;;  %p4110_p13 = por %p308_p11, %p47_p7 }
  0x36   : > { %p49_p2 = por %p48_p9, %p47_p7  ;;  %s454_s4 = sand.u32 1, %s3912_s23  }
  0x37   : > { %p4115_p4 = por %p314_p0, %p53_p10  ;;  %p3424_p6 = scmp.lt.s32.totalorder %s3916_s24, 2 }
  0x38   : > { %s3253_s12 = sshll.u32 %s454_s4, 3  ;;  %s3254_s15 = sshll.u32 %s3916_s24, 3 }
  0x39   : > { %s462_s18 = scalar_lea.hbm %s4744_s0, %s3254_s15  ;;  %s458_s20 = scalar_lea.vmem [#allocation2], %s3253_s12 }
  0x3a   : > { %s464_s6 = sshll.u32 %s462_s18, 4  ;;  %s466_s25 = sshll.u32 %s458_s20, 4  ;;  %s465_s6 = int_to_ptr.hbm [resolvable:$true] %s464_s6  ;;  %s467_s25 = int_to_ptr.vmem [resolvable:$true] %s466_s25 }
  0x3b   : > { %p4124_p8 = pnand %p3424_p6, %p49_p2  ;;  %s455_s14 = scalar_lea.sflag [#allocation3], %s454_s4 }
  0x3c   : > { %s3800_s3 = sshra.s32 %s465_s6, 4  ;;  %s3807_s12 = scalar_lea.hbm %s4744_s0, 16  ;;  %s3801_s3 = int_to_ptr.hbm [resolvable:$true] %s3800_s3 }
  0x3d   : > { %s3802_s5 = scalar_lea.hbm %s3801_s3, 8  ;;  %p3804_p9 = pneg %p4124_p8 }
  0x3e   : > { %p3803_p7 = scmp.ne.s32.totalorder %s3801_s3, %s3802_s5  ;;  %p3808_p0 = scmp.lt.s32.totalorder %s3801_s3, %s4744_s0 }
  0x3f   : > { %p3809_p2 = scmp.lt.s32.totalorder %s3807_s12, %s3802_s5 }
  0x40   : > { %p3805_p10 = pnand %p3804_p9, %p3803_p7 }
  0x41   : > { %p3810_p6 = por %p3809_p2, %p3808_p0 }
  0x42   : > { %p3806_p11 = pneg %p3805_p10 }
  0x44   : > { %p3811_p5 = pnand %p3810_p6, %p3806_p11 }
  0x46   : > { %3814 = shalt.err (!%p3811_p5)
}
  0x47   : > { %3410 = dma.hbm_to_vmem [thread:$0]  (!%p4124_p8), %s465_s6, 128, %s467_s25, %s455_s14  }
  0x48   : > { %475 = sbr.rel (%p4027_p3) target bundleno = 1117 (0x45d), region = 68  ;;  %s4141_s4 = sand.u32 (!%p4027_p3), 1, %s3908_s22  }
  0x49   : > { %s3256_s20 = sshll.u32 (!%p4027_p3), %s4141_s4, 3  ;;  %s478_s15 = scalar_lea.sflag (!%p4027_p3), [#allocation3], %s4141_s4 }
  0x4a   : > { %s481_s27 = scalar_lea.vmem (!%p4027_p3), [#allocation2], %s3256_s20 }
  0x4d   : > { %3875 = dma.done.wait (%p4106_p12), %s478_s15, 128  }
  0x4e   : > { %3877 = vsyncadd (%p4106_p12), %s478_s15, 4294967168 }
  0x4f   : > { %3879 = dma.done.wait (%p54_p1), [#allocation6], 6176  }
  0x50   : > { %3881 = vsyncadd (%p54_p1), [#allocation6], 4294961120 }
  0x51   : > { %3883 = dma.done.wait (%p54_p1), [#allocation9], 49216  }
  0x52   : > { %3885 = vsyncadd (%p54_p1), [#allocation9], 4294918080 }
  0x53   : > { %3887 = dma.done.wait (%p54_p1), [#allocation12], 144  }
  0x54   : > { %3889 = vsyncadd (%p54_p1), [#allocation12], 4294967152 }
  0x55   : > { %3891 = dma.done.wait (%p54_p1), [#allocation15], 32832  }
  0x56   : > { %3893 = vsyncadd (%p54_p1), [#allocation15], 4294934464 }
  0x57   : > { %3895 = dma.done.wait (%p54_p1), [#allocation18], 64  }
  0x58   : > { %3897 = vsyncadd (%p54_p1), [#allocation18], 4294967232  ;;  %vm571_vm0 = vcmask 64512   ;;  %v568_v0 = vld [vmem:[%s481_s27] sm:$0xff]  ;;  %v569_v1 = vld [vmem:[%s4745_s1] sm:$0xff]  ;;  %vm698_vm1 = vcmask 523264  }
  0x59   : > { %v3269_v2 = vld [vmem:[%s4745_s1 + $0x10] sm:$0xff]  ;;  %593 = vmatpush.msra.mxu0 %v568_v0  ;;  %625 = vmatpush.msra.mxu1 %v568_v0  ;;  %v3273_v3 = vld [vmem:[%s4745_s1 + $0x20] sm:$0xff]  ;;  %v696_v4 = vld [vmem:[#allocation5 + $0xf0] sm:$0xff]  ;;  %vm907_vm2 = vcmask 1046528   ;;  %vm894_vm3 = vcmask 1040384   ;;  %s4777_s3 = sld [smem:[#allocation31_spill]] }
  0x5a   : > { %3267 = vmatmul.msk.f32.vlgmr.msra.gmra.mxu0 %vm571_vm0, %v569_v1  ;;  %3271 = vmatmul.msk.f32.vlgmr.msra.gmra.mxu1 %vm571_vm0, %v3269_v2  ;;  %v697_v5 = vld [vmem:[#allocation5 + $0xf8] sm:$0xff]  ;;  %v694_v7 = vld [vmem:[#allocation5 + $0xe0] sm:$0xff]  ;;  %v695_v8 = vld [vmem:[#allocation5 + $0xe8] sm:$0xff]  ;;  %vm2087_vm5 = vcmask 1041408   ;;  %vm2083_vm6 = vcmask 15360   ;;  %s3266_s18 = sshll.u32 %s4141_s4, 6 }
  0x5b   : > { %657 = vmatpush.msra.mxu2 %v568_v0  ;;  %713 = vmatpush.msra.mxu3 %v696_v4  ;;  %v680_v6 = vld [vmem:[#allocation5 + $0x78] sm:$0xff]  ;;  %v678_v9 = vld [vmem:[#allocation5 + $0x68] sm:$0xff]  ;;  %v692_v10 = vld [vmem:[#allocation5 + $0xd0] sm:$0xff]  ;;  %s4671_s20 = scalar_lea.vmem [#allocation19], %s3266_s18  ;;  %s3338_s15 = sshll.u32 %s4022_s28, 6 }
  0x5c   : > { %3275 = vmatmul.msk.f32.vlgmr.msra.gmra.mxu2 %vm571_vm0, %v3273_v3  ;;  %736 = vmatpush.msrb.mxu0 %v697_v5  ;;  %v693_v11 = vld [vmem:[#allocation5 + $0xd8] sm:$0xff]  ;;  %v690_v13 = vld [vmem:[#allocation5 + $0xc0] sm:$0xff]  ;;  %v679_v14 = vld [vmem:[#allocation5 + $0x70] sm:$0xff]  ;;  %s4778_s29 = sld [smem:[#allocation32_spill]]  ;;  %s3079_s28 = sshll.u32 %s4671_s20, 4  ;;  %s3080_s28 = int_to_ptr.vmem [resolvable:$true] %s3079_s28 }
  0x5d   : > { %788 = vmatpush.msrb.mxu2 %v680_v6  ;;  %714 = vmatpush.msra.mxu3 %v694_v7  ;;  %v676_v12 = vld [vmem:[#allocation5 + $0x58] sm:$0xff]  ;;  %v570_v15 = vld [vmem:[%s4745_s1 + $0x8] sm:$0xff]  ;;  %v3270_v16 = vld [vmem:[%s4745_s1 + $0x18] sm:$0xff]  ;;  %s3067_s25 = scalar_lea.sflag [#allocation4], %s4141_s4 }
  0x5e   : > { %737 = vmatpush.msrb.mxu0 %v695_v8  ;;  %v691_v17 = vld [vmem:[#allocation5 + $0xc8] sm:$0xff]  ;;  %765 = vmatpush.msrb.mxu1 %v679_v14  ;;  %v3274_v19 = vld [vmem:[%s4745_s1 + $0x28] sm:$0xff]  ;;  %v689_v21 = vld [vmem:[#allocation5 + $0xb8] sm:$0xff] }
  0x5f   : > { %789 = vmatpush.msrb.mxu2 %v678_v9  ;;  %715 = vmatpush.msra.mxu3 %v692_v10  ;;  %v674_v18 = vld [vmem:[#allocation5 + $0x48] sm:$0xff]  ;;  %v688_v20 = vld [vmem:[#allocation5 + $0xb0] sm:$0xff]  ;;  %v677_v22 = vld [vmem:[#allocation5 + $0x60] sm:$0xff] }
  0x60   : > { %738 = vmatpush.msrb.mxu0 %v693_v11  ;;  %v672_v23 = vld [vmem:[#allocation5 + $0x38] sm:$0xff]  ;;  %v686_v24 = vld [vmem:[#allocation5 + $0xa0] sm:$0xff]  ;;  %v687_v25 = vld [vmem:[#allocation5 + $0xa8] sm:$0xff]  ;;  %766 = vmatpush.msrb.mxu1 %v677_v22 }
  0x61   : > { %790 = vmatpush.msrb.mxu2 %v676_v12  ;;  %716 = vmatpush.msra.mxu3 %v690_v13  ;;  %v675_v26 = vld [vmem:[#allocation5 + $0x50] sm:$0xff]  ;;  %v670_v27 = vld [vmem:[#allocation5 + $0x28] sm:$0xff]  ;;  %v685_v29 = vld [vmem:[#allocation5 + $0x98] sm:$0xff] }
  0x62   : > { %3268 = vmatmul.msk.f32.gmra.mxu0 %vm571_vm0, %v570_v15  ;;  %3272 = vmatmul.msk.f32.gmra.mxu1 %vm571_vm0, %v3270_v16  ;;  %v684_v28 = vld [vmem:[#allocation5 + $0x90] sm:$0xff]  ;;  %v673_v30 = vld [vmem:[#allocation5 + $0x40] sm:$0xff]  ;;  %v668_v31 = vld [vmem:[#allocation5 + $0x18] sm:$0xff]  ;;  %s3078_s17 = scalar_lea.hbm %s4778_s29, %s3338_s15  ;;  %s3850_s18 = scalar_lea.hbm %s4778_s29, 128 }
  0x63   : > { %739 = vmatpush.msrb.mxu0 %v691_v17  ;;  %791 = vmatpush.msrb.mxu2 %v674_v18  ;;  %v682_v32 = vld [vmem:[#allocation5 + $0x80] sm:$0xff]  ;;  %v683_v33 = vld [vmem:[#allocation5 + $0x88] sm:$0xff]  ;;  %v671_v34 = vld [vmem:[#allocation5 + $0x30] sm:$0xff]  ;;  %s3081_s6 = sshll.u32 %s3078_s17, 4  ;;  %s3082_s6 = int_to_ptr.hbm [resolvable:$true] %s3081_s6 }
  0x64   : > { %3276 = vmatmul.msk.f32.gmra.mxu2 %vm571_vm0, %v3274_v19  ;;  %717 = vmatpush.msra.mxu3 %v688_v20  ;;  %v666_v35 = vld [vmem:[#allocation5 + $0x8] sm:$0xff]  ;;  %v669_v36 = vld [vmem:[#allocation5 + $0x20] sm:$0xff]  ;;  %v818_v37 = vld [vmem:[#allocation5 + $0x170] sm:$0xff]  ;;  %s3844_s16 = sshra.s32 %s3082_s6, 4  ;;  %s3845_s16 = int_to_ptr.hbm [resolvable:$true] %s3844_s16 }
  0x65   : > { %740 = vmatpush.msrb.mxu0 %v689_v21  ;;  %792 = vmatpush.msrb.mxu2 %v672_v23  ;;  %v819_v38 = vld [vmem:[#allocation5 + $0x178] sm:$0xff]  ;;  %v667_v39 = vld [vmem:[#allocation5 + $0x10] sm:$0xff]  ;;  %v816_v40 = vld [vmem:[#allocation5 + $0x160] sm:$0xff]  ;;  %s3846_s14 = scalar_lea.hbm %s3845_s16, 64  ;;  %p3851_p12 = scmp.lt.s32.totalorder %s3845_s16, %s4778_s29 }
  0x66   : > { %718 = vmatpush.msra.mxu3 %v686_v24  ;;  %767 = vmatpush.msrb.mxu1 %v675_v26  ;;  %v817_v41 = vld [vmem:[#allocation5 + $0x168] sm:$0xff]  ;;  %v665_v42 = vld [vmem:[#allocation5] sm:$0xff]  ;;  %v814_v43 = vld [vmem:[#allocation5 + $0x150] sm:$0xff]  ;;  %p3847_p1 = scmp.ne.s32.totalorder %s3845_s16, %s3846_s14  ;;  %p3852_p8 = scmp.lt.s32.totalorder %s3850_s18, %s3846_s14 }
  0x67   : > { %741 = vmatpush.msrb.mxu0 %v687_v25  ;;  %793 = vmatpush.msrb.mxu2 %v670_v27  ;;  %v815_v44 = vld [vmem:[#allocation5 + $0x158] sm:$0xff]  ;;  %v812_v45 = vld [vmem:[#allocation5 + $0x140] sm:$0xff]  ;;  %v813_v46 = vld [vmem:[#allocation5 + $0x148] sm:$0xff] }
  0x68   : > { %719 = vmatpush.msra.mxu3 %v684_v28  ;;  %768 = vmatpush.msrb.mxu1 %v673_v30  ;;  %v810_v47 = vld [vmem:[#allocation5 + $0x130] sm:$0xff]  ;;  %v811_v48 = vld [vmem:[#allocation5 + $0x138] sm:$0xff]  ;;  %v808_v49 = vld [vmem:[#allocation5 + $0x120] sm:$0xff]  ;;  %p3848_p3 = pnand %p3847_p1, %p4110_p13  ;;  %p3853_p7 = por %p3852_p8, %p3851_p12 }
  0x69   : > { %742 = vmatpush.msrb.mxu0 %v685_v29  ;;  %794 = vmatpush.msrb.mxu2 %v668_v31  ;;  %v809_v50 = vld [vmem:[#allocation5 + $0x128] sm:$0xff]  ;;  %v806_v51 = vld [vmem:[#allocation5 + $0x110] sm:$0xff]  ;;  %v807_v52 = vld [vmem:[#allocation5 + $0x118] sm:$0xff] }
  0x6a   : > { %720 = vmatpush.msra.mxu3 %v682_v32  ;;  %769 = vmatpush.msrb.mxu1 %v671_v34  ;;  %v804_v53 = vld [vmem:[#allocation5 + $0x100] sm:$0xff]  ;;  %v805_v54 = vld [vmem:[#allocation5 + $0x108] sm:$0xff]  ;;  %vm4246_vm4 = vmneg %vm894_vm3  ;;  %p3849_p5 = pneg %p3848_p3 }
  0x6b   : > { %743 = vmatpush.msrb.mxu0 %v683_v33  ;;  %795 = vmatpush.msrb.mxu2 %v666_v35  ;;  %v1173_v55 = vld [vmem:[#allocation8 + $0x7e0] sm:$0xff]  ;;  %v1174_v0 = vld [vmem:[#allocation8 + $0x7e8] sm:$0xff] }
  0x6c   : > { %770 = vmatpush.msrb.mxu1 %v669_v36  ;;  %834 = vmatpush.msrb.mxu3 %v818_v37  ;;  %v1169_v56 = vld [vmem:[#allocation8 + $0x7c0] sm:$0xff]  ;;  %v1110_v1 = vld [vmem:[#allocation8 + $0x5e8] sm:$0xff]  ;;  %p3854_p9 = pnand %p3853_p7, %p3849_p5 }
  0x6d   : > { %857 = vmatpush.msra.mxu0 %v819_v38  ;;  %1200 = vmatpush.msra.mxu2 %v1173_v55  ;;  %v1165_v57 = vld [vmem:[#allocation8 + $0x7a0] sm:$0xff]  ;;  %v1170_v4 = vld [vmem:[#allocation8 + $0x7c8] sm:$0xff] }
  0x6e   : > { %771 = vmatpush.msrb.mxu1 %v667_v39  ;;  %835 = vmatpush.msrb.mxu3 %v816_v40  ;;  %v1109_v58 = vld [vmem:[#allocation8 + $0x5e0] sm:$0xff]  ;;  %v1106_v5 = vld [vmem:[#allocation8 + $0x5c8] sm:$0xff] }
  0x6f   : > { %858 = vmatpush.msra.mxu0 %v817_v41  ;;  %1201 = vmatpush.msra.mxu2 %v1169_v56  ;;  %v1105_v59 = vld [vmem:[#allocation8 + $0x5c0] sm:$0xff]  ;;  %v1166_v8 = vld [vmem:[#allocation8 + $0x7a8] sm:$0xff] }
  0x70   : > { %772 = vmatpush.msrb.mxu1 %v665_v42  ;;  %836 = vmatpush.msrb.mxu3 %v814_v43  ;;  %v1161_v60 = vld [vmem:[#allocation8 + $0x780] sm:$0xff]  ;;  %v1102_v9 = vld [vmem:[#allocation8 + $0x5a8] sm:$0xff] }
  0x71   : > { %859 = vmatpush.msra.mxu0 %v815_v44  ;;  %v1101_v61 = vld [vmem:[#allocation8 + $0x5a0] sm:$0xff]  ;;  %1202 = vmatpush.msra.mxu2 %v1165_v57  ;;  %v1162_v14 = vld [vmem:[#allocation8 + $0x788] sm:$0xff]  ;;  %v1171_v57 = vld [vmem:[#allocation8 + $0x7d0] sm:$0xff] }
  0x72   : > { %837 = vmatpush.msrb.mxu3 %v812_v45  ;;  %1177 = vmatpush.msra.mxu1 %v1109_v58  ;;  %v1157_v2 = vld [vmem:[#allocation8 + $0x760] sm:$0xff]  ;;  %v1098_v15 = vld [vmem:[#allocation8 + $0x588] sm:$0xff] }
  0x73   : > { %860 = vmatpush.msra.mxu0 %v813_v46  ;;  %1203 = vmatpush.msra.mxu2 %v1161_v60  ;;  %v1097_v3 = vld [vmem:[#allocation8 + $0x580] sm:$0xff]  ;;  %v1158_v18 = vld [vmem:[#allocation8 + $0x768] sm:$0xff] }
  0x74   : > { %838 = vmatpush.msrb.mxu3 %v810_v47  ;;  %1178 = vmatpush.msra.mxu1 %v1105_v59  ;;  %v1153_v6 = vld [vmem:[#allocation8 + $0x740] sm:$0xff]  ;;  %v1094_v19 = vld [vmem:[#allocation8 + $0x568] sm:$0xff] }
  0x75   : > { %861 = vmatpush.msra.mxu0 %v811_v48  ;;  %v1093_v7 = vld [vmem:[#allocation8 + $0x560] sm:$0xff]  ;;  %1204 = vmatpush.msra.mxu2 %v1157_v2  ;;  %v1154_v23 = vld [vmem:[#allocation8 + $0x748] sm:$0xff]  ;;  %v1163_v2 = vld [vmem:[#allocation8 + $0x790] sm:$0xff] }
  0x76   : > { %839 = vmatpush.msrb.mxu3 %v808_v49  ;;  %1179 = vmatpush.msra.mxu1 %v1101_v61  ;;  %v1149_v10 = vld [vmem:[#allocation8 + $0x720] sm:$0xff]  ;;  %v1090_v24 = vld [vmem:[#allocation8 + $0x548] sm:$0xff]  ;;  %v1167_v61 = vld [vmem:[#allocation8 + $0x7b0] sm:$0xff] }
  0x77   : > { %862 = vmatpush.msra.mxu0 %v809_v50  ;;  %v1089_v11 = vld [vmem:[#allocation8 + $0x540] sm:$0xff]  ;;  %1205 = vmatpush.msra.mxu2 %v1153_v6  ;;  %v1150_v27 = vld [vmem:[#allocation8 + $0x728] sm:$0xff]  ;;  %v1164_v6 = vld [vmem:[#allocation8 + $0x798] sm:$0xff] }
  0x78   : > { %840 = vmatpush.msrb.mxu3 %v806_v51  ;;  %1180 = vmatpush.msra.mxu1 %v1097_v3  ;;  %v1145_v16 = vld [vmem:[#allocation8 + $0x700] sm:$0xff]  ;;  %v1086_v28 = vld [vmem:[#allocation8 + $0x528] sm:$0xff]  ;;  %v1112_v3 = vld [vmem:[#allocation8 + $0x5f8] sm:$0xff] }
  0x79   : > { %863 = vmatpush.msra.mxu0 %v807_v52  ;;  %1206 = vmatpush.msra.mxu2 %v1149_v10  ;;  %v1085_v17 = vld [vmem:[#allocation8 + $0x520] sm:$0xff]  ;;  %v1146_v31 = vld [vmem:[#allocation8 + $0x708] sm:$0xff]  ;;  %v1160_v10 = vld [vmem:[#allocation8 + $0x778] sm:$0xff] }
  0x7a   : > { %841 = vmatpush.msrb.mxu3 %v804_v53  ;;  %1181 = vmatpush.msra.mxu1 %v1093_v7  ;;  %v1141_v20 = vld [vmem:[#allocation8 + $0x6e0] sm:$0xff]  ;;  %v1082_v32 = vld [vmem:[#allocation8 + $0x508] sm:$0xff]  ;;  %v1175_v53 = vld [vmem:[#allocation8 + $0x7f0] sm:$0xff] }
  0x7b   : > { %864 = vmatpush.msra.mxu0 %v805_v54  ;;  %v1081_v21 = vld [vmem:[#allocation8 + $0x500] sm:$0xff]  ;;  %1207 = vmatpush.msra.mxu2 %v1145_v16  ;;  %v1142_v35 = vld [vmem:[#allocation8 + $0x6e8] sm:$0xff]  ;;  %v1107_v7 = vld [vmem:[#allocation8 + $0x5d0] sm:$0xff] }
  0x7c   : > { %1182 = vmatpush.msra.mxu1 %v1089_v11  ;;  %v1137_v25 = vld [vmem:[#allocation8 + $0x6c0] sm:$0xff]  ;;  %v1078_v36 = vld [vmem:[#allocation8 + $0x4e8] sm:$0xff]  ;;  %v1103_v11 = vld [vmem:[#allocation8 + $0x5b0] sm:$0xff] }
  0x7d   : > { %v1077_v26 = vld [vmem:[#allocation8 + $0x4e0] sm:$0xff]  ;;  %1208 = vmatpush.msra.mxu2 %v1141_v20  ;;  %v1138_v39 = vld [vmem:[#allocation8 + $0x6c8] sm:$0xff]  ;;  %v1151_v16 = vld [vmem:[#allocation8 + $0x730] sm:$0xff] }
  0x7e   : > { %1183 = vmatpush.msra.mxu1 %v1085_v17  ;;  %v1133_v29 = vld [vmem:[#allocation8 + $0x6a0] sm:$0xff]  ;;  %v1074_v40 = vld [vmem:[#allocation8 + $0x4c8] sm:$0xff]  ;;  %v1100_v17 = vld [vmem:[#allocation8 + $0x598] sm:$0xff] }
  0x7f   : > { %1209 = vmatpush.msra.mxu2 %v1137_v25  ;;  %v1073_v30 = vld [vmem:[#allocation8 + $0x4c0] sm:$0xff]  ;;  %v1134_v42 = vld [vmem:[#allocation8 + $0x6a8] sm:$0xff]  ;;  %v1147_v20 = vld [vmem:[#allocation8 + $0x710] sm:$0xff] }
  0x80   : > { %1184 = vmatpush.msra.mxu1 %v1081_v21  ;;  %v1129_v33 = vld [vmem:[#allocation8 + $0x680] sm:$0xff]  ;;  %v1070_v44 = vld [vmem:[#allocation8 + $0x4a8] sm:$0xff]  ;;  %v1096_v21 = vld [vmem:[#allocation8 + $0x578] sm:$0xff] }
  0x81   : > { %v1069_v34 = vld [vmem:[#allocation8 + $0x4a0] sm:$0xff]  ;;  %1210 = vmatpush.msra.mxu2 %v1133_v29  ;;  %v1130_v46 = vld [vmem:[#allocation8 + $0x688] sm:$0xff]  ;;  %v1092_v25 = vld [vmem:[#allocation8 + $0x558] sm:$0xff] }
  0x82   : > { %1185 = vmatpush.msra.mxu1 %v1077_v26  ;;  %v1125_v37 = vld [vmem:[#allocation8 + $0x660] sm:$0xff]  ;;  %v1066_v48 = vld [vmem:[#allocation8 + $0x488] sm:$0xff]  ;;  %v1144_v26 = vld [vmem:[#allocation8 + $0x6f8] sm:$0xff] }
  0x83   : > { %v1065_v38 = vld [vmem:[#allocation8 + $0x480] sm:$0xff]  ;;  %1211 = vmatpush.msra.mxu2 %v1129_v33  ;;  %v1126_v50 = vld [vmem:[#allocation8 + $0x668] sm:$0xff]  ;;  %v1088_v29 = vld [vmem:[#allocation8 + $0x538] sm:$0xff] }
  0x84   : > { %1186 = vmatpush.msra.mxu1 %v1073_v30  ;;  %v1121_v43 = vld [vmem:[#allocation8 + $0x640] sm:$0xff]  ;;  %v1062_v52 = vld [vmem:[#allocation8 + $0x468] sm:$0xff]  ;;  %v1140_v30 = vld [vmem:[#allocation8 + $0x6d8] sm:$0xff] }
  0x85   : > { %1212 = vmatpush.msra.mxu2 %v1125_v37  ;;  %v1061_v45 = vld [vmem:[#allocation8 + $0x460] sm:$0xff]  ;;  %v1122_v54 = vld [vmem:[#allocation8 + $0x648] sm:$0xff]  ;;  %v1084_v33 = vld [vmem:[#allocation8 + $0x518] sm:$0xff] }
  0x86   : > { %1187 = vmatpush.msra.mxu1 %v1069_v34  ;;  %v1117_v47 = vld [vmem:[#allocation8 + $0x620] sm:$0xff]  ;;  %v1058_v56 = vld [vmem:[#allocation8 + $0x448] sm:$0xff]  ;;  %v1136_v34 = vld [vmem:[#allocation8 + $0x6b8] sm:$0xff] }
  0x87   : > { %1213 = vmatpush.msra.mxu2 %v1121_v43  ;;  %v1057_v49 = vld [vmem:[#allocation8 + $0x440] sm:$0xff]  ;;  %v1118_v58 = vld [vmem:[#allocation8 + $0x628] sm:$0xff]  ;;  %v1080_v37 = vld [vmem:[#allocation8 + $0x4f8] sm:$0xff] }
  0x88   : > { %1188 = vmatpush.msra.mxu1 %v1065_v38  ;;  %v1113_v51 = vld [vmem:[#allocation8 + $0x600] sm:$0xff]  ;;  %v1054_v60 = vld [vmem:[#allocation8 + $0x428] sm:$0xff]  ;;  %v1132_v38 = vld [vmem:[#allocation8 + $0x698] sm:$0xff] }
  0x89   : > { %1214 = vmatpush.msra.mxu2 %v1117_v47  ;;  %v1053_v55 = vld [vmem:[#allocation8 + $0x420] sm:$0xff]  ;;  %v1071_v43 = vld [vmem:[#allocation8 + $0x4b0] sm:$0xff] }
  0x8a   : > { %1189 = vmatpush.msra.mxu1 %v1061_v45  ;;  %v1049_v59 = vld [vmem:[#allocation8 + $0x400] sm:$0xff]  ;;  %v1072_v45 = vld [vmem:[#allocation8 + $0x4b8] sm:$0xff]  ;;  %v1067_v47 = vld [vmem:[#allocation8 + $0x490] sm:$0xff] }
  0x8b   : > { %1215 = vmatpush.msra.mxu2 %v1113_v51  ;;  %v1063_v51 = vld [vmem:[#allocation8 + $0x470] sm:$0xff] }
  0x8c   : > { %1190 = vmatpush.msra.mxu1 %v1057_v49  ;;  %v1068_v49 = vld [vmem:[#allocation8 + $0x498] sm:$0xff] }
  0x8e   : > { %1191 = vmatpush.msra.mxu1 %v1053_v55  ;;  %v1059_v55 = vld [vmem:[#allocation8 + $0x450] sm:$0xff] }
  0x90   : > { %1192 = vmatpush.msra.mxu1 %v1049_v59  ;;  %v1051_v59 = vld [vmem:[#allocation8 + $0x410] sm:$0xff] }
  0xd7   : > { %v595_v62 = vpop.f32.mrf.mxu0  ;;  %v627_v63 = vpop.f32.mrf.mxu1 }
  0xd8   : > { %3277 = vmatmul.msk.f32.vlgmr.msra.gmra.mxu3 %vm698_vm1, %v627_v63  ;;  %3279 = vmatmul.msk.f32.vlgmr.msrb.gmra.mxu0 %vm698_vm1, %v627_v63  ;;  %v1111_v63 = vld [vmem:[#allocation8 + $0x5f0] sm:$0xff] }
  0xd9   : > { %3283 = vmatmul.msk.f32.vlgmr.msrb.gmra.mxu2 %vm698_vm1, %v595_v62  ;;  %3281 = vmatmul.msk.f32.vlgmr.msrb.gmra.mxu1 %vm698_vm1, %v595_v62  ;;  %v1114_v62 = vld [vmem:[#allocation8 + $0x608] sm:$0xff] }
  0xda   : > { %1246 = vmatpush.msrb.mxu0 %v1174_v0  ;;  %1223 = vmatpush.msra.mxu3 %v1110_v1  ;;  %v1176_v0 = vld [vmem:[#allocation8 + $0x7f8] sm:$0xff]  ;;  %v1050_v1 = vld [vmem:[#allocation8 + $0x408] sm:$0xff] }
  0xdb   : > { %1292 = vmatpush.msrb.mxu2 %v1175_v53  ;;  %1269 = vmatpush.msrb.mxu1 %v1111_v63  ;;  %v1064_v53 = vld [vmem:[#allocation8 + $0x478] sm:$0xff] }
  0xdc   : > { %1247 = vmatpush.msrb.mxu0 %v1170_v4  ;;  %1224 = vmatpush.msra.mxu3 %v1106_v5  ;;  %v1172_v4 = vld [vmem:[#allocation8 + $0x7d8] sm:$0xff] }
  0xdd   : > { %1293 = vmatpush.msrb.mxu2 %v1171_v57  ;;  %v1168_v5 = vld [vmem:[#allocation8 + $0x7b8] sm:$0xff]  ;;  %1270 = vmatpush.msrb.mxu1 %v1107_v7  ;;  %v1055_v57 = vld [vmem:[#allocation8 + $0x430] sm:$0xff] }
  0xde   : > { %1248 = vmatpush.msrb.mxu0 %v1166_v8  ;;  %1225 = vmatpush.msra.mxu3 %v1102_v9  ;;  %v1159_v8 = vld [vmem:[#allocation8 + $0x770] sm:$0xff]  ;;  %v1108_v9 = vld [vmem:[#allocation8 + $0x5d8] sm:$0xff] }
  0xdf   : > { %v598_v12 = vpop.f32.mrf.mxu0  ;;  %v630_v13 = vpop.f32.mrf.mxu1  ;;  %1294 = vmatpush.msrb.mxu2 %v1167_v61  ;;  %1271 = vmatpush.msrb.mxu1 %v1103_v11 }
  0xe0   : > { %3278 = vmatmul.msk.f32.gmra.mxu3 %vm698_vm1, %v630_v13  ;;  %3280 = vmatmul.msk.f32.gmra.mxu0 %vm698_vm1, %v630_v13  ;;  %v659_v22 = vpop.f32.mrf.mxu2  ;;  %v1104_v13 = vld [vmem:[#allocation8 + $0x5b8] sm:$0xff] }
  0xe1   : > { %3284 = vmatmul.msk.f32.gmra.mxu2 %vm698_vm1, %v598_v12  ;;  %3282 = vmatmul.msk.f32.gmra.mxu1 %vm698_vm1, %v598_v12  ;;  %v1155_v12 = vld [vmem:[#allocation8 + $0x750] sm:$0xff] }
  0xe2   : > { %1249 = vmatpush.msrb.mxu0 %v1162_v14  ;;  %1226 = vmatpush.msra.mxu3 %v1098_v15  ;;  %v1156_v14 = vld [vmem:[#allocation8 + $0x758] sm:$0xff]  ;;  %v1099_v15 = vld [vmem:[#allocation8 + $0x590] sm:$0xff] }
  0xe3   : > { %1295 = vmatpush.msrb.mxu2 %v1163_v2  ;;  %1272 = vmatpush.msrb.mxu1 %v1099_v15 }
  0xe4   : > { %1250 = vmatpush.msrb.mxu0 %v1158_v18  ;;  %1227 = vmatpush.msra.mxu3 %v1094_v19  ;;  %v1152_v18 = vld [vmem:[#allocation8 + $0x738] sm:$0xff]  ;;  %v1095_v19 = vld [vmem:[#allocation8 + $0x570] sm:$0xff] }
  0xe5   : > { %1296 = vmatpush.msrb.mxu2 %v1159_v8  ;;  %1273 = vmatpush.msrb.mxu1 %v1095_v19  ;;  %v1041_v19 = vld [vmem:[#allocation8 + $0x3c8] sm:$0xff] }
  0xe6   : > { %1251 = vmatpush.msrb.mxu0 %v1154_v23  ;;  %1228 = vmatpush.msra.mxu3 %v1090_v24  ;;  %v1091_v23 = vld [vmem:[#allocation8 + $0x550] sm:$0xff] }
  0xe7   : > { %1297 = vmatpush.msrb.mxu2 %v1155_v12  ;;  %v1143_v24 = vld [vmem:[#allocation8 + $0x6f0] sm:$0xff]  ;;  %1274 = vmatpush.msrb.mxu1 %v1091_v23  ;;  %v1036_v23 = vld [vmem:[#allocation8 + $0x3a0] sm:$0xff] }
  0xe8   : > { %3285 = vmatmul.msk.f32.vlgmr.msrb.gmra.mxu3 %vm698_vm1, %v659_v22  ;;  %3287 = vmatmul.msk.f32.vlgmr.msra.gmra.mxu0 %vm698_vm1, %v659_v22  ;;  %v662_v41 = vpop.f32.mrf.mxu2  ;;  %v1148_v22 = vld [vmem:[#allocation8 + $0x718] sm:$0xff] }
  0xe9   : > { %1252 = vmatpush.msrb.mxu0 %v1150_v27  ;;  %1229 = vmatpush.msra.mxu3 %v1086_v28  ;;  %v1087_v27 = vld [vmem:[#allocation8 + $0x530] sm:$0xff] }
  0xea   : > { %1298 = vmatpush.msrb.mxu2 %v1151_v16  ;;  %v1139_v28 = vld [vmem:[#allocation8 + $0x6d0] sm:$0xff]  ;;  %1275 = vmatpush.msrb.mxu1 %v1087_v27 }
  0xeb   : > { %1253 = vmatpush.msrb.mxu0 %v1146_v31  ;;  %1230 = vmatpush.msra.mxu3 %v1082_v32  ;;  %v1083_v31 = vld [vmem:[#allocation8 + $0x510] sm:$0xff] }
  0xec   : > { %1299 = vmatpush.msrb.mxu2 %v1147_v20  ;;  %v1135_v32 = vld [vmem:[#allocation8 + $0x6b0] sm:$0xff]  ;;  %1276 = vmatpush.msrb.mxu1 %v1083_v31  ;;  %v1033_v31 = vld [vmem:[#allocation8 + $0x388] sm:$0xff] }
  0xed   : > { %1254 = vmatpush.msrb.mxu0 %v1142_v35  ;;  %1231 = vmatpush.msra.mxu3 %v1078_v36  ;;  %v1079_v35 = vld [vmem:[#allocation8 + $0x4f0] sm:$0xff] }
  0xee   : > { %1300 = vmatpush.msrb.mxu2 %v1143_v24  ;;  %v1131_v36 = vld [vmem:[#allocation8 + $0x690] sm:$0xff]  ;;  %1277 = vmatpush.msrb.mxu1 %v1079_v35  ;;  %v1037_v24 = vld [vmem:[#allocation8 + $0x3a8] sm:$0xff]  ;;  %v976_v35 = vld [vmem:[#allocation8 + $0x1c0] sm:$0xff] }
  0xef   : > { %1255 = vmatpush.msrb.mxu0 %v1138_v39  ;;  %1232 = vmatpush.msra.mxu3 %v1074_v40  ;;  %v1075_v39 = vld [vmem:[#allocation8 + $0x4d0] sm:$0xff] }
  0xf0   : > { %3286 = vmatmul.msk.f32.gmra.mxu3 %vm698_vm1, %v662_v41  ;;  %3288 = vmatmul.msk.f32.gmra.mxu0 %vm698_vm1, %v662_v41  ;;  %v1127_v40 = vld [vmem:[#allocation8 + $0x670] sm:$0xff]  ;;  %v1076_v41 = vld [vmem:[#allocation8 + $0x4d8] sm:$0xff] }
  0xf1   : > { %1256 = vmatpush.msrb.mxu0 %v1134_v42  ;;  %1233 = vmatpush.msra.mxu3 %v1070_v44  ;;  %v1128_v42 = vld [vmem:[#allocation8 + $0x678] sm:$0xff]  ;;  %v1123_v44 = vld [vmem:[#allocation8 + $0x650] sm:$0xff] }
  0xf2   : > { %1301 = vmatpush.msrb.mxu2 %v1139_v28  ;;  %1278 = vmatpush.msrb.mxu1 %v1075_v39  ;;  %v980_v28 = vld [vmem:[#allocation8 + $0x1e0] sm:$0xff]  ;;  %v1029_v39 = vld [vmem:[#allocation8 + $0x368] sm:$0xff] }
  0xf3   : > { %1257 = vmatpush.msrb.mxu0 %v1130_v46  ;;  %1234 = vmatpush.msra.mxu3 %v1066_v48  ;;  %v1124_v46 = vld [vmem:[#allocation8 + $0x658] sm:$0xff]  ;;  %v1119_v48 = vld [vmem:[#allocation8 + $0x630] sm:$0xff] }
  0xf4   : > { %1302 = vmatpush.msrb.mxu2 %v1135_v32  ;;  %1279 = vmatpush.msrb.mxu1 %v1071_v43  ;;  %v1024_v43 = vld [vmem:[#allocation8 + $0x340] sm:$0xff] }
  0xf5   : > { %1258 = vmatpush.msrb.mxu0 %v1126_v50  ;;  %1235 = vmatpush.msra.mxu3 %v1062_v52  ;;  %v1120_v50 = vld [vmem:[#allocation8 + $0x638] sm:$0xff]  ;;  %v1115_v52 = vld [vmem:[#allocation8 + $0x610] sm:$0xff] }
  0xf6   : > { %1303 = vmatpush.msrb.mxu2 %v1131_v36  ;;  %1280 = vmatpush.msrb.mxu1 %v1067_v47  ;;  %v1028_v36 = vld [vmem:[#allocation8 + $0x360] sm:$0xff] }
  0xf7   : > { %1259 = vmatpush.msrb.mxu0 %v1122_v54  ;;  %1236 = vmatpush.msra.mxu3 %v1058_v56  ;;  %v1116_v54 = vld [vmem:[#allocation8 + $0x618] sm:$0xff] }
  0xf8   : > { %1304 = vmatpush.msrb.mxu2 %v1127_v40  ;;  %1281 = vmatpush.msrb.mxu1 %v1063_v51  ;;  %v1060_v56 = vld [vmem:[#allocation8 + $0x458] sm:$0xff]  ;;  %v969_v51 = vld [vmem:[#allocation8 + $0x188] sm:$0xff] }
  0xf9   : > { %1260 = vmatpush.msrb.mxu0 %v1118_v58  ;;  %1237 = vmatpush.msra.mxu3 %v1054_v60  ;;  %v1056_v58 = vld [vmem:[#allocation8 + $0x438] sm:$0xff] }
  0xfa   : > { %1305 = vmatpush.msrb.mxu2 %v1123_v44  ;;  %1282 = vmatpush.msrb.mxu1 %v1059_v55  ;;  %v1052_v60 = vld [vmem:[#allocation8 + $0x418] sm:$0xff] }
  0xfb   : > { %1261 = vmatpush.msrb.mxu0 %v1114_v62  ;;  %1238 = vmatpush.msra.mxu3 %v1050_v1  ;;  %v876_v1 = vld [vmem:[#allocation7] sm:$0x3] }
  0xfc   : > { %1306 = vmatpush.msrb.mxu2 %v1119_v48  ;;  %1283 = vmatpush.msrb.mxu1 %v1055_v57  ;;  %v878_v12 = vperm.slane %v876_v1, 0  ;;  %v968_v48 = vld [vmem:[#allocation8 + $0x180] sm:$0xff]  ;;  %v965_v57 = vld [vmem:[#allocation8 + $0x168] sm:$0xff] }
  0xfd   : > { %1338 = vmatpush.msra.mxu0 %v1176_v0  ;;  %1315 = vmatpush.msrb.mxu3 %v1112_v3 }
  0xfe   : > { %1307 = vmatpush.msrb.mxu2 %v1115_v52  ;;  %1284 = vmatpush.msrb.mxu1 %v1051_v59  ;;  %v1021_v52 = vld [vmem:[#allocation8 + $0x328] sm:$0xff] }
  0xff   : > { %1339 = vmatpush.msra.mxu0 %v1172_v4  ;;  %1316 = vmatpush.msrb.mxu3 %v1108_v9  ;;  %v879_v4 = vperm.slane %v876_v1, 1  ;;  %v1008_v1 = vld [vmem:[#allocation8 + $0x2c0] sm:$0xff] }
 0x101   : > { %1340 = vmatpush.msra.mxu0 %v1168_v5  ;;  %1317 = vmatpush.msrb.mxu3 %v1104_v13  ;;  %v1044_v13 = vld [vmem:[#allocation8 + $0x3e0] sm:$0xff] }
 0x103   : > { %1341 = vmatpush.msra.mxu0 %v1164_v6  ;;  %1318 = vmatpush.msrb.mxu3 %v1100_v17 }
 0x105   : > { %1342 = vmatpush.msra.mxu0 %v1160_v10  ;;  %1319 = vmatpush.msrb.mxu3 %v1096_v21 }
 0x107   : > { %1343 = vmatpush.msra.mxu0 %v1156_v14  ;;  %1320 = vmatpush.msrb.mxu3 %v1092_v25  ;;  %v1045_v14 = vld [vmem:[#allocation8 + $0x3e8] sm:$0xff] }
 0x109   : > { %1344 = vmatpush.msra.mxu0 %v1152_v18  ;;  %1321 = vmatpush.msrb.mxu3 %v1088_v29  ;;  %v1040_v18 = vld [vmem:[#allocation8 + $0x3c0] sm:$0xff] }
 0x10a   : > { %v1032_v29 = vld [vmem:[#allocation8 + $0x380] sm:$0xff] }
 0x10b   : > { %1345 = vmatpush.msra.mxu0 %v1148_v22  ;;  %1322 = vmatpush.msrb.mxu3 %v1084_v33 }
 0x10d   : > { %1346 = vmatpush.msra.mxu0 %v1144_v26  ;;  %1323 = vmatpush.msrb.mxu3 %v1080_v37 }
 0x10f   : > { %1347 = vmatpush.msra.mxu0 %v1140_v30  ;;  %1324 = vmatpush.msrb.mxu3 %v1076_v41  ;;  %v981_v30 = vld [vmem:[#allocation8 + $0x1e8] sm:$0xff] }
 0x111   : > { %1348 = vmatpush.msra.mxu0 %v1136_v34  ;;  %1325 = vmatpush.msrb.mxu3 %v1072_v45  ;;  %v973_v45 = vld [vmem:[#allocation8 + $0x1a8] sm:$0xff] }
 0x113   : > { %1349 = vmatpush.msra.mxu0 %v1132_v38  ;;  %1326 = vmatpush.msrb.mxu3 %v1068_v49  ;;  %v977_v38 = vld [vmem:[#allocation8 + $0x1c8] sm:$0xff]  ;;  %v1020_v49 = vld [vmem:[#allocation8 + $0x320] sm:$0xff] }
 0x115   : > { %1350 = vmatpush.msra.mxu0 %v1128_v42  ;;  %1327 = vmatpush.msrb.mxu3 %v1064_v53  ;;  %v972_v42 = vld [vmem:[#allocation8 + $0x1a0] sm:$0xff] }
 0x116   : > { %v964_v53 = vld [vmem:[#allocation8 + $0x160] sm:$0xff] }
 0x117   : > { %1351 = vmatpush.msra.mxu0 %v1124_v46  ;;  %1328 = vmatpush.msrb.mxu3 %v1060_v56  ;;  %v1025_v46 = vld [vmem:[#allocation8 + $0x348] sm:$0xff] }
 0x119   : > { %1352 = vmatpush.msra.mxu0 %v1120_v50  ;;  %1329 = vmatpush.msrb.mxu3 %v1056_v58  ;;  %v1017_v58 = vld [vmem:[#allocation8 + $0x308] sm:$0xff] }
 0x11b   : > { %1353 = vmatpush.msra.mxu0 %v1116_v54  ;;  %1330 = vmatpush.msrb.mxu3 %v1052_v60  ;;  %v1016_v54 = vld [vmem:[#allocation8 + $0x300] sm:$0xff] }
 0x11c   : > { %v960_v60 = vld [vmem:[#allocation8 + $0x140] sm:$0xff] }
 0x155   : > { %v745_v61 = vpop.f32.mrf.mxu0 }
 0x156   : > { %v774_v5 = vpop.f32.mrf.mxu1 }
 0x15b   : > { %v722_v62 = vpop.f32.mrf.mxu3 }
 0x15c   : > { %v797_v0 = vpop.f32.mrf.mxu2  ;;  %v775_v10 = vadd.f32 %v774_v5, %v722_v62  ;;  %v961_v62 = vld [vmem:[#allocation8 + $0x148] sm:$0xff]  ;;  %v1004_v5 = vld [vmem:[#allocation8 + $0x2a0] sm:$0xff] }
 0x15d   : > { %v748_v63 = vpop.f32.mrf.mxu0  ;;  %v798_v3 = vadd.f32 %v797_v0, %v745_v61  ;;  %v1012_v61 = vld [vmem:[#allocation8 + $0x2e0] sm:$0xff] }
 0x15e   : > { %v777_v25 = vpop.f32.mrf.mxu1  ;;  %v956_v0 = vld [vmem:[#allocation8 + $0x120] sm:$0xff] }
 0x163   : > { %v725_v2 = vpop.f32.mrf.mxu3 }
 0x164   : > { %v800_v9 = vpop.f32.mrf.mxu2  ;;  %v778_v32 = vadd.f32 %v777_v25, %v725_v2  ;;  %v957_v2 = vld [vmem:[#allocation8 + $0x128] sm:$0xff]  ;;  %v932_v25 = vld [vmem:[#allocation8 + $0x60] sm:$0xff] }
 0x165   : > { %v866_v6 = vpop.f32.mrf.mxu0  ;;  %v801_v16 = vadd.f32 %v800_v9, %v748_v63  ;;  %v1013_v63 = vld [vmem:[#allocation8 + $0x2e8] sm:$0xff]  ;;  %v1000_v9 = vld [vmem:[#allocation8 + $0x280] sm:$0xff] }
 0x166   : > { %v873_v7 = vadd.f32 %v866_v6, %v798_v3  ;;  %v1009_v3 = vld [vmem:[#allocation8 + $0x2c8] sm:$0xff] }
 0x167   : > { %v953_v6 = vld [vmem:[#allocation8 + $0x108] sm:$0xff] }
 0x168   : > { %v883_v8 = vadd.f32 %v879_v4, %v873_v7  ;;  %v1005_v7 = vld [vmem:[#allocation8 + $0x2a8] sm:$0xff] }
 0x16a   : > { %v4205_v11 = vmax.f32 %v883_v8, 0.0  ;;  %v948_v8 = vld [vmem:[#allocation8 + $0xe0] sm:$0xff] }
 0x16b   : > { %v843_v15 = vpop.f32.mrf.mxu3 }
 0x16c   : > { %v872_v17 = vadd.f32 %v843_v15, %v775_v10  ;;  %1216 = vmatmul.f32.vlgmr.msra.gmra.mxu2 %v4205_v11  ;;  %1262 = vmatmul.f32.vlgmr.msrb.gmra.mxu0 %v4205_v11  ;;  %v911_v40 = vrot.slane %v4205_v11, 1  ;;  %v949_v10 = vld [vmem:[#allocation8 + $0xe8] sm:$0xff] }
 0x16d   : > { %1384 = vmatpush.msra.mxu2 %v1044_v13  ;;  %1430 = vmatpush.msrb.mxu0 %v1045_v14  ;;  %v869_v20 = vpop.f32.mrf.mxu0  ;;  %v944_v13 = vld [vmem:[#allocation8 + $0xc0] sm:$0xff]  ;;  %v945_v15 = vld [vmem:[#allocation8 + $0xc8] sm:$0xff] }
 0x16e   : > { %v882_v21 = vadd.f32 %v878_v12, %v872_v17  ;;  %v875_v22 = vadd.f32 %v869_v20, %v801_v16  ;;  %v996_v14 = vld [vmem:[#allocation8 + $0x260] sm:$0xff]  ;;  %v997_v16 = vld [vmem:[#allocation8 + $0x268] sm:$0xff] }
 0x16f   : > { %1385 = vmatpush.msra.mxu2 %v1040_v18  ;;  %1431 = vmatpush.msrb.mxu0 %v1041_v19  ;;  %v940_v17 = vld [vmem:[#allocation8 + $0xa0] sm:$0xff]  ;;  %v941_v19 = vld [vmem:[#allocation8 + $0xa8] sm:$0xff] }
 0x170   : > { %v4209_v26 = vmax.f32 %v882_v21, 0.0  ;;  %v885_v27 = vadd.f32 %v879_v4, %v875_v22  ;;  %v952_v4 = vld [vmem:[#allocation8 + $0x100] sm:$0xff]  ;;  %v993_v20 = vld [vmem:[#allocation8 + $0x248] sm:$0xff] }
 0x171   : > { %1386 = vmatpush.msra.mxu2 %v1036_v23  ;;  %1432 = vmatpush.msrb.mxu0 %v1037_v24  ;;  %v992_v18 = vld [vmem:[#allocation8 + $0x240] sm:$0xff]  ;;  %v937_v23 = vld [vmem:[#allocation8 + $0x88] sm:$0xff] }
 0x172   : > { %v4211_v33 = vmax.f32 %v885_v27, 0.0  ;;  %1193 = vmatmul.f32.vlgmr.msra.gmra.mxu1 %v4209_v26  ;;  %1239 = vmatmul.f32.vlgmr.msra.gmra.mxu3 %v4209_v26  ;;  %v908_v55 = vrot.slane %v4209_v26, 1  ;;  %v936_v21 = vld [vmem:[#allocation8 + $0x80] sm:$0xff]  ;;  %v989_v24 = vld [vmem:[#allocation8 + $0x228] sm:$0xff] }
 0x173   : > { %1361 = vmatpush.msra.mxu1 %v980_v28  ;;  %1387 = vmatpush.msra.mxu2 %v1032_v29  ;;  %v846_v34 = vpop.f32.mrf.mxu3  ;;  %v988_v22 = vld [vmem:[#allocation8 + $0x220] sm:$0xff]  ;;  %v933_v28 = vld [vmem:[#allocation8 + $0x68] sm:$0xff] }
 0x174   : > { %1407 = vmatpush.msra.mxu3 %v981_v30  ;;  %1433 = vmatpush.msrb.mxu0 %v1033_v31  ;;  %v874_v37 = vadd.f32 %v846_v34, %v778_v32  ;;  %v4217_v41 = vrot.slane %v4211_v33, 1  ;;  %v984_v27 = vld [vmem:[#allocation8 + $0x200] sm:$0xff]  ;;  %v985_v29 = vld [vmem:[#allocation8 + $0x208] sm:$0xff]  ;;  %v1046_v30 = vld [vmem:[#allocation8 + $0x3f0] sm:$0xff] }
 0x175   : > { %1219 = vmatmul.f32.gmra.mxu2 %v4211_v33  ;;  %1265 = vmatmul.f32.gmra.mxu0 %v4211_v33  ;;  %v1047_v31 = vld [vmem:[#allocation8 + $0x3f8] sm:$0xff]  ;;  %v928_v32 = vld [vmem:[#allocation8 + $0x40] sm:$0xff] }
 0x176   : > { %v884_v44 = vadd.f32 %v878_v12, %v874_v37  ;;  %1362 = vmatpush.msra.mxu1 %v976_v35  ;;  %1388 = vmatpush.msra.mxu2 %v1028_v36  ;;  %v4223_v47 = vsel %vm907_vm2, %v911_v40, %v4217_v41  ;;  %v1001_v12 = vld [vmem:[#allocation8 + $0x288] sm:$0xff]  ;;  %v4251_v35 = vrot.slane %v4205_v11, 7  ;;  %v1042_v37 = vld [vmem:[#allocation8 + $0x3d0] sm:$0xff]  ;;  %v1594_v34 = vld [vmem:[#allocation8 + $0x980] sm:$0xff] }
 0x177   : > { %1408 = vmatpush.msra.mxu3 %v977_v38  ;;  %1434 = vmatpush.msrb.mxu0 %v1029_v39  ;;  %v929_v36 = vld [vmem:[#allocation8 + $0x48] sm:$0xff]  ;;  %v1043_v38 = vld [vmem:[#allocation8 + $0x3d8] sm:$0xff]  ;;  %v924_v39 = vld [vmem:[#allocation8 + $0x20] sm:$0xff] }
 0x178   : > { %v4225_v50 = vmax.f32 %v884_v44, 0.0  ;;  %1363 = vmatpush.msra.mxu1 %v972_v42  ;;  %1389 = vmatpush.msra.mxu2 %v1024_v43  ;;  %v925_v40 = vld [vmem:[#allocation8 + $0x28] sm:$0xff]  ;;  %v1038_v42 = vld [vmem:[#allocation8 + $0x3b0] sm:$0xff]  ;;  %v920_v43 = vld [vmem:[#allocation8] sm:$0xff] }
 0x179   : > { %1409 = vmatpush.msra.mxu3 %v973_v45  ;;  %1435 = vmatpush.msrb.mxu0 %v1025_v46  ;;  %v921_v44 = vld [vmem:[#allocation8 + $0x8] sm:$0xff]  ;;  %v982_v45 = vld [vmem:[#allocation8 + $0x1f0] sm:$0xff] }
 0x17a   : > { %1364 = vmatpush.msra.mxu1 %v968_v48  ;;  %1390 = vmatpush.msra.mxu2 %v1020_v49  ;;  %v4229_v56 = vrot.slane %v4225_v50, 1  ;;  %v1034_v46 = vld [vmem:[#allocation8 + $0x390] sm:$0xff]  ;;  %v983_v48 = vld [vmem:[#allocation8 + $0x1f8] sm:$0xff] }
 0x17b   : > { %1410 = vmatpush.msra.mxu3 %v969_v51  ;;  %1436 = vmatpush.msrb.mxu0 %v1021_v52  ;;  %v1035_v49 = vld [vmem:[#allocation8 + $0x398] sm:$0xff]  ;;  %v4260_v51 = vrot.slane %v4209_v26, 7  ;;  %v978_v52 = vld [vmem:[#allocation8 + $0x1d0] sm:$0xff] }
 0x17c   : > { %1196 = vmatmul.f32.gmra.mxu1 %v4225_v50  ;;  %1242 = vmatmul.f32.gmra.mxu3 %v4225_v50  ;;  %v4235_v59 = vsel %vm907_vm2, %v908_v55, %v4229_v56  ;;  %v979_v55 = vld [vmem:[#allocation8 + $0x1d8] sm:$0xff] }
 0x17d   : > { %1365 = vmatpush.msra.mxu1 %v964_v53  ;;  %1391 = vmatpush.msra.mxu2 %v1016_v54  ;;  %v1030_v53 = vld [vmem:[#allocation8 + $0x370] sm:$0xff]  ;;  %v899_v54 = vrot.slane %v4211_v33, 7 }
 0x17e   : > { %1411 = vmatpush.msra.mxu3 %v965_v57  ;;  %1437 = vmatpush.msrb.mxu0 %v1017_v58  ;;  %v1031_v57 = vld [vmem:[#allocation8 + $0x378] sm:$0xff]  ;;  %v1026_v58 = vld [vmem:[#allocation8 + $0x350] sm:$0xff] }
 0x17f   : > { %1308 = vmatmul.f32.vlgmr.msrb.gmra.mxu2 %v4205_v11  ;;  %1354 = vmatmul.f32.vlgmr.msra.gmra.mxu0 %v4205_v11  ;;  %v1039_v11 = vld [vmem:[#allocation8 + $0x3b8] sm:$0xff] }
 0x180   : > { %1366 = vmatpush.msra.mxu1 %v960_v60  ;;  %1392 = vmatpush.msra.mxu2 %v1012_v61  ;;  %v975_v60 = vld [vmem:[#allocation8 + $0x1b8] sm:$0xff] }
 0x181   : > { %1412 = vmatpush.msra.mxu3 %v961_v62  ;;  %1438 = vmatpush.msrb.mxu0 %v1013_v63  ;;  %v1027_v61 = vld [vmem:[#allocation8 + $0x358] sm:$0xff]  ;;  %v970_v62 = vld [vmem:[#allocation8 + $0x190] sm:$0xff] }
 0x182   : > { %1367 = vmatpush.msra.mxu1 %v956_v0  ;;  %1393 = vmatpush.msra.mxu2 %v1008_v1  ;;  %v1022_v63 = vld [vmem:[#allocation8 + $0x330] sm:$0xff]  ;;  %v971_v0 = vld [vmem:[#allocation8 + $0x198] sm:$0xff] }
 0x183   : > { %1413 = vmatpush.msra.mxu3 %v957_v2  ;;  %1439 = vmatpush.msrb.mxu0 %v1009_v3  ;;  %v1023_v1 = vld [vmem:[#allocation8 + $0x338] sm:$0xff]  ;;  %v966_v2 = vld [vmem:[#allocation8 + $0x170] sm:$0xff] }
 0x184   : > { %1368 = vmatpush.msra.mxu1 %v952_v4  ;;  %1394 = vmatpush.msra.mxu2 %v1004_v5  ;;  %v1018_v3 = vld [vmem:[#allocation8 + $0x310] sm:$0xff]  ;;  %v897_v4 = vrot.slane %v4225_v50, 7  ;;  %v967_v5 = vld [vmem:[#allocation8 + $0x178] sm:$0xff] }
 0x185   : > { %1414 = vmatpush.msra.mxu3 %v953_v6  ;;  %1440 = vmatpush.msrb.mxu0 %v1005_v7  ;;  %v1019_v6 = vld [vmem:[#allocation8 + $0x318] sm:$0xff]  ;;  %v962_v7 = vld [vmem:[#allocation8 + $0x150] sm:$0xff] }
 0x186   : > { %1285 = vmatmul.f32.vlgmr.msrb.gmra.mxu1 %v4209_v26  ;;  %1331 = vmatmul.f32.vlgmr.msrb.gmra.mxu3 %v4209_v26  ;;  %v974_v26 = vld [vmem:[#allocation8 + $0x1b0] sm:$0xff] }
 0x187   : > { %1369 = vmatpush.msra.mxu1 %v948_v8  ;;  %1395 = vmatpush.msra.mxu2 %v1000_v9  ;;  %v1014_v8 = vld [vmem:[#allocation8 + $0x2f0] sm:$0xff]  ;;  %v4278_v9 = vsel %vm894_vm3, %v4260_v51, %v897_v4  ;;  %v1650_v4 = vld [vmem:[#allocation8 + $0xb40] sm:$0xff] }
 0x188   : > { %1415 = vmatpush.msra.mxu3 %v949_v10  ;;  %1441 = vmatpush.msrb.mxu0 %v1001_v12  ;;  %v963_v10 = vld [vmem:[#allocation8 + $0x158] sm:$0xff] }
 0x189   : > { %1311 = vmatmul.f32.gmra.mxu2 %v4211_v33  ;;  %1357 = vmatmul.f32.gmra.mxu0 %v4211_v33  ;;  %v4271_v33 = vsel %vm894_vm3, %v4251_v35, %v899_v54  ;;  %v1015_v12 = vld [vmem:[#allocation8 + $0x2f8] sm:$0xff] }
 0x18a   : > { %1370 = vmatpush.msra.mxu1 %v944_v13  ;;  %1396 = vmatpush.msra.mxu2 %v996_v14  ;;  %v1010_v13 = vld [vmem:[#allocation8 + $0x2d0] sm:$0xff]  ;;  %v959_v14 = vld [vmem:[#allocation8 + $0x138] sm:$0xff] }
 0x18b   : > { %1416 = vmatpush.msra.mxu3 %v945_v15  ;;  %1442 = vmatpush.msrb.mxu0 %v997_v16  ;;  %v1011_v15 = vld [vmem:[#allocation8 + $0x2d8] sm:$0xff]  ;;  %v954_v16 = vld [vmem:[#allocation8 + $0x110] sm:$0xff] }
 0x18c   : > { %1371 = vmatpush.msra.mxu1 %v940_v17  ;;  %1397 = vmatpush.msra.mxu2 %v992_v18  ;;  %v1006_v17 = vld [vmem:[#allocation8 + $0x2b0] sm:$0xff]  ;;  %v955_v18 = vld [vmem:[#allocation8 + $0x118] sm:$0xff] }
 0x18d   : > { %1417 = vmatpush.msra.mxu3 %v941_v19  ;;  %1443 = vmatpush.msrb.mxu0 %v993_v20  ;;  %v1007_v19 = vld [vmem:[#allocation8 + $0x2b8] sm:$0xff]  ;;  %v950_v20 = vld [vmem:[#allocation8 + $0xf0] sm:$0xff] }
 0x18e   : > { %1372 = vmatpush.msra.mxu1 %v936_v21  ;;  %1398 = vmatpush.msra.mxu2 %v988_v22  ;;  %v1002_v21 = vld [vmem:[#allocation8 + $0x290] sm:$0xff]  ;;  %v951_v22 = vld [vmem:[#allocation8 + $0xf8] sm:$0xff] }
 0x18f   : > { %1418 = vmatpush.msra.mxu3 %v937_v23  ;;  %1444 = vmatpush.msrb.mxu0 %v989_v24  ;;  %v1003_v23 = vld [vmem:[#allocation8 + $0x298] sm:$0xff]  ;;  %v946_v24 = vld [vmem:[#allocation8 + $0xd0] sm:$0xff] }
 0x190   : > { %1288 = vmatmul.f32.gmra.mxu1 %v4225_v50  ;;  %1334 = vmatmul.f32.gmra.mxu3 %v4225_v50  ;;  %v958_v50 = vld [vmem:[#allocation8 + $0x130] sm:$0xff]  ;;  %v927_v54 = vld [vmem:[#allocation8 + $0x38] sm:$0xff] }
 0x191   : > { %1373 = vmatpush.msra.mxu1 %v932_v25  ;;  %1399 = vmatpush.msra.mxu2 %v984_v27  ;;  %v998_v25 = vld [vmem:[#allocation8 + $0x270] sm:$0xff]  ;;  %v947_v27 = vld [vmem:[#allocation8 + $0xd8] sm:$0xff] }
 0x192   : > { %1419 = vmatpush.msra.mxu3 %v933_v28  ;;  %1445 = vmatpush.msrb.mxu0 %v985_v29  ;;  %v999_v28 = vld [vmem:[#allocation8 + $0x278] sm:$0xff]  ;;  %v942_v29 = vld [vmem:[#allocation8 + $0xb0] sm:$0xff] }
 0x193   : > { %1476 = vmatpush.msrb.mxu2 %v1046_v30  ;;  %1374 = vmatpush.msra.mxu1 %v928_v32  ;;  %v994_v30 = vld [vmem:[#allocation8 + $0x250] sm:$0xff]  ;;  %v995_v32 = vld [vmem:[#allocation8 + $0x258] sm:$0xff] }
 0x194   : > { %1522 = vmatpush.msra.mxu0 %v1047_v31  ;;  %3292 = vmatmul.msk.f32.vlgmr.msra.gmra.mxu2 %vm4246_vm4, %v4251_v35  ;;  %v943_v31 = vld [vmem:[#allocation8 + $0xb8] sm:$0xff] }
 0x195   : > { %1420 = vmatpush.msra.mxu3 %v929_v36  ;;  %3296 = vmatmul.msk.f32.vlgmr.msrb.gmra.mxu0 %vm4246_vm4, %v4251_v35  ;;  %v938_v36 = vld [vmem:[#allocation8 + $0x90] sm:$0xff] }
 0x196   : > { %1477 = vmatpush.msrb.mxu2 %v1042_v37  ;;  %1523 = vmatpush.msra.mxu0 %v1043_v38  ;;  %v990_v37 = vld [vmem:[#allocation8 + $0x230] sm:$0xff]  ;;  %v939_v38 = vld [vmem:[#allocation8 + $0x98] sm:$0xff] }
 0x197   : > { %1375 = vmatpush.msra.mxu1 %v924_v39  ;;  %1421 = vmatpush.msra.mxu3 %v925_v40  ;;  %v991_v39 = vld [vmem:[#allocation8 + $0x238] sm:$0xff]  ;;  %v934_v40 = vld [vmem:[#allocation8 + $0x70] sm:$0xff] }
 0x198   : > { %1478 = vmatpush.msrb.mxu2 %v1038_v42  ;;  %1524 = vmatpush.msra.mxu0 %v1039_v11  ;;  %v986_v42 = vld [vmem:[#allocation8 + $0x210] sm:$0xff]  ;;  %v935_v11 = vld [vmem:[#allocation8 + $0x78] sm:$0xff] }
 0x199   : > { %1376 = vmatpush.msra.mxu1 %v920_v43  ;;  %1422 = vmatpush.msra.mxu3 %v921_v44  ;;  %v987_v43 = vld [vmem:[#allocation8 + $0x218] sm:$0xff]  ;;  %v1670_v44 = vld [vmem:[#allocation8 + $0xbe0] sm:$0xff] }
 0x19a   : > { %1479 = vmatpush.msrb.mxu2 %v1034_v46  ;;  %1525 = vmatpush.msra.mxu0 %v1035_v49  ;;  %v930_v46 = vld [vmem:[#allocation8 + $0x50] sm:$0xff]  ;;  %v1666_v49 = vld [vmem:[#allocation8 + $0xbc0] sm:$0xff] }
 0x19b   : > { %1453 = vmatpush.msrb.mxu1 %v982_v45  ;;  %1499 = vmatpush.msrb.mxu3 %v983_v48  ;;  %v1671_v45 = vld [vmem:[#allocation8 + $0xbe8] sm:$0xff]  ;;  %v931_v48 = vld [vmem:[#allocation8 + $0x58] sm:$0xff] }
 0x19c   : > { %3290 = vmatmul.msk.f32.vlgmr.msra.gmra.mxu1 %vm4246_vm4, %v4260_v51  ;;  %3294 = vmatmul.msk.f32.vlgmr.msra.gmra.mxu3 %vm4246_vm4, %v4260_v51 }
 0x19d   : > { %1454 = vmatpush.msrb.mxu1 %v978_v52  ;;  %1480 = vmatpush.msrb.mxu2 %v1030_v53  ;;  %v1667_v52 = vld [vmem:[#allocation8 + $0xbc8] sm:$0xff]  ;;  %v926_v53 = vld [vmem:[#allocation8 + $0x30] sm:$0xff] }
 0x19e   : > { %1500 = vmatpush.msrb.mxu3 %v979_v55  ;;  %1526 = vmatpush.msra.mxu0 %v1031_v57  ;;  %v1662_v55 = vld [vmem:[#allocation8 + $0xba0] sm:$0xff]  ;;  %v1663_v57 = vld [vmem:[#allocation8 + $0xba8] sm:$0xff] }
 0x19f   : > { %1403 = vmatmul.f32.gmra.mxu2 %v4271_v33  ;;  %1449 = vmatmul.f32.gmra.mxu0 %v4271_v33 }
 0x1a0   : > { %1455 = vmatpush.msrb.mxu1 %v974_v26  ;;  %1481 = vmatpush.msrb.mxu2 %v1026_v58  ;;  %v922_v26 = vld [vmem:[#allocation8 + $0x10] sm:$0xff]  ;;  %v923_v58 = vld [vmem:[#allocation8 + $0x18] sm:$0xff] }
 0x1a1   : > { %1501 = vmatpush.msrb.mxu3 %v975_v60  ;;  %1527 = vmatpush.msra.mxu0 %v1027_v61  ;;  %v1606_v60 = vld [vmem:[#allocation8 + $0x9e0] sm:$0xff]  ;;  %v1607_v61 = vld [vmem:[#allocation8 + $0x9e8] sm:$0xff] }
 0x1a2   : > { %1456 = vmatpush.msrb.mxu1 %v970_v62  ;;  %1482 = vmatpush.msrb.mxu2 %v1022_v63  ;;  %v1659_v62 = vld [vmem:[#allocation8 + $0xb88] sm:$0xff]  ;;  %v1602_v63 = vld [vmem:[#allocation8 + $0x9c0] sm:$0xff] }
 0x1a3   : > { %1502 = vmatpush.msrb.mxu3 %v971_v0  ;;  %1528 = vmatpush.msra.mxu0 %v1023_v1  ;;  %v1654_v0 = vld [vmem:[#allocation8 + $0xb60] sm:$0xff]  ;;  %v1603_v1 = vld [vmem:[#allocation8 + $0x9c8] sm:$0xff] }
 0x1a4   : > { %1457 = vmatpush.msrb.mxu1 %v966_v2  ;;  %1483 = vmatpush.msrb.mxu2 %v1018_v3  ;;  %v1655_v2 = vld [vmem:[#allocation8 + $0xb68] sm:$0xff]  ;;  %v1598_v3 = vld [vmem:[#allocation8 + $0x9a0] sm:$0xff] }
 0x1a5   : > { %1503 = vmatpush.msrb.mxu3 %v967_v5  ;;  %1529 = vmatpush.msra.mxu0 %v1019_v6  ;;  %v1599_v5 = vld [vmem:[#allocation8 + $0x9a8] sm:$0xff] }
 0x1a6   : > { %1380 = vmatmul.f32.gmra.mxu1 %v4278_v9  ;;  %1426 = vmatmul.f32.gmra.mxu3 %v4278_v9  ;;  %v1651_v6 = vld [vmem:[#allocation8 + $0xb48] sm:$0xff] }
 0x1a7   : > { %1458 = vmatpush.msrb.mxu1 %v962_v7  ;;  %1484 = vmatpush.msrb.mxu2 %v1014_v8  ;;  %v1595_v7 = vld [vmem:[#allocation8 + $0x988] sm:$0xff] }
 0x1a8   : > { %1504 = vmatpush.msrb.mxu3 %v963_v10  ;;  %1530 = vmatpush.msra.mxu0 %v1015_v12  ;;  %v1647_v8 = vld [vmem:[#allocation8 + $0xb28] sm:$0xff]  ;;  %v1590_v10 = vld [vmem:[#allocation8 + $0x960] sm:$0xff] }
 0x1a9   : > { %1459 = vmatpush.msrb.mxu1 %v958_v50  ;;  %1485 = vmatpush.msrb.mxu2 %v1010_v13  ;;  %v1591_v12 = vld [vmem:[#allocation8 + $0x968] sm:$0xff]  ;;  %v1586_v13 = vld [vmem:[#allocation8 + $0x940] sm:$0xff] }
 0x1aa   : > { %1505 = vmatpush.msrb.mxu3 %v959_v14  ;;  %1531 = vmatpush.msra.mxu0 %v1011_v15  ;;  %v1643_v50 = vld [vmem:[#allocation8 + $0xb08] sm:$0xff]  ;;  %v1638_v14 = vld [vmem:[#allocation8 + $0xae0] sm:$0xff] }
 0x1ab   : > { %1460 = vmatpush.msrb.mxu1 %v954_v16  ;;  %1486 = vmatpush.msrb.mxu2 %v1006_v17  ;;  %v1587_v15 = vld [vmem:[#allocation8 + $0x948] sm:$0xff]  ;;  %v1582_v17 = vld [vmem:[#allocation8 + $0x920] sm:$0xff] }
 0x1ac   : > { %1506 = vmatpush.msrb.mxu3 %v955_v18  ;;  %1532 = vmatpush.msra.mxu0 %v1007_v19  ;;  %v1639_v16 = vld [vmem:[#allocation8 + $0xae8] sm:$0xff]  ;;  %v1634_v18 = vld [vmem:[#allocation8 + $0xac0] sm:$0xff] }
 0x1ad   : > { %1461 = vmatpush.msrb.mxu1 %v950_v20  ;;  %1487 = vmatpush.msrb.mxu2 %v1002_v21  ;;  %v1583_v19 = vld [vmem:[#allocation8 + $0x928] sm:$0xff]  ;;  %v1578_v21 = vld [vmem:[#allocation8 + $0x900] sm:$0xff] }
 0x1ae   : > { %1507 = vmatpush.msrb.mxu3 %v951_v22  ;;  %1533 = vmatpush.msra.mxu0 %v1003_v23  ;;  %v1635_v20 = vld [vmem:[#allocation8 + $0xac8] sm:$0xff]  ;;  %v1630_v22 = vld [vmem:[#allocation8 + $0xaa0] sm:$0xff] }
 0x1af   : > { %1462 = vmatpush.msrb.mxu1 %v946_v24  ;;  %1488 = vmatpush.msrb.mxu2 %v998_v25  ;;  %v1631_v23 = vld [vmem:[#allocation8 + $0xaa8] sm:$0xff]  ;;  %v1574_v24 = vld [vmem:[#allocation8 + $0x8e0] sm:$0xff] }
 0x1b0   : > { %1508 = vmatpush.msrb.mxu3 %v947_v27  ;;  %1534 = vmatpush.msra.mxu0 %v999_v28  ;;  %v1626_v25 = vld [vmem:[#allocation8 + $0xa80] sm:$0xff]  ;;  %v1575_v27 = vld [vmem:[#allocation8 + $0x8e8] sm:$0xff] }
 0x1b1   : > { %1463 = vmatpush.msrb.mxu1 %v942_v29  ;;  %1489 = vmatpush.msrb.mxu2 %v994_v30  ;;  %v1627_v28 = vld [vmem:[#allocation8 + $0xa88] sm:$0xff]  ;;  %v1570_v29 = vld [vmem:[#allocation8 + $0x8c0] sm:$0xff] }
 0x1b2   : > { %1509 = vmatpush.msrb.mxu3 %v943_v31  ;;  %1535 = vmatpush.msra.mxu0 %v995_v32  ;;  %v1622_v30 = vld [vmem:[#allocation8 + $0xa60] sm:$0xff]  ;;  %v1571_v31 = vld [vmem:[#allocation8 + $0x8c8] sm:$0xff] }
 0x1b3   : > { %1464 = vmatpush.msrb.mxu1 %v938_v36  ;;  %1490 = vmatpush.msrb.mxu2 %v990_v37  ;;  %v1623_v32 = vld [vmem:[#allocation8 + $0xa68] sm:$0xff]  ;;  %v1566_v36 = vld [vmem:[#allocation8 + $0x8a0] sm:$0xff] }
 0x1b4   : > { %1510 = vmatpush.msrb.mxu3 %v939_v38  ;;  %1536 = vmatpush.msra.mxu0 %v991_v39  ;;  %v1618_v37 = vld [vmem:[#allocation8 + $0xa40] sm:$0xff]  ;;  %v1567_v38 = vld [vmem:[#allocation8 + $0x8a8] sm:$0xff] }
 0x1b5   : > { %1465 = vmatpush.msrb.mxu1 %v934_v40  ;;  %1491 = vmatpush.msrb.mxu2 %v986_v42  ;;  %v1619_v39 = vld [vmem:[#allocation8 + $0xa48] sm:$0xff]  ;;  %v1562_v40 = vld [vmem:[#allocation8 + $0x880] sm:$0xff] }
 0x1b6   : > { %1511 = vmatpush.msrb.mxu3 %v935_v11  ;;  %1537 = vmatpush.msra.mxu0 %v987_v43  ;;  %v1614_v42 = vld [vmem:[#allocation8 + $0xa20] sm:$0xff]  ;;  %v1563_v11 = vld [vmem:[#allocation8 + $0x888] sm:$0xff] }
 0x1b7   : > { %3300 = vmatmul.msk.f32.vlgmr.msrb.gmra.mxu2 %vm4246_vm4, %v4251_v35  ;;  %3304 = vmatmul.msk.f32.vlgmr.msra.gmra.mxu0 %vm4246_vm4, %v4251_v35  ;;  %v1658_v35 = vld [vmem:[#allocation8 + $0xb80] sm:$0xff]  ;;  %v1615_v43 = vld [vmem:[#allocation8 + $0xa28] sm:$0xff] }
 0x1b8   : > { %1697 = vmatpush.msra.mxu2 %v1670_v44  ;;  %1743 = vmatpush.msrb.mxu0 %v1671_v45  ;;  %v1558_v44 = vld [vmem:[#allocation8 + $0x860] sm:$0xff] }
 0x1b9   : > { %1466 = vmatpush.msrb.mxu1 %v930_v46  ;;  %1512 = vmatpush.msrb.mxu3 %v931_v48  ;;  %v1610_v45 = vld [vmem:[#allocation8 + $0xa00] sm:$0xff]  ;;  %v1559_v46 = vld [vmem:[#allocation8 + $0x868] sm:$0xff] }
 0x1ba   : > { %1698 = vmatpush.msra.mxu2 %v1666_v49  ;;  %1744 = vmatpush.msrb.mxu0 %v1667_v52  ;;  %v1611_v48 = vld [vmem:[#allocation8 + $0xa08] sm:$0xff]  ;;  %v1672_v49 = vld [vmem:[#allocation8 + $0xbf0] sm:$0xff]  ;;  %v1673_v52 = vld [vmem:[#allocation8 + $0xbf8] sm:$0xff] }
 0x1bb   : > { %1467 = vmatpush.msrb.mxu1 %v926_v53  ;;  %1513 = vmatpush.msrb.mxu3 %v927_v54  ;;  %v1554_v53 = vld [vmem:[#allocation8 + $0x840] sm:$0xff]  ;;  %v1555_v54 = vld [vmem:[#allocation8 + $0x848] sm:$0xff] }
 0x1bc   : > { %1699 = vmatpush.msra.mxu2 %v1662_v55  ;;  %1745 = vmatpush.msrb.mxu0 %v1663_v57  ;;  %v1668_v55 = vld [vmem:[#allocation8 + $0xbd0] sm:$0xff]  ;;  %v1669_v57 = vld [vmem:[#allocation8 + $0xbd8] sm:$0xff] }
 0x1bd   : > { %1468 = vmatpush.msrb.mxu1 %v922_v26  ;;  %1514 = vmatpush.msrb.mxu3 %v923_v58  ;;  %v1550_v26 = vld [vmem:[#allocation8 + $0x820] sm:$0xff]  ;;  %v1551_v58 = vld [vmem:[#allocation8 + $0x828] sm:$0xff] }
 0x1be   : > { %3298 = vmatmul.msk.f32.vlgmr.msrb.gmra.mxu1 %vm4246_vm4, %v4260_v51  ;;  %3302 = vmatmul.msk.f32.vlgmr.msrb.gmra.mxu3 %vm4246_vm4, %v4260_v51  ;;  %v1646_v51 = vld [vmem:[#allocation8 + $0xb20] sm:$0xff] }
 0x1bf   : > { %1674 = vmatpush.msra.mxu1 %v1606_v60  ;;  %1700 = vmatpush.msra.mxu2 %v1658_v35  ;;  %v1664_v60 = vld [vmem:[#allocation8 + $0xbb0] sm:$0xff]  ;;  %v1665_v35 = vld [vmem:[#allocation8 + $0xbb8] sm:$0xff] }
 0x1c0   : > { %1720 = vmatpush.msra.mxu3 %v1607_v61  ;;  %1746 = vmatpush.msrb.mxu0 %v1659_v62  ;;  %v1546_v61 = vld [vmem:[#allocation8 + $0x800] sm:$0xff]  ;;  %v1547_v62 = vld [vmem:[#allocation8 + $0x808] sm:$0xff] }
 0x1c1   : > { %1495 = vmatmul.f32.gmra.mxu2 %v4271_v33  ;;  %1541 = vmatmul.f32.gmra.mxu0 %v4271_v33  ;;  %v1642_v33 = vld [vmem:[#allocation8 + $0xb00] sm:$0xff] }
 0x1c2   : > { %1675 = vmatpush.msra.mxu1 %v1602_v63  ;;  %1701 = vmatpush.msra.mxu2 %v1654_v0  ;;  %v1608_v63 = vld [vmem:[#allocation8 + $0x9f0] sm:$0xff] }
 0x1c3   : > { %1721 = vmatpush.msra.mxu3 %v1603_v1  ;;  %1747 = vmatpush.msrb.mxu0 %v1655_v2  ;;  %v1660_v0 = vld [vmem:[#allocation8 + $0xb90] sm:$0xff]  ;;  %v1609_v1 = vld [vmem:[#allocation8 + $0x9f8] sm:$0xff] }
 0x1c4   : > { %1676 = vmatpush.msra.mxu1 %v1598_v3  ;;  %1702 = vmatpush.msra.mxu2 %v1650_v4  ;;  %v1661_v2 = vld [vmem:[#allocation8 + $0xb98] sm:$0xff]  ;;  %v1604_v3 = vld [vmem:[#allocation8 + $0x9d0] sm:$0xff] }
 0x1c5   : > { %1722 = vmatpush.msra.mxu3 %v1599_v5  ;;  %1748 = vmatpush.msrb.mxu0 %v1651_v6  ;;  %v1656_v4 = vld [vmem:[#allocation8 + $0xb70] sm:$0xff]  ;;  %v1605_v5 = vld [vmem:[#allocation8 + $0x9d8] sm:$0xff] }
 0x1c6   : > { %1677 = vmatpush.msra.mxu1 %v1594_v34  ;;  %1703 = vmatpush.msra.mxu2 %v1646_v51  ;;  %v1657_v6 = vld [vmem:[#allocation8 + $0xb78] sm:$0xff]  ;;  %v1600_v34 = vld [vmem:[#allocation8 + $0x9b0] sm:$0xff] }
 0x1c7   : > { %1723 = vmatpush.msra.mxu3 %v1595_v7  ;;  %1749 = vmatpush.msrb.mxu0 %v1647_v8  ;;  %v1652_v51 = vld [vmem:[#allocation8 + $0xb50] sm:$0xff]  ;;  %v1601_v7 = vld [vmem:[#allocation8 + $0x9b8] sm:$0xff] }
 0x1c8   : > { %1472 = vmatmul.f32.gmra.mxu1 %v4278_v9  ;;  %1518 = vmatmul.f32.gmra.mxu3 %v4278_v9  ;;  %v1579_v9 = vld [vmem:[#allocation8 + $0x908] sm:$0xff]  ;;  %v1653_v8 = vld [vmem:[#allocation8 + $0xb58] sm:$0xff] }
 0x1c9   : > { %1678 = vmatpush.msra.mxu1 %v1590_v10  ;;  %1704 = vmatpush.msra.mxu2 %v1642_v33  ;;  %v1596_v10 = vld [vmem:[#allocation8 + $0x990] sm:$0xff] }
 0x1ca   : > { %1724 = vmatpush.msra.mxu3 %v1591_v12  ;;  %1750 = vmatpush.msrb.mxu0 %v1643_v50  ;;  %v1648_v33 = vld [vmem:[#allocation8 + $0xb30] sm:$0xff]  ;;  %v1597_v12 = vld [vmem:[#allocation8 + $0x998] sm:$0xff] }
 0x1cb   : > { %1679 = vmatpush.msra.mxu1 %v1586_v13  ;;  %1705 = vmatpush.msra.mxu2 %v1638_v14  ;;  %v1649_v50 = vld [vmem:[#allocation8 + $0xb38] sm:$0xff]  ;;  %v1592_v13 = vld [vmem:[#allocation8 + $0x970] sm:$0xff] }
 0x1cc   : > { %1725 = vmatpush.msra.mxu3 %v1587_v15  ;;  %1751 = vmatpush.msrb.mxu0 %v1639_v16  ;;  %v1644_v14 = vld [vmem:[#allocation8 + $0xb10] sm:$0xff]  ;;  %v1593_v15 = vld [vmem:[#allocation8 + $0x978] sm:$0xff] }
 0x1cd   : > { %1680 = vmatpush.msra.mxu1 %v1582_v17  ;;  %1706 = vmatpush.msra.mxu2 %v1634_v18  ;;  %v1645_v16 = vld [vmem:[#allocation8 + $0xb18] sm:$0xff]  ;;  %v1588_v17 = vld [vmem:[#allocation8 + $0x950] sm:$0xff] }
 0x1ce   : > { %1726 = vmatpush.msra.mxu3 %v1583_v19  ;;  %1752 = vmatpush.msrb.mxu0 %v1635_v20  ;;  %v1640_v18 = vld [vmem:[#allocation8 + $0xaf0] sm:$0xff]  ;;  %v1589_v19 = vld [vmem:[#allocation8 + $0x958] sm:$0xff] }
 0x1cf   : > { %1681 = vmatpush.msra.mxu1 %v1578_v21  ;;  %1707 = vmatpush.msra.mxu2 %v1630_v22  ;;  %v1641_v20 = vld [vmem:[#allocation8 + $0xaf8] sm:$0xff]  ;;  %v1584_v21 = vld [vmem:[#allocation8 + $0x930] sm:$0xff] }
 0x1d0   : > { %1727 = vmatpush.msra.mxu3 %v1579_v9  ;;  %1753 = vmatpush.msrb.mxu0 %v1631_v23  ;;  %v1636_v22 = vld [vmem:[#allocation8 + $0xad0] sm:$0xff]  ;;  %v1585_v9 = vld [vmem:[#allocation8 + $0x938] sm:$0xff] }
 0x1d1   : > { %1682 = vmatpush.msra.mxu1 %v1574_v24  ;;  %1708 = vmatpush.msra.mxu2 %v1626_v25  ;;  %v1637_v23 = vld [vmem:[#allocation8 + $0xad8] sm:$0xff] }
 0x1d2   : > { %1728 = vmatpush.msra.mxu3 %v1575_v27  ;;  %1754 = vmatpush.msrb.mxu0 %v1627_v28  ;;  %v1580_v27 = vld [vmem:[#allocation8 + $0x910] sm:$0xff] }
 0x1d3   : > { %1683 = vmatpush.msra.mxu1 %v1570_v29  ;;  %1709 = vmatpush.msra.mxu2 %v1622_v30  ;;  %v1632_v28 = vld [vmem:[#allocation8 + $0xab0] sm:$0xff]  ;;  %v1581_v30 = vld [vmem:[#allocation8 + $0x918] sm:$0xff] }
 0x1d4   : > { %1729 = vmatpush.msra.mxu3 %v1571_v31  ;;  %1755 = vmatpush.msrb.mxu0 %v1623_v32  ;;  %v1633_v31 = vld [vmem:[#allocation8 + $0xab8] sm:$0xff]  ;;  %v1576_v32 = vld [vmem:[#allocation8 + $0x8f0] sm:$0xff] }
 0x1d5   : > { %1684 = vmatpush.msra.mxu1 %v1566_v36  ;;  %1710 = vmatpush.msra.mxu2 %v1618_v37  ;;  %v1628_v36 = vld [vmem:[#allocation8 + $0xa90] sm:$0xff]  ;;  %v1577_v37 = vld [vmem:[#allocation8 + $0x8f8] sm:$0xff] }
 0x1d6   : > { %1730 = vmatpush.msra.mxu3 %v1567_v38  ;;  %1756 = vmatpush.msrb.mxu0 %v1619_v39  ;;  %v1629_v38 = vld [vmem:[#allocation8 + $0xa98] sm:$0xff]  ;;  %v1572_v39 = vld [vmem:[#allocation8 + $0x8d0] sm:$0xff] }
 0x1d7   : > { %1685 = vmatpush.msra.mxu1 %v1562_v40  ;;  %1711 = vmatpush.msra.mxu2 %v1614_v42  ;;  %v1624_v40 = vld [vmem:[#allocation8 + $0xa70] sm:$0xff]  ;;  %v1573_v42 = vld [vmem:[#allocation8 + $0x8d8] sm:$0xff] }
 0x1d8   : > { %1731 = vmatpush.msra.mxu3 %v1563_v11  ;;  %1757 = vmatpush.msrb.mxu0 %v1615_v43  ;;  %v1625_v11 = vld [vmem:[#allocation8 + $0xa78] sm:$0xff] }
 0x1d9   : > { %1686 = vmatpush.msra.mxu1 %v1558_v44  ;;  %1712 = vmatpush.msra.mxu2 %v1610_v45  ;;  %v1568_v45 = vld [vmem:[#allocation8 + $0x8b0] sm:$0xff] }
 0x1da   : > { %1732 = vmatpush.msra.mxu3 %v1559_v46  ;;  %1758 = vmatpush.msrb.mxu0 %v1611_v48  ;;  %v1620_v46 = vld [vmem:[#allocation8 + $0xa50] sm:$0xff] }
 0x1db   : > { %1713 = vmatmul.f32.vlgmr.msra.gmra.mxu2 %v4223_v47  ;;  %1759 = vmatmul.f32.vlgmr.msrb.gmra.mxu0 %v4223_v47 }
 0x1dc   : > { %1789 = vmatpush.msrb.mxu2 %v1672_v49  ;;  %1835 = vmatpush.msra.mxu0 %v1673_v52  ;;  %v1569_v49 = vld [vmem:[#allocation8 + $0x8b8] sm:$0xff] }
 0x1dd   : > { %1687 = vmatpush.msra.mxu1 %v1554_v53  ;;  %1733 = vmatpush.msra.mxu3 %v1555_v54  ;;  %v1621_v52 = vld [vmem:[#allocation8 + $0xa58] sm:$0xff]  ;;  %v1564_v53 = vld [vmem:[#allocation8 + $0x890] sm:$0xff] }
 0x1de   : > { %1790 = vmatpush.msrb.mxu2 %v1668_v55  ;;  %1836 = vmatpush.msra.mxu0 %v1669_v57  ;;  %v1616_v54 = vld [vmem:[#allocation8 + $0xa30] sm:$0xff]  ;;  %v1565_v57 = vld [vmem:[#allocation8 + $0x898] sm:$0xff] }
 0x1df   : > { %1688 = vmatpush.msra.mxu1 %v1550_v26  ;;  %1734 = vmatpush.msra.mxu3 %v1551_v58  ;;  %v1617_v26 = vld [vmem:[#allocation8 + $0xa38] sm:$0xff] }
 0x1e0   : > { %1791 = vmatpush.msrb.mxu2 %v1664_v60  ;;  %1837 = vmatpush.msra.mxu0 %v1665_v35  ;;  %v1560_v60 = vld [vmem:[#allocation8 + $0x870] sm:$0xff] }
 0x1e1   : > { %1689 = vmatpush.msra.mxu1 %v1546_v61  ;;  %1735 = vmatpush.msra.mxu3 %v1547_v62  ;;  %v1612_v35 = vld [vmem:[#allocation8 + $0xa10] sm:$0xff]  ;;  %v1561_v61 = vld [vmem:[#allocation8 + $0x878] sm:$0xff] }
 0x1e2   : > { %1690 = vmatmul.f32.vlgmr.msra.gmra.mxu1 %v4235_v59  ;;  %1736 = vmatmul.f32.vlgmr.msra.gmra.mxu3 %v4235_v59  ;;  %v1613_v62 = vld [vmem:[#allocation8 + $0xa18] sm:$0xff] }
 0x1e3   : > { %1766 = vmatpush.msrb.mxu1 %v1608_v63  ;;  %1792 = vmatpush.msrb.mxu2 %v1660_v0  ;;  %v1556_v63 = vld [vmem:[#allocation8 + $0x850] sm:$0xff]  ;;  %v1557_v0 = vld [vmem:[#allocation8 + $0x858] sm:$0xff] }
 0x1e4   : > { %1812 = vmatpush.msrb.mxu3 %v1609_v1  ;;  %1838 = vmatpush.msra.mxu0 %v1661_v2  ;;  %v1552_v1 = vld [vmem:[#allocation8 + $0x830] sm:$0xff]  ;;  %v1553_v2 = vld [vmem:[#allocation8 + $0x838] sm:$0xff] }
 0x1e5   : > { %3306 = vmatmul.msk.f32.gmra.mxu2 %vm907_vm2, %v4217_v41  ;;  %3308 = vmatmul.msk.f32.gmra.mxu0 %vm907_vm2, %v4217_v41 }
 0x1e6   : > { %1767 = vmatpush.msrb.mxu1 %v1604_v3  ;;  %1793 = vmatpush.msrb.mxu2 %v1656_v4 }
 0x1e7   : > { %1813 = vmatpush.msrb.mxu3 %v1605_v5  ;;  %1839 = vmatpush.msra.mxu0 %v1657_v6  ;;  %v1548_v5 = vld [vmem:[#allocation8 + $0x810] sm:$0xff]  ;;  %v1549_v6 = vld [vmem:[#allocation8 + $0x818] sm:$0xff] }
 0x1e8   : > { %1768 = vmatpush.msrb.mxu1 %v1600_v34  ;;  %1794 = vmatpush.msrb.mxu2 %v1652_v51 }
 0x1e9   : > { %1814 = vmatpush.msrb.mxu3 %v1601_v7  ;;  %1840 = vmatpush.msra.mxu0 %v1653_v8  ;;  %v1263_v43 = vpop.f32.mrf.mxu0 }
 0x1ea   : > { %1769 = vmatpush.msrb.mxu1 %v1596_v10  ;;  %1795 = vmatpush.msrb.mxu2 %v1648_v33 }
 0x1eb   : > { %1815 = vmatpush.msrb.mxu3 %v1597_v12  ;;  %1841 = vmatpush.msra.mxu0 %v1649_v50 }
 0x1ec   : > { %3305 = vmatmul.msk.f32.gmra.mxu1 %vm907_vm2, %v4229_v56  ;;  %3307 = vmatmul.msk.f32.gmra.mxu3 %vm907_vm2, %v4229_v56 }
 0x1ed   : > { %1770 = vmatpush.msrb.mxu1 %v1592_v13  ;;  %1796 = vmatpush.msrb.mxu2 %v1644_v14 }
 0x1ee   : > { %1816 = vmatpush.msrb.mxu3 %v1593_v15  ;;  %1842 = vmatpush.msra.mxu0 %v1645_v16 }
 0x1ef   : > { %1771 = vmatpush.msrb.mxu1 %v1588_v17  ;;  %1797 = vmatpush.msrb.mxu2 %v1640_v18  ;;  %v1194_v24 = vpop.f32.mrf.mxu1  ;;  %v1217_v25 = vpop.f32.mrf.mxu2  ;;  %v1935_v18 = vld [vmem:[%s4777_s3 + $0x78] sm:$0xff] }
 0x1f0   : > { %1817 = vmatpush.msrb.mxu3 %v1589_v19  ;;  %1843 = vmatpush.msra.mxu0 %v1641_v20  ;;  %v4310_v29 = vadd.f32 %v1217_v25, %v1194_v24  ;;  %v1934_v20 = vld [vmem:[%s4777_s3 + $0x70] sm:$0xff]  ;;  %v1932_v24 = vld [vmem:[%s4777_s3 + $0x60] sm:$0xff]  ;;  %v1951_v25 = vld [vmem:[%s4777_s3 + $0xf8] sm:$0xff] }
 0x1f1   : > { %1772 = vmatpush.msrb.mxu1 %v1584_v21  ;;  %1798 = vmatpush.msrb.mxu2 %v1636_v22  ;;  %v1966_v21 = vld [vmem:[%s4777_s3 + $0x170] sm:$0xff] }
 0x1f2   : > { %1818 = vmatpush.msrb.mxu3 %v1585_v9  ;;  %1844 = vmatpush.msra.mxu0 %v1637_v23  ;;  %v4320_v3 = vpop.f32.mrf.mxu0  ;;  %v1933_v9 = vld [vmem:[%s4777_s3 + $0x68] sm:$0xff] }
 0x1f3   : > { %1773 = vmatpush.msrb.mxu1 %v1580_v27  ;;  %1799 = vmatpush.msrb.mxu2 %v1632_v28  ;;  %v1965_v23 = vld [vmem:[%s4777_s3 + $0x168] sm:$0xff]  ;;  %v1964_v27 = vld [vmem:[%s4777_s3 + $0x160] sm:$0xff]  ;;  %v1983_v28 = vld [vmem:[%s4777_s3 + $0x1f8] sm:$0xff] }
 0x1f4   : > { %1819 = vmatpush.msrb.mxu3 %v1581_v30  ;;  %1845 = vmatpush.msra.mxu0 %v1633_v31  ;;  %v1931_v30 = vld [vmem:[%s4777_s3 + $0x58] sm:$0xff]  ;;  %v1950_v31 = vld [vmem:[%s4777_s3 + $0xf0] sm:$0xff] }
 0x1f5   : > { %1774 = vmatpush.msrb.mxu1 %v1576_v32  ;;  %1800 = vmatpush.msrb.mxu2 %v1628_v36  ;;  %v1240_v44 = vpop.f32.mrf.mxu3  ;;  %v1963_v32 = vld [vmem:[%s4777_s3 + $0x158] sm:$0xff] }
 0x1f6   : > { %1820 = vmatpush.msrb.mxu3 %v1577_v37  ;;  %1846 = vmatpush.msra.mxu0 %v1629_v38  ;;  %v4312_v48 = vadd.f32 %v1263_v43, %v1240_v44  ;;  %v1982_v38 = vld [vmem:[%s4777_s3 + $0x1f0] sm:$0xff]  ;;  %v1981_v44 = vld [vmem:[%s4777_s3 + $0x1e8] sm:$0xff] }
 0x1f7   : > { %1775 = vmatpush.msrb.mxu1 %v1572_v39  ;;  %1801 = vmatpush.msrb.mxu2 %v1624_v40  ;;  %v1930_v40 = vld [vmem:[%s4777_s3 + $0x50] sm:$0xff] }
 0x1f8   : > { %1821 = vmatpush.msrb.mxu3 %v1573_v42  ;;  %1847 = vmatpush.msra.mxu0 %v1625_v11  ;;  %v4314_v55 = vpop.f32.mrf.mxu2  ;;  %v1949_v42 = vld [vmem:[%s4777_s3 + $0xe8] sm:$0xff]  ;;  %v1962_v11 = vld [vmem:[%s4777_s3 + $0x150] sm:$0xff] }
 0x1f9   : > { %1776 = vmatpush.msrb.mxu1 %v1568_v45  ;;  %1802 = vmatpush.msrb.mxu2 %v1620_v46  ;;  %v4316_v58 = vpop.f32.mrf.mxu1  ;;  %v1929_v45 = vld [vmem:[%s4777_s3 + $0x48] sm:$0xff]  ;;  %v1948_v46 = vld [vmem:[%s4777_s3 + $0xe0] sm:$0xff] }
 0x1fa   : > { %1822 = vmatpush.msrb.mxu3 %v1569_v49  ;;  %1848 = vmatpush.msra.mxu0 %v1621_v52  ;;  %v1961_v49 = vld [vmem:[%s4777_s3 + $0x148] sm:$0xff]  ;;  %v1980_v52 = vld [vmem:[%s4777_s3 + $0x1e0] sm:$0xff] }
 0x1fb   : > { %1777 = vmatpush.msrb.mxu1 %v1564_v53  ;;  %1803 = vmatpush.msrb.mxu2 %v1616_v54  ;;  %v1928_v53 = vld [vmem:[%s4777_s3 + $0x40] sm:$0xff]  ;;  %v1947_v54 = vld [vmem:[%s4777_s3 + $0xd8] sm:$0xff] }
 0x1fc   : > { %1823 = vmatpush.msrb.mxu3 %v1565_v57  ;;  %1849 = vmatpush.msra.mxu0 %v1617_v26  ;;  %v1960_v57 = vld [vmem:[%s4777_s3 + $0x140] sm:$0xff]  ;;  %v1979_v26 = vld [vmem:[%s4777_s3 + $0x1d8] sm:$0xff] }
 0x1fd   : > { %1778 = vmatpush.msrb.mxu1 %v1560_v60  ;;  %1804 = vmatpush.msrb.mxu2 %v1612_v35  ;;  %v1927_v60 = vld [vmem:[%s4777_s3 + $0x38] sm:$0xff]  ;;  %v1946_v35 = vld [vmem:[%s4777_s3 + $0xd0] sm:$0xff] }
 0x1fe   : > { %1824 = vmatpush.msrb.mxu3 %v1561_v61  ;;  %1850 = vmatpush.msra.mxu0 %v1613_v62  ;;  %v1959_v61 = vld [vmem:[%s4777_s3 + $0x138] sm:$0xff] }
 0x1ff   : > { %1805 = vmatmul.f32.vlgmr.msrb.gmra.mxu2 %v4223_v47  ;;  %1851 = vmatmul.f32.vlgmr.msra.gmra.mxu0 %v4223_v47  ;;  %v4322_v4 = vpop.f32.mrf.mxu3  ;;  %v1355_v47 = vpop.f32.mrf.mxu0 }
 0x200   : > { %1779 = vmatpush.msrb.mxu1 %v1556_v63  ;;  %1825 = vmatpush.msrb.mxu3 %v1557_v0  ;;  %v1978_v0 = vld [vmem:[%s4777_s3 + $0x1d0] sm:$0xff] }
 0x201   : > { %2005 = vmatpush.msra.mxu2 %v1951_v25  ;;  %2045 = vmatpush.msrb.mxu0 %v1983_v28  ;;  %v1941_v25 = vld [vmem:[%s4777_s3 + $0xa8] sm:$0xff] }
 0x202   : > { %1780 = vmatpush.msrb.mxu1 %v1552_v1  ;;  %1826 = vmatpush.msrb.mxu3 %v1553_v2  ;;  %v1309_v34 = vpop.f32.mrf.mxu2  ;;  %v1926_v1 = vld [vmem:[%s4777_s3 + $0x30] sm:$0xff]  ;;  %v1945_v2 = vld [vmem:[%s4777_s3 + $0xc8] sm:$0xff] }
 0x203   : > { %v1286_v51 = vpop.f32.mrf.mxu1  ;;  %2006 = vmatpush.msra.mxu2 %v1950_v31  ;;  %2046 = vmatpush.msrb.mxu0 %v1982_v38  ;;  %v1973_v31 = vld [vmem:[%s4777_s3 + $0x1a8] sm:$0xff]  ;;  %v1940_v38 = vld [vmem:[%s4777_s3 + $0xa0] sm:$0xff] }
 0x204   : > { %1781 = vmatpush.msrb.mxu1 %v1548_v5  ;;  %1827 = vmatpush.msrb.mxu3 %v1549_v6  ;;  %v4324_v7 = vadd.f32 %v1309_v34, %v1286_v51  ;;  %v1958_v5 = vld [vmem:[%s4777_s3 + $0x130] sm:$0xff]  ;;  %v1977_v6 = vld [vmem:[%s4777_s3 + $0x1c8] sm:$0xff] }
 0x205   : > { %1782 = vmatmul.f32.vlgmr.msrb.gmra.mxu1 %v4235_v59  ;;  %1828 = vmatmul.f32.vlgmr.msrb.gmra.mxu3 %v4235_v59  ;;  %v1925_v51 = vld [vmem:[%s4777_s3 + $0x28] sm:$0xff] }
 0x206   : > { %1985 = vmatpush.msra.mxu1 %v1935_v18  ;;  %2007 = vmatpush.msra.mxu2 %v1949_v42  ;;  %v1956_v18 = vld [vmem:[%s4777_s3 + $0x120] sm:$0xff]  ;;  %v1953_v42 = vld [vmem:[%s4777_s3 + $0x108] sm:$0xff] }
 0x207   : > { %3310 = vmatmul.msk.f32.gmra.mxu2 %vm907_vm2, %v4217_v41  ;;  %3312 = vmatmul.msk.f32.gmra.mxu0 %vm907_vm2, %v4217_v41  ;;  %v1358_v59 = vpop.f32.mrf.mxu0 }
 0x208   : > { %1986 = vmatpush.msra.mxu1 %v1934_v20  ;;  %2047 = vmatpush.msrb.mxu0 %v1981_v44  ;;  %v1923_v20 = vld [vmem:[%s4777_s3 + $0x18] sm:$0xff]  ;;  %v1920_v44 = vld [vmem:[%s4777_s3] sm:$0xff] }
 0x209   : > { %v1332_v8 = vpop.f32.mrf.mxu3  ;;  %2008 = vmatpush.msra.mxu2 %v1948_v46  ;;  %v1939_v46 = vld [vmem:[%s4777_s3 + $0x98] sm:$0xff] }
 0x20a   : > { %v4332_v10 = vadd.f32 %v1355_v47, %v1332_v8  ;;  %1987 = vmatpush.msra.mxu1 %v1933_v9  ;;  %2048 = vmatpush.msrb.mxu0 %v1980_v52  ;;  %v1944_v47 = vld [vmem:[%s4777_s3 + $0xc0] sm:$0xff]  ;;  %v1957_v8 = vld [vmem:[%s4777_s3 + $0x128] sm:$0xff]  ;;  %v1955_v9 = vld [vmem:[%s4777_s3 + $0x118] sm:$0xff] }
 0x20b   : > { %2009 = vmatpush.msra.mxu2 %v1947_v54  ;;  %v1971_v52 = vld [vmem:[%s4777_s3 + $0x198] sm:$0xff] }
 0x20c   : > { %v1312_v33 = vpop.f32.mrf.mxu2  ;;  %1988 = vmatpush.msra.mxu1 %v1932_v24  ;;  %2049 = vmatpush.msrb.mxu0 %v1979_v26  ;;  %v1922_v24 = vld [vmem:[%s4777_s3 + $0x10] sm:$0xff] }
 0x20d   : > { %3309 = vmatmul.msk.f32.gmra.mxu1 %vm907_vm2, %v4229_v56  ;;  %3311 = vmatmul.msk.f32.gmra.mxu3 %vm907_vm2, %v4229_v56  ;;  %v1289_v12 = vpop.f32.mrf.mxu1  ;;  %v1967_v56 = vld [vmem:[%s4777_s3 + $0x178] sm:$0xff]  ;;  %v1970_v26 = vld [vmem:[%s4777_s3 + $0x190] sm:$0xff] }
 0x20e   : > { %v4338_v50 = vadd.f32 %v1312_v33, %v1289_v12  ;;  %2025 = vmatpush.msra.mxu3 %v1967_v56  ;;  %1989 = vmatpush.msra.mxu1 %v1931_v30  ;;  %v1976_v12 = vld [vmem:[%s4777_s3 + $0x1c0] sm:$0xff]  ;;  %v1975_v56 = vld [vmem:[%s4777_s3 + $0x1b8] sm:$0xff] }
 0x20f   : > { %2010 = vmatpush.msra.mxu2 %v1946_v35  ;;  %2050 = vmatpush.msrb.mxu0 %v1978_v0  ;;  %v1221_v35 = vadd.f32 %v4314_v55, %v4316_v58  ;;  %v1936_v58 = vld [vmem:[%s4777_s3 + $0x80] sm:$0xff] }
 0x210   : > { %2026 = vmatpush.msra.mxu3 %v1966_v21  ;;  %1990 = vmatpush.msra.mxu1 %v1930_v40  ;;  %v1942_v21 = vld [vmem:[%s4777_s3 + $0xb0] sm:$0xff] }
 0x211   : > { %2011 = vmatpush.msra.mxu2 %v1945_v2  ;;  %2051 = vmatpush.msrb.mxu0 %v1977_v6 }
 0x212   : > { %v4346_v16 = vpop.f32.mrf.mxu0  ;;  %2027 = vmatpush.msra.mxu3 %v1965_v23  ;;  %1991 = vmatpush.msra.mxu1 %v1929_v45  ;;  %v1974_v23 = vld [vmem:[%s4777_s3 + $0x1b0] sm:$0xff] }
 0x213   : > { %v1335_v13 = vpop.f32.mrf.mxu3  ;;  %2012 = vmatpush.msra.mxu2 %v1944_v47  ;;  %2052 = vmatpush.msrb.mxu0 %v1976_v12  ;;  %v2300_v47 = vld [vmem:[#allocation16 + $0x180] sm:$0xff] }
 0x214   : > { %v4340_v14 = vadd.f32 %v1358_v59, %v1335_v13  ;;  %2028 = vmatpush.msra.mxu3 %v1964_v27  ;;  %1992 = vmatpush.msra.mxu1 %v1928_v53  ;;  %v1924_v59 = vld [vmem:[%s4777_s3 + $0x20] sm:$0xff]  ;;  %v1943_v13 = vld [vmem:[%s4777_s3 + $0xb8] sm:$0xff]  ;;  %v1954_v27 = vld [vmem:[%s4777_s3 + $0x110] sm:$0xff] }
 0x215   : > { %2013 = vmatpush.msra.mxu2 %v1943_v13  ;;  %2053 = vmatpush.msrb.mxu0 %v1975_v56  ;;  %v2312_v53 = vld [vmem:[#allocation16 + $0x1e0] sm:$0xff] }
 0x216   : > { %2029 = vmatpush.msra.mxu3 %v1963_v32  ;;  %1993 = vmatpush.msra.mxu1 %v1927_v60  ;;  %v1921_v32 = vld [vmem:[%s4777_s3 + $0x8] sm:$0xff] }
 0x217   : > { %v4342_v15 = vpop.f32.mrf.mxu2  ;;  %2014 = vmatpush.msra.mxu2 %v1942_v21  ;;  %2054 = vmatpush.msrb.mxu0 %v1974_v23  ;;  %v2308_v60 = vld [vmem:[#allocation16 + $0x1c0] sm:$0xff] }
 0x218   : > { %2030 = vmatpush.msra.mxu3 %v1962_v11  ;;  %1994 = vmatpush.msra.mxu1 %v1926_v1  ;;  %v1972_v11 = vld [vmem:[%s4777_s3 + $0x1a0] sm:$0xff]  ;;  %v4564_v1 = vld [vmem:[#allocation10] sm:$0xf]  ;;  %v2372_v56 = vld [vmem:[#allocation16 + $0x3c0] sm:$0xff] }
 0x219   : > { %v4344_v41 = vpop.f32.mrf.mxu1  ;;  %2015 = vmatpush.msra.mxu2 %v1941_v25  ;;  %2055 = vmatpush.msrb.mxu0 %v1973_v31 }
 0x21a   : > { %2031 = vmatpush.msra.mxu3 %v1961_v49  ;;  %1995 = vmatpush.msra.mxu1 %v1925_v51  ;;  %v1952_v49 = vld [vmem:[%s4777_s3 + $0x100] sm:$0xff]  ;;  %v1379_v54 = vadd.f32 %v4344_v41, %v4310_v29  ;;  %v1937_v29 = vld [vmem:[%s4777_s3 + $0x88] sm:$0xff] }
 0x21b   : > { %2016 = vmatpush.msra.mxu2 %v1940_v38  ;;  %2056 = vmatpush.msrb.mxu0 %v1972_v11  ;;  %v1969_v41 = vld [vmem:[%s4777_s3 + $0x188] sm:$0xff]  ;;  %v1968_v51 = vld [vmem:[%s4777_s3 + $0x180] sm:$0xff] }
 0x21c   : > { %v4393_v36 = vpop.f32.mrf.mxu0  ;;  %2032 = vmatpush.msra.mxu3 %v1960_v57  ;;  %1996 = vmatpush.msra.mxu1 %v1924_v59  ;;  %v1938_v57 = vld [vmem:[%s4777_s3 + $0x90] sm:$0xff]  ;;  %v1402_v6 = vadd.f32 %v4342_v15, %v1379_v54  ;;  %v1868_v15 = vperm.slane %v4564_v1, 0 }
 0x21d   : > { %2017 = vmatpush.msra.mxu2 %v1939_v46  ;;  %2057 = vmatpush.msrb.mxu0 %v1971_v52  ;;  %v2364_v38 = vld [vmem:[#allocation16 + $0x380] sm:$0xff] }
 0x21e   : > { %2033 = vmatpush.msra.mxu3 %v1959_v61  ;;  %1997 = vmatpush.msra.mxu1 %v1923_v20  ;;  %v1267_v20 = vadd.f32 %v4320_v3, %v4322_v4  ;;  %v1869_v3 = vperm.slane %v4564_v1, 1  ;;  %v2284_v11 = vld [vmem:[#allocation16 + $0x100] sm:$0xff] }
 0x21f   : > { %v4348_v17 = vpop.f32.mrf.mxu3  ;;  %2018 = vmatpush.msra.mxu2 %v1938_v57  ;;  %2058 = vmatpush.msrb.mxu0 %v1970_v26  ;;  %v2356_v52 = vld [vmem:[#allocation16 + $0x340] sm:$0xff] }
 0x220   : > { %2034 = vmatpush.msra.mxu3 %v1958_v5  ;;  %1998 = vmatpush.msra.mxu1 %v1922_v24  ;;  %v2304_v5 = vld [vmem:[#allocation16 + $0x1a0] sm:$0xff]  ;;  %v1425_v12 = vadd.f32 %v4348_v17, %v4312_v48 }
 0x221   : > { %2019 = vmatpush.msra.mxu2 %v1937_v29  ;;  %2059 = vmatpush.msrb.mxu0 %v1969_v41  ;;  %v2292_v48 = vld [vmem:[#allocation16 + $0x140] sm:$0xff] }
 0x222   : > { %v4356_v19 = vpop.f32.mrf.mxu2  ;;  %2035 = vmatpush.msra.mxu3 %v1957_v8  ;;  %1999 = vmatpush.msra.mxu1 %v1921_v32  ;;  %v2376_v8 = vld [vmem:[#allocation16 + $0x3e0] sm:$0xff]  ;;  %v1448_v24 = vadd.f32 %v4346_v16, %v1425_v12 }
 0x223   : > { %v4364_v22 = vpop.f32.mrf.mxu1  ;;  %2020 = vmatpush.msra.mxu2 %v1936_v58  ;;  %2060 = vmatpush.msrb.mxu0 %v1968_v51  ;;  %v2368_v17 = vld [vmem:[#allocation16 + $0x3a0] sm:$0xff] }
 0x224   : > { %2036 = vmatpush.msra.mxu3 %v1956_v18  ;;  %2000 = vmatpush.msra.mxu1 %v1920_v44  ;;  %v1382_v55 = vadd.f32 %v4364_v22, %v1221_v35  ;;  %v2296_v18 = vld [vmem:[#allocation16 + $0x160] sm:$0xff] }
 0x225   : > { %2541 = vmatpush.msra.mxu0 %v2376_v8  ;;  %v2288_v32 = vld [vmem:[#allocation16 + $0x120] sm:$0xff] }
 0x226   : > { %2037 = vmatpush.msra.mxu3 %v1955_v9  ;;  %v1405_v21 = vadd.f32 %v4356_v19, %v1382_v55  ;;  %v2360_v44 = vld [vmem:[#allocation16 + $0x360] sm:$0xff] }
 0x227   : > { %2542 = vmatpush.msra.mxu0 %v2372_v56  ;;  %v2276_v26 = vld [vmem:[#allocation16 + $0xc0] sm:$0xff] }
 0x228   : > { %2038 = vmatpush.msra.mxu3 %v1954_v27  ;;  %v2348_v29 = vld [vmem:[#allocation16 + $0x300] sm:$0xff] }
 0x229   : > { %v4395_v37 = vpop.f32.mrf.mxu3  ;;  %2543 = vmatpush.msra.mxu0 %v2368_v17  ;;  %v2264_v51 = vld [vmem:[#allocation16 + $0x60] sm:$0xff] }
 0x22a   : > { %2039 = vmatpush.msra.mxu3 %v1953_v42  ;;  %v1428_v25 = vadd.f32 %v4395_v37, %v1267_v20  ;;  %v2332_v56 = vld [vmem:[#allocation16 + $0x280] sm:$0xff] }
 0x22b   : > { %2544 = vmatpush.msra.mxu0 %v2364_v38  ;;  %v2320_v38 = vld [vmem:[#allocation16 + $0x220] sm:$0xff] }
 0x22c   : > { %2040 = vmatpush.msra.mxu3 %v1952_v49  ;;  %v1451_v16 = vadd.f32 %v4393_v36, %v1428_v25  ;;  %v2280_v49 = vld [vmem:[#allocation16 + $0xe0] sm:$0xff] }
 0x22d   : > { %2545 = vmatpush.msra.mxu0 %v2360_v44 }
 0x22e   : > { %2518 = vmatpush.msrb.mxu3 %v2312_v53 }
 0x22f   : > { %2546 = vmatpush.msra.mxu0 %v2356_v52 }
 0x230   : > { %2519 = vmatpush.msrb.mxu3 %v2308_v60  ;;  %v2352_v60 = vld [vmem:[#allocation16 + $0x320] sm:$0xff] }
 0x231   : > { %2547 = vmatpush.msra.mxu0 %v2352_v60 }
 0x232   : > { %2520 = vmatpush.msrb.mxu3 %v2304_v5  ;;  %v2268_v5 = vld [vmem:[#allocation16 + $0x80] sm:$0xff] }
 0x233   : > { %2548 = vmatpush.msra.mxu0 %v2348_v29 }
 0x234   : > { %v4449_v62 = vpop.f32.mrf.mxu0  ;;  %2521 = vmatpush.msrb.mxu3 %v2300_v47  ;;  %v2340_v47 = vld [vmem:[#allocation16 + $0x2c0] sm:$0xff] }
 0x236   : > { %2522 = vmatpush.msrb.mxu3 %v2296_v18  ;;  %v2256_v18 = vld [vmem:[#allocation16 + $0x20] sm:$0xff] }
 0x238   : > { %2523 = vmatpush.msrb.mxu3 %v2292_v48 }
 0x23a   : > { %v4400_v39 = vpop.f32.mrf.mxu2  ;;  %2524 = vmatpush.msrb.mxu3 %v2288_v32 }
 0x23b   : > { %v4411_v43 = vpop.f32.mrf.mxu1 }
 0x23c   : > { %2525 = vmatpush.msrb.mxu3 %v2284_v11 }
 0x23e   : > { %v4517_v28 = vpop.f32.mrf.mxu0  ;;  %2526 = vmatpush.msrb.mxu3 %v2280_v49 }
 0x240   : > { %2527 = vmatpush.msrb.mxu3 %v2276_v26  ;;  %v1871_v26 = vperm.slane %v4564_v1, 3 }
 0x241   : > { %v4451_v63 = vpop.f32.mrf.mxu3 }
 0x242   : > { %v1517_v44 = vadd.f32 %v4451_v63, %v4332_v10 }
 0x244   : > { %v4468_v34 = vpop.f32.mrf.mxu2 }
 0x245   : > { %v4479_v33 = vpop.f32.mrf.mxu1 }
 0x24b   : > { %v4519_v30 = vpop.f32.mrf.mxu3 }
 0x258   : > { %v1760_v0 = vpop.f32.mrf.mxu0 }
 0x25e   : > { %v1714_v40 = vpop.f32.mrf.mxu2 }
 0x25f   : > { %v1691_v45 = vpop.f32.mrf.mxu1 }
 0x260   : > { %v1715_v61 = vadd.f32 %v1714_v40, %v1691_v45 }
 0x262   : > { %v1858_v59 = vadd.f32 %v1715_v61, %v1402_v6  ;;  %v1763_v19 = vpop.f32.mrf.mxu0  ;;  %v2272_v61 = vld [vmem:[#allocation16 + $0xa0] sm:$0xff] }
 0x263   : > { %2528 = vmatpush.msrb.mxu3 %v2272_v61  ;;  %v2344_v6 = vld [vmem:[#allocation16 + $0x2e0] sm:$0xff] }
 0x264   : > { %v1876_v27 = vadd.f32 %v1868_v15, %v1858_v59  ;;  %2549 = vmatpush.msra.mxu0 %v2344_v6  ;;  %v2260_v59 = vld [vmem:[#allocation16 + $0x40] sm:$0xff] }
 0x265   : > { %v1737_v2 = vpop.f32.mrf.mxu3  ;;  %2529 = vmatpush.msrb.mxu3 %v2268_v5 }
 0x266   : > { %v1761_v9 = vadd.f32 %v1760_v0, %v1737_v2  ;;  %v4584_v45 = vmax.f32 %v1876_v27, 0.0  ;;  %2550 = vmatpush.msra.mxu0 %v2340_v47  ;;  %v2324_v27 = vld [vmem:[#allocation16 + $0x240] sm:$0xff] }
 0x267   : > { %2530 = vmatpush.msrb.mxu3 %v2264_v51 }
 0x268   : > { %v1717_v22 = vpop.f32.mrf.mxu2  ;;  %v1859_v40 = vadd.f32 %v1761_v9, %v1448_v24  ;;  %v2252_v9 = vld [vmem:[#allocation16] sm:$0xff] }
 0x269   : > { %v1694_v13 = vpop.f32.mrf.mxu1  ;;  %2531 = vmatpush.msrb.mxu3 %v2260_v59  ;;  %v2313_v59 = vld [vmem:[#allocation16 + $0x1e8] sm:$0xff] }
 0x26a   : > { %v1718_v23 = vadd.f32 %v1717_v22, %v1694_v13  ;;  %v1877_v53 = vadd.f32 %v1869_v3, %v1859_v40 }
 0x26b   : > { %2532 = vmatpush.msrb.mxu3 %v2256_v18  ;;  %v2305_v18 = vld [vmem:[#allocation16 + $0x1a8] sm:$0xff] }
 0x26c   : > { %v1862_v31 = vadd.f32 %v1718_v23, %v1405_v21  ;;  %v4590_v41 = vmax.f32 %v1877_v53, 0.0  ;;  %v2328_v23 = vld [vmem:[#allocation16 + $0x260] sm:$0xff] }
 0x26d   : > { %2533 = vmatpush.msrb.mxu3 %v2252_v9  ;;  %v2377_v9 = vld [vmem:[#allocation16 + $0x3e8] sm:$0xff] }
 0x26e   : > { %v1880_v4 = vadd.f32 %v1868_v15, %v1862_v31  ;;  %v2336_v15 = vld [vmem:[#allocation16 + $0x2a0] sm:$0xff]  ;;  %v1471_v31 = vadd.f32 %v4411_v43, %v4324_v7  ;;  %v1870_v7 = vperm.slane %v4564_v1, 2 }
 0x26f   : > { %v1740_v42 = vpop.f32.mrf.mxu3  ;;  %2551 = vmatpush.msra.mxu0 %v2336_v15 }
 0x270   : > { %v4586_v37 = vmax.f32 %v1880_v4, 0.0  ;;  %v1764_v46 = vadd.f32 %v1763_v19, %v1740_v42  ;;  %v2316_v4 = vld [vmem:[#allocation16 + $0x200] sm:$0xff]  ;;  %v1494_v19 = vadd.f32 %v4400_v39, %v1471_v31  ;;  %v1474_v42 = vadd.f32 %v4479_v33, %v4338_v50  ;;  %v2285_v31 = vld [vmem:[#allocation16 + $0x108] sm:$0xff] }
 0x271   : > { %2552 = vmatpush.msra.mxu0 %v2332_v56  ;;  %v1520_v39 = vadd.f32 %v4519_v30, %v4340_v14 }
 0x272   : > { %v1863_v54 = vadd.f32 %v1764_v46, %v1451_v16  ;;  %v1892_v57 = vadd.f32 %v4586_v37, %v4584_v45  ;;  %v1497_v49 = vadd.f32 %v4468_v34, %v1474_v42  ;;  %v2349_v42 = vld [vmem:[#allocation16 + $0x308] sm:$0xff] }
 0x273   : > { %2553 = vmatpush.msra.mxu0 %v2328_v23  ;;  %v2297_v23 = vld [vmem:[#allocation16 + $0x168] sm:$0xff] }
 0x274   : > { %v1881_v35 = vadd.f32 %v1869_v3, %v1863_v54  ;;  %v1893_v36 = vrot.slane %v1892_v57, 4  ;;  %v1540_v54 = vadd.f32 %v4449_v62, %v1517_v44  ;;  %v2345_v44 = vld [vmem:[#allocation16 + $0x2e8] sm:$0xff] }
 0x275   : > { %2554 = vmatpush.msra.mxu0 %v2324_v27  ;;  %v2365_v27 = vld [vmem:[#allocation16 + $0x388] sm:$0xff] }
 0x276   : > { %v4592_v0 = vmax.f32 %v1881_v35, 0.0  ;;  %v1894_v2 = vadd.f32 %v1893_v36, %v1892_v57  ;;  %v1543_v35 = vadd.f32 %v4517_v28, %v1520_v39  ;;  %v2314_v39 = vld [vmem:[#allocation16 + $0x1f0] sm:$0xff] }
 0x277   : > { %2555 = vmatpush.msra.mxu0 %v2320_v38  ;;  %v2281_v38 = vld [vmem:[#allocation16 + $0xe8] sm:$0xff] }
 0x278   : > { %v1895_v55 = vrot.slane %v1894_v2, 2  ;;  %v1899_v58 = vadd.f32 %v4592_v0, %v4590_v41 }
 0x279   : > { %2556 = vmatpush.msra.mxu0 %v2316_v4  ;;  %v2353_v4 = vld [vmem:[#allocation16 + $0x328] sm:$0xff] }
 0x27a   : > { %v1896_v8 = vadd.f32 %v1895_v55, %v1894_v2  ;;  %v1900_v12 = vrot.slane %v1899_v58, 4 }
 0x27c   : > { %v1897_v22 = vrot.slane %v1896_v8, 1  ;;  %v1901_v13 = vadd.f32 %v1900_v12, %v1899_v58  ;;  %v1852_v3 = vpop.f32.mrf.mxu0 }
 0x27e   : > { %v1898_v20 = vadd.f32 %v1897_v22, %v1896_v8  ;;  %v1902_v21 = vrot.slane %v1901_v13, 2  ;;  %v2309_v22 = vld [vmem:[#allocation16 + $0x1c8] sm:$0xff] }
 0x280   : > { %2001 = vmatmul.f32.vlgmr.msra.gmra.mxu1 %v1898_v20  ;;  %v1903_v48 = vadd.f32 %v1902_v21, %v1901_v13  ;;  %v2301_v21 = vld [vmem:[#allocation16 + $0x188] sm:$0xff] }
 0x282   : > { %v1783_v17 = vpop.f32.mrf.mxu1  ;;  %v1806_v24 = vpop.f32.mrf.mxu2  ;;  %v1904_v25 = vrot.slane %v1903_v48, 1 }
 0x283   : > { %v1807_v40 = vadd.f32 %v1806_v24, %v1783_v17  ;;  %v2293_v17 = vld [vmem:[#allocation16 + $0x148] sm:$0xff] }
 0x284   : > { %v1905_v32 = vadd.f32 %v1904_v25, %v1903_v48  ;;  %v1855_v63 = vpop.f32.mrf.mxu0  ;;  %v2373_v48 = vld [vmem:[#allocation16 + $0x3c8] sm:$0xff] }
 0x285   : > { %v1860_v16 = vadd.f32 %v1807_v40, %v1494_v19  ;;  %v2369_v24 = vld [vmem:[#allocation16 + $0x3a8] sm:$0xff] }
 0x286   : > { %2021 = vmatmul.f32.vlgmr.msra.gmra.mxu2 %v1905_v32  ;;  %v2289_v25 = vld [vmem:[#allocation16 + $0x128] sm:$0xff] }
 0x287   : > { %v1878_v50 = vadd.f32 %v1870_v7, %v1860_v16  ;;  %v2361_v32 = vld [vmem:[#allocation16 + $0x368] sm:$0xff] }
 0x288   : > { %v1829_v11 = vpop.f32.mrf.mxu3  ;;  %v2357_v40 = vld [vmem:[#allocation16 + $0x348] sm:$0xff] }
 0x289   : > { %v1853_v52 = vadd.f32 %v1852_v3, %v1829_v11  ;;  %v4610_v36 = vmax.f32 %v1878_v50, 0.0  ;;  %v2277_v3 = vld [vmem:[#allocation16 + $0xc8] sm:$0xff] }
 0x28a   : > { %v1786_v43 = vpop.f32.mrf.mxu1  ;;  %v1809_v46 = vpop.f32.mrf.mxu2  ;;  %v2273_v19 = vld [vmem:[#allocation16 + $0xa8] sm:$0xff] }
 0x28b   : > { %v1810_v53 = vadd.f32 %v1809_v46, %v1786_v43  ;;  %v1861_v57 = vadd.f32 %v1853_v52, %v1540_v54  ;;  %v2269_v11 = vld [vmem:[#allocation16 + $0x88] sm:$0xff] }
 0x28c   : > { %v2265_v16 = vld [vmem:[#allocation16 + $0x68] sm:$0xff] }
 0x28d   : > { %v1864_v33 = vadd.f32 %v1810_v53, %v1497_v49  ;;  %v1879_v29 = vadd.f32 %v1871_v26, %v1861_v57  ;;  %v2261_v43 = vld [vmem:[#allocation16 + $0x48] sm:$0xff] }
 0x28e   : > { %v2337_v46 = vld [vmem:[#allocation16 + $0x2a8] sm:$0xff] }
 0x28f   : > { %v1882_v10 = vadd.f32 %v1870_v7, %v1864_v33  ;;  %v4616_v5 = vmax.f32 %v1879_v29, 0.0  ;;  %v2341_v7 = vld [vmem:[#allocation16 + $0x2c8] sm:$0xff]  ;;  %v2310_v33 = vld [vmem:[#allocation16 + $0x1d0] sm:$0xff] }
 0x290   : > { %v1832_v60 = vpop.f32.mrf.mxu3  ;;  %v2257_v49 = vld [vmem:[#allocation16 + $0x28] sm:$0xff]  ;;  %v2294_v29 = vld [vmem:[#allocation16 + $0x150] sm:$0xff] }
 0x291   : > { %v4612_v34 = vmax.f32 %v1882_v10, 0.0  ;;  %v1856_v61 = vadd.f32 %v1855_v63, %v1832_v60  ;;  %v2333_v52 = vld [vmem:[#allocation16 + $0x288] sm:$0xff]  ;;  %v2302_v63 = vld [vmem:[#allocation16 + $0x190] sm:$0xff] }
 0x292   : > { %v2253_v53 = vld [vmem:[#allocation16 + $0x8] sm:$0xff]  ;;  %v2378_v60 = vld [vmem:[#allocation16 + $0x3f0] sm:$0xff] }
 0x293   : > { %v1865_v62 = vadd.f32 %v1856_v61, %v1543_v35  ;;  %v1906_v14 = vadd.f32 %v4612_v34, %v4610_v36  ;;  %v2329_v54 = vld [vmem:[#allocation16 + $0x268] sm:$0xff]  ;;  %v2298_v35 = vld [vmem:[#allocation16 + $0x170] sm:$0xff] }
 0x294   : > { %v2325_v50 = vld [vmem:[#allocation16 + $0x248] sm:$0xff]  ;;  %v2374_v61 = vld [vmem:[#allocation16 + $0x3d0] sm:$0xff] }
 0x295   : > { %v1883_v30 = vadd.f32 %v1871_v26, %v1865_v62  ;;  %v1907_v2 = vrot.slane %v1906_v14, 4  ;;  %v2321_v57 = vld [vmem:[#allocation16 + $0x228] sm:$0xff]  ;;  %v2306_v26 = vld [vmem:[#allocation16 + $0x1b0] sm:$0xff] }
 0x296   : > { %v2317_v10 = vld [vmem:[#allocation16 + $0x208] sm:$0xff]  ;;  %v2370_v62 = vld [vmem:[#allocation16 + $0x3b0] sm:$0xff] }
 0x297   : > { %v4618_v1 = vmax.f32 %v1883_v30, 0.0  ;;  %v1908_v6 = vadd.f32 %v1907_v2, %v1906_v14  ;;  %v2290_v14 = vld [vmem:[#allocation16 + $0x130] sm:$0xff] }
 0x298   : > { %v2366_v30 = vld [vmem:[#allocation16 + $0x390] sm:$0xff] }
 0x299   : > { %v1909_v55 = vrot.slane %v1908_v6, 2  ;;  %v1913_v28 = vadd.f32 %v4618_v1, %v4616_v5  ;;  %v2286_v2 = vld [vmem:[#allocation16 + $0x110] sm:$0xff] }
 0x29b   : > { %v1910_v58 = vadd.f32 %v1909_v55, %v1908_v6  ;;  %v1914_v51 = vrot.slane %v1913_v28, 4  ;;  %v2362_v6 = vld [vmem:[#allocation16 + $0x370] sm:$0xff] }
 0x29c   : > { %v2282_v55 = vld [vmem:[#allocation16 + $0xf0] sm:$0xff] }
 0x29d   : > { %v1911_v47 = vrot.slane %v1910_v58, 1  ;;  %v1915_v8 = vadd.f32 %v1914_v51, %v1913_v28  ;;  %v2358_v28 = vld [vmem:[#allocation16 + $0x350] sm:$0xff] }
 0x29e   : > { %v2354_v51 = vld [vmem:[#allocation16 + $0x330] sm:$0xff] }
 0x29f   : > { %v1912_v12 = vadd.f32 %v1911_v47, %v1910_v58  ;;  %v1916_v15 = vrot.slane %v1915_v8, 2  ;;  %v2278_v58 = vld [vmem:[#allocation16 + $0xd0] sm:$0xff] }
 0x2a0   : > { %v2274_v47 = vld [vmem:[#allocation16 + $0xb0] sm:$0xff] }
 0x2a1   : > { %2041 = vmatmul.f32.vlgmr.msra.gmra.mxu3 %v1912_v12  ;;  %v1917_v13 = vadd.f32 %v1916_v15, %v1915_v8  ;;  %v2350_v8 = vld [vmem:[#allocation16 + $0x310] sm:$0xff] }
 0x2a2   : > { %2610 = vmatpush.msra.mxu3 %v2313_v59  ;;  %v2270_v12 = vld [vmem:[#allocation16 + $0x90] sm:$0xff] }
 0x2a3   : > { %v1918_v56 = vrot.slane %v1917_v13, 1  ;;  %v2346_v59 = vld [vmem:[#allocation16 + $0x2f0] sm:$0xff] }
 0x2a4   : > { %2611 = vmatpush.msra.mxu3 %v2309_v22  ;;  %v2266_v15 = vld [vmem:[#allocation16 + $0x70] sm:$0xff] }
 0x2a5   : > { %v1919_v20 = vadd.f32 %v1918_v56, %v1917_v13  ;;  %v2342_v22 = vld [vmem:[#allocation16 + $0x2d0] sm:$0xff] }
 0x2a6   : > { %2612 = vmatpush.msra.mxu3 %v2305_v18  ;;  %v2262_v13 = vld [vmem:[#allocation16 + $0x50] sm:$0xff] }
 0x2a7   : > { %2061 = vmatmul.f32.vlgmr.msrb.gmra.mxu0 %v1919_v20  ;;  %v2338_v18 = vld [vmem:[#allocation16 + $0x2b0] sm:$0xff] }
 0x2a8   : > { %2613 = vmatpush.msra.mxu3 %v2301_v21  ;;  %2633 = vmatpush.msrb.mxu0 %v2377_v9  ;;  %v2258_v56 = vld [vmem:[#allocation16 + $0x30] sm:$0xff] }
 0x2a9   : > { %2534 = vmatmul.f32.vlgmr.msrb.gmra.mxu3 %v4584_v45  ;;  %v2334_v20 = vld [vmem:[#allocation16 + $0x290] sm:$0xff] }
 0x2aa   : > { %2614 = vmatpush.msra.mxu3 %v2297_v23  ;;  %2634 = vmatpush.msrb.mxu0 %v2373_v48  ;;  %v2254_v21 = vld [vmem:[#allocation16 + $0x10] sm:$0xff]  ;;  %v2315_v23 = vld [vmem:[#allocation16 + $0x1f8] sm:$0xff] }
 0x2ab   : > { %v2330_v9 = vld [vmem:[#allocation16 + $0x270] sm:$0xff] }
 0x2ac   : > { %2615 = vmatpush.msra.mxu3 %v2293_v17  ;;  %2635 = vmatpush.msrb.mxu0 %v2369_v24  ;;  %v2326_v48 = vld [vmem:[#allocation16 + $0x250] sm:$0xff]  ;;  %v2311_v17 = vld [vmem:[#allocation16 + $0x1d8] sm:$0xff] }
 0x2ad   : > { %v2322_v24 = vld [vmem:[#allocation16 + $0x230] sm:$0xff] }
 0x2ae   : > { %2616 = vmatpush.msra.mxu3 %v2289_v25  ;;  %2636 = vmatpush.msrb.mxu0 %v2365_v27  ;;  %v2307_v25 = vld [vmem:[#allocation16 + $0x1b8] sm:$0xff]  ;;  %v2318_v27 = vld [vmem:[#allocation16 + $0x210] sm:$0xff] }
 0x2af   : > { %2557 = vmatmul.f32.vlgmr.msra.gmra.mxu0 %v4590_v41 }
 0x2b0   : > { %2617 = vmatpush.msra.mxu3 %v2285_v31  ;;  %2637 = vmatpush.msrb.mxu0 %v2361_v32  ;;  %v2303_v31 = vld [vmem:[#allocation16 + $0x198] sm:$0xff] }
 0x2b1   : > { %2537 = vmatmul.f32.gmra.mxu3 %v4586_v37  ;;  %v2379_v32 = vld [vmem:[#allocation16 + $0x3f8] sm:$0xff] }
 0x2b2   : > { %2618 = vmatpush.msra.mxu3 %v2281_v38  ;;  %2638 = vmatpush.msrb.mxu0 %v2357_v40  ;;  %v2299_v38 = vld [vmem:[#allocation16 + $0x178] sm:$0xff] }
 0x2b3   : > { %v2375_v40 = vld [vmem:[#allocation16 + $0x3d8] sm:$0xff] }
 0x2b4   : > { %2619 = vmatpush.msra.mxu3 %v2277_v3  ;;  %2639 = vmatpush.msrb.mxu0 %v2353_v4  ;;  %v2295_v3 = vld [vmem:[#allocation16 + $0x158] sm:$0xff] }
 0x2b5   : > { %v2371_v4 = vld [vmem:[#allocation16 + $0x3b8] sm:$0xff] }
 0x2b6   : > { %2620 = vmatpush.msra.mxu3 %v2273_v19  ;;  %2640 = vmatpush.msrb.mxu0 %v2349_v42  ;;  %v2291_v19 = vld [vmem:[#allocation16 + $0x138] sm:$0xff] }
 0x2b7   : > { %2560 = vmatmul.f32.gmra.mxu0 %v4592_v0  ;;  %v2367_v42 = vld [vmem:[#allocation16 + $0x398] sm:$0xff] }
 0x2b8   : > { %2621 = vmatpush.msra.mxu3 %v2269_v11  ;;  %2641 = vmatpush.msrb.mxu0 %v2345_v44  ;;  %v2287_v11 = vld [vmem:[#allocation16 + $0x118] sm:$0xff] }
 0x2b9   : > { %v2363_v44 = vld [vmem:[#allocation16 + $0x378] sm:$0xff] }
 0x2ba   : > { %2622 = vmatpush.msra.mxu3 %v2265_v16  ;;  %2642 = vmatpush.msrb.mxu0 %v2341_v7  ;;  %v2283_v16 = vld [vmem:[#allocation16 + $0xf8] sm:$0xff] }
 0x2bb   : > { %v2359_v7 = vld [vmem:[#allocation16 + $0x358] sm:$0xff] }
 0x2bc   : > { %2623 = vmatpush.msra.mxu3 %v2261_v43  ;;  %2643 = vmatpush.msrb.mxu0 %v2337_v46  ;;  %v2279_v43 = vld [vmem:[#allocation16 + $0xd8] sm:$0xff] }
 0x2bd   : > { %v2355_v46 = vld [vmem:[#allocation16 + $0x338] sm:$0xff] }
 0x2be   : > { %2624 = vmatpush.msra.mxu3 %v2257_v49  ;;  %2644 = vmatpush.msrb.mxu0 %v2333_v52  ;;  %v2275_v49 = vld [vmem:[#allocation16 + $0xb8] sm:$0xff] }
 0x2bf   : > { %v2351_v52 = vld [vmem:[#allocation16 + $0x318] sm:$0xff] }
 0x2c0   : > { %2625 = vmatpush.msra.mxu3 %v2253_v53  ;;  %2645 = vmatpush.msrb.mxu0 %v2329_v54  ;;  %v2271_v53 = vld [vmem:[#allocation16 + $0x98] sm:$0xff] }
 0x2c1   : > { %2626 = vmatmul.f32.vlgmr.msra.gmra.mxu3 %v4584_v45  ;;  %v2347_v54 = vld [vmem:[#allocation16 + $0x2f8] sm:$0xff] }
 0x2c2   : > { %2702 = vmatpush.msrb.mxu3 %v2314_v39  ;;  %2646 = vmatpush.msrb.mxu0 %v2325_v50  ;;  %v2267_v39 = vld [vmem:[#allocation16 + $0x78] sm:$0xff] }
 0x2c3   : > { %v2343_v50 = vld [vmem:[#allocation16 + $0x2d8] sm:$0xff] }
 0x2c4   : > { %2703 = vmatpush.msrb.mxu3 %v2310_v33  ;;  %2647 = vmatpush.msrb.mxu0 %v2321_v57  ;;  %v2263_v33 = vld [vmem:[#allocation16 + $0x58] sm:$0xff] }
 0x2c5   : > { %v2339_v57 = vld [vmem:[#allocation16 + $0x2b8] sm:$0xff] }
 0x2c6   : > { %2704 = vmatpush.msrb.mxu3 %v2306_v26  ;;  %2648 = vmatpush.msrb.mxu0 %v2317_v10  ;;  %v2259_v26 = vld [vmem:[#allocation16 + $0x38] sm:$0xff] }
 0x2c7   : > { %2649 = vmatmul.f32.vlgmr.msrb.gmra.mxu0 %v4590_v41  ;;  %v2335_v10 = vld [vmem:[#allocation16 + $0x298] sm:$0xff] }
 0x2c8   : > { %2705 = vmatpush.msrb.mxu3 %v2302_v63  ;;  %2725 = vmatpush.msra.mxu0 %v2378_v60  ;;  %v2255_v63 = vld [vmem:[#allocation16 + $0x18] sm:$0xff] }
 0x2c9   : > { %2629 = vmatmul.f32.gmra.mxu3 %v4586_v37  ;;  %v2331_v60 = vld [vmem:[#allocation16 + $0x278] sm:$0xff] }
 0x2ca   : > { %2706 = vmatpush.msrb.mxu3 %v2298_v35  ;;  %2726 = vmatpush.msra.mxu0 %v2374_v61  ;;  %v2327_v35 = vld [vmem:[#allocation16 + $0x258] sm:$0xff] }
 0x2cb   : > { %v2323_v61 = vld [vmem:[#allocation16 + $0x238] sm:$0xff] }
 0x2cc   : > { %2707 = vmatpush.msrb.mxu3 %v2294_v29  ;;  %2727 = vmatpush.msra.mxu0 %v2370_v62  ;;  %v2319_v29 = vld [vmem:[#allocation16 + $0x218] sm:$0xff] }
 0x2cd   : > { %v2066_v62 = vld [vmem:[#allocation13] sm:$0xff] }
 0x2ce   : > { %2708 = vmatpush.msrb.mxu3 %v2290_v14  ;;  %2728 = vmatpush.msra.mxu0 %v2366_v30  ;;  %2069 = vst [vmem:[#allocation1] ss:$4 sm:$0xff] %v2066_v62  ;;  %v2489_v62 = vld [vmem:[#allocation16 + $0x768] sm:$0xff] }
 0x2cf   : > { %2652 = vmatmul.f32.gmra.mxu0 %v4592_v0 }
 0x2d0   : > { %2709 = vmatpush.msrb.mxu3 %v2286_v2  ;;  %2729 = vmatpush.msra.mxu0 %v2362_v6 }
 0x2d2   : > { %2710 = vmatpush.msrb.mxu3 %v2282_v55  ;;  %2730 = vmatpush.msra.mxu0 %v2358_v28  ;;  %v1984_v55 = vld [vmem:[#allocation11] sm:$0x1] }
 0x2d4   : > { %2711 = vmatpush.msrb.mxu3 %v2278_v58  ;;  %2731 = vmatpush.msra.mxu0 %v2354_v51 }
 0x2d5   : > { %v2070_v14 = vld.sshfl [vmem:[#allocation1] sm:$0xff pattern:$0x73625140]  ;;  %v2071_v30 = vld.sshfl [vmem:[#allocation1 + $0x8] sm:$0xff pattern:$0x73625140] }
 0x2d6   : > { %2712 = vmatpush.msrb.mxu3 %v2274_v47  ;;  %2732 = vmatpush.msra.mxu0 %v2350_v8  ;;  %v2072_v2 = vld.sshfl [vmem:[#allocation1 + $0x10] sm:$0xff pattern:$0x73625140]  ;;  %v2073_v6 = vld.sshfl [vmem:[#allocation1 + $0x18] sm:$0xff pattern:$0x73625140] }
 0x2d7   : > { %3313 = vmatpush.msk.msrb.mxu1 %vm2087_vm5, %v2070_v14  ;;  %3315 = vmatpush.msk.msrb.mxu2 %vm2087_vm5, %v2071_v30  ;;  %v2421_v14 = vld [vmem:[#allocation16 + $0x548] sm:$0xff] }
 0x2d8   : > { %2713 = vmatpush.msrb.mxu3 %v2270_v12  ;;  %2733 = vmatpush.msra.mxu0 %v2346_v59  ;;  %v2485_v30 = vld [vmem:[#allocation16 + $0x748] sm:$0xff] }
 0x2d9   : > { %3317 = vmatpush.msk.msra.mxu1 %vm2087_vm5, %v2072_v2  ;;  %3319 = vmatpush.msk.msra.mxu2 %vm2087_vm5, %v2073_v6  ;;  %v2417_v2 = vld [vmem:[#allocation16 + $0x528] sm:$0xff] }
 0x2da   : > { %2714 = vmatpush.msrb.mxu3 %v2266_v15  ;;  %2734 = vmatpush.msra.mxu0 %v2342_v22  ;;  %v2481_v6 = vld [vmem:[#allocation16 + $0x728] sm:$0xff] }
 0x2dc   : > { %2715 = vmatpush.msrb.mxu3 %v2262_v13  ;;  %2735 = vmatpush.msra.mxu0 %v2338_v18  ;;  %v2440_v13 = vld [vmem:[#allocation16 + $0x5e0] sm:$0xff] }
 0x2dd   : > { %v2504_v18 = vld [vmem:[#allocation16 + $0x7e0] sm:$0xff] }
 0x2de   : > { %2716 = vmatpush.msrb.mxu3 %v2258_v56  ;;  %2736 = vmatpush.msra.mxu0 %v2334_v20  ;;  %v2436_v56 = vld [vmem:[#allocation16 + $0x5c0] sm:$0xff] }
 0x2df   : > { %v2500_v20 = vld [vmem:[#allocation16 + $0x7c0] sm:$0xff] }
 0x2e0   : > { %2717 = vmatpush.msrb.mxu3 %v2254_v21  ;;  %2737 = vmatpush.msra.mxu0 %v2330_v9  ;;  %v2432_v21 = vld [vmem:[#allocation16 + $0x5a0] sm:$0xff] }
 0x2e1   : > { %2718 = vmatmul.f32.vlgmr.msrb.gmra.mxu3 %v4584_v45  ;;  %v2496_v9 = vld [vmem:[#allocation16 + $0x7a0] sm:$0xff] }
 0x2e2   : > { %2794 = vmatpush.msra.mxu3 %v2315_v23  ;;  %2738 = vmatpush.msra.mxu0 %v2326_v48  ;;  %v2428_v23 = vld [vmem:[#allocation16 + $0x580] sm:$0xff] }
 0x2e3   : > { %v2492_v48 = vld [vmem:[#allocation16 + $0x780] sm:$0xff] }
 0x2e4   : > { %2795 = vmatpush.msra.mxu3 %v2311_v17  ;;  %2739 = vmatpush.msra.mxu0 %v2322_v24  ;;  %v2424_v17 = vld [vmem:[#allocation16 + $0x560] sm:$0xff] }
 0x2e5   : > { %v2488_v24 = vld [vmem:[#allocation16 + $0x760] sm:$0xff] }
 0x2e6   : > { %2796 = vmatpush.msra.mxu3 %v2307_v25  ;;  %2740 = vmatpush.msra.mxu0 %v2318_v27  ;;  %v2420_v25 = vld [vmem:[#allocation16 + $0x540] sm:$0xff] }
 0x2e7   : > { %2741 = vmatmul.f32.vlgmr.msra.gmra.mxu0 %v4590_v41  ;;  %v2484_v27 = vld [vmem:[#allocation16 + $0x740] sm:$0xff] }
 0x2e8   : > { %2797 = vmatpush.msra.mxu3 %v2303_v31  ;;  %2817 = vmatpush.msrb.mxu0 %v2379_v32  ;;  %v2416_v31 = vld [vmem:[#allocation16 + $0x520] sm:$0xff] }
 0x2e9   : > { %2721 = vmatmul.f32.gmra.mxu3 %v4586_v37  ;;  %v2480_v32 = vld [vmem:[#allocation16 + $0x720] sm:$0xff] }
 0x2ea   : > { %2798 = vmatpush.msra.mxu3 %v2299_v38  ;;  %2818 = vmatpush.msrb.mxu0 %v2375_v40  ;;  %v2412_v38 = vld [vmem:[#allocation16 + $0x500] sm:$0xff] }
 0x2eb   : > { %v2476_v40 = vld [vmem:[#allocation16 + $0x700] sm:$0xff] }
 0x2ec   : > { %2799 = vmatpush.msra.mxu3 %v2295_v3  ;;  %2819 = vmatpush.msrb.mxu0 %v2371_v4  ;;  %v2408_v3 = vld [vmem:[#allocation16 + $0x4e0] sm:$0xff] }
 0x2ed   : > { %v2472_v4 = vld [vmem:[#allocation16 + $0x6e0] sm:$0xff] }
 0x2ee   : > { %2800 = vmatpush.msra.mxu3 %v2291_v19  ;;  %2820 = vmatpush.msrb.mxu0 %v2367_v42  ;;  %v2404_v19 = vld [vmem:[#allocation16 + $0x4c0] sm:$0xff] }
 0x2ef   : > { %2744 = vmatmul.f32.gmra.mxu0 %v4592_v0  ;;  %v2468_v42 = vld [vmem:[#allocation16 + $0x6c0] sm:$0xff] }
 0x2f0   : > { %2801 = vmatpush.msra.mxu3 %v2287_v11  ;;  %2821 = vmatpush.msrb.mxu0 %v2363_v44  ;;  %v2400_v11 = vld [vmem:[#allocation16 + $0x4a0] sm:$0xff] }
 0x2f1   : > { %v2464_v44 = vld [vmem:[#allocation16 + $0x6a0] sm:$0xff] }
 0x2f2   : > { %2802 = vmatpush.msra.mxu3 %v2283_v16  ;;  %2822 = vmatpush.msrb.mxu0 %v2359_v7  ;;  %v2396_v16 = vld [vmem:[#allocation16 + $0x480] sm:$0xff] }
 0x2f3   : > { %v2460_v7 = vld [vmem:[#allocation16 + $0x680] sm:$0xff] }
 0x2f4   : > { %2803 = vmatpush.msra.mxu3 %v2279_v43  ;;  %2823 = vmatpush.msrb.mxu0 %v2355_v46  ;;  %v2392_v43 = vld [vmem:[#allocation16 + $0x460] sm:$0xff] }
 0x2f5   : > { %v2456_v46 = vld [vmem:[#allocation16 + $0x660] sm:$0xff] }
 0x2f6   : > { %2804 = vmatpush.msra.mxu3 %v2275_v49  ;;  %2824 = vmatpush.msrb.mxu0 %v2351_v52  ;;  %v2388_v49 = vld [vmem:[#allocation16 + $0x440] sm:$0xff] }
 0x2f7   : > { %v2452_v52 = vld [vmem:[#allocation16 + $0x640] sm:$0xff] }
 0x2f8   : > { %2805 = vmatpush.msra.mxu3 %v2271_v53  ;;  %2825 = vmatpush.msrb.mxu0 %v2347_v54  ;;  %v2384_v53 = vld [vmem:[#allocation16 + $0x420] sm:$0xff] }
 0x2f9   : > { %v2448_v54 = vld [vmem:[#allocation16 + $0x620] sm:$0xff] }
 0x2fa   : > { %2806 = vmatpush.msra.mxu3 %v2267_v39  ;;  %2826 = vmatpush.msrb.mxu0 %v2343_v50  ;;  %v2380_v39 = vld [vmem:[#allocation16 + $0x400] sm:$0xff] }
 0x2fb   : > { %v2444_v50 = vld [vmem:[#allocation16 + $0x600] sm:$0xff] }
 0x2fc   : > { %2807 = vmatpush.msra.mxu3 %v2263_v33  ;;  %2827 = vmatpush.msrb.mxu0 %v2339_v57  ;;  %v2441_v33 = vld [vmem:[#allocation16 + $0x5e8] sm:$0xff] }
 0x2fd   : > { %v2002_v28 = vpop.f32.mrf.mxu1  ;;  %v2505_v57 = vld [vmem:[#allocation16 + $0x7e8] sm:$0xff] }
 0x2fe   : > { %2808 = vmatpush.msra.mxu3 %v2259_v26  ;;  %2828 = vmatpush.msrb.mxu0 %v2335_v10  ;;  %v2003_v51 = vadd.f32 %v2002_v28, %v1984_v55  ;;  %v2437_v26 = vld [vmem:[#allocation16 + $0x5c8] sm:$0xff] }
 0x2ff   : > { %v2501_v10 = vld [vmem:[#allocation16 + $0x7c8] sm:$0xff] }
 0x300   : > { %2809 = vmatpush.msra.mxu3 %v2255_v63  ;;  %2829 = vmatpush.msrb.mxu0 %v2331_v60  ;;  %v2433_v63 = vld [vmem:[#allocation16 + $0x5a8] sm:$0xff] }
 0x301   : > { %2810 = vmatmul.f32.vlgmr.msra.gmra.mxu3 %v4584_v45  ;;  %v2497_v60 = vld [vmem:[#allocation16 + $0x7a8] sm:$0xff] }
 0x302   : > { %2830 = vmatpush.msrb.mxu0 %v2327_v35  ;;  %v2429_v35 = vld [vmem:[#allocation16 + $0x588] sm:$0xff] }
 0x303   : > { %v2413_v55 = vld [vmem:[#allocation16 + $0x508] sm:$0xff] }
 0x304   : > { %2831 = vmatpush.msrb.mxu0 %v2323_v61  ;;  %v2493_v61 = vld [vmem:[#allocation16 + $0x788] sm:$0xff] }
 0x305   : > { %v2477_v28 = vld [vmem:[#allocation16 + $0x708] sm:$0xff] }
 0x306   : > { %2832 = vmatpush.msrb.mxu0 %v2319_v29  ;;  %v2425_v29 = vld [vmem:[#allocation16 + $0x568] sm:$0xff] }
 0x307   : > { %2833 = vmatmul.f32.vlgmr.msrb.gmra.mxu0 %v4590_v41 }
 0x309   : > { %2813 = vmatmul.f32.gmra.mxu3 %v4586_v37  ;;  %v2022_v58 = vpop.f32.mrf.mxu2 }
 0x30a   : > { %v2023_v47 = vadd.f32 %v2022_v58, %v2003_v51  ;;  %v2409_v58 = vld [vmem:[#allocation16 + $0x4e8] sm:$0xff] }
 0x30b   : > { %v2473_v51 = vld [vmem:[#allocation16 + $0x6e8] sm:$0xff] }
 0x30f   : > { %2836 = vmatmul.f32.gmra.mxu0 %v4592_v0 }
 0x324   : > { %v2042_v8 = vpop.f32.mrf.mxu3  ;;  %v2062_v59 = vpop.f32.mrf.mxu0 }
 0x325   : > { %v2043_v12 = vadd.f32 %v2042_v8, %v2023_v47  ;;  %v2405_v47 = vld [vmem:[#allocation16 + $0x4c8] sm:$0xff] }
 0x326   : > { %v2469_v8 = vld [vmem:[#allocation16 + $0x6c8] sm:$0xff] }
 0x327   : > { %v2063_v15 = vadd.f32 %v2062_v59, %v2043_v12  ;;  %v2401_v12 = vld [vmem:[#allocation16 + $0x4a8] sm:$0xff] }
 0x328   : > { %v2465_v59 = vld [vmem:[#allocation16 + $0x6a8] sm:$0xff] }
 0x329   : > { %v2065_v22 = vmax.f32 %v2063_v15, 0.0  ;;  %v2397_v15 = vld [vmem:[#allocation16 + $0x488] sm:$0xff] }
 0x32b   : > { %3314 = vmatmul.msk.f32.vlgmr.msrb.gmra.mxu1 %vm2083_vm6, %v2065_v22  ;;  %3316 = vmatmul.msk.f32.vlgmr.msrb.gmra.mxu2 %vm2083_vm6, %v2065_v22 }
 0x32c   : > { %2564 = vmatpush.msrb.mxu1 %v2440_v13  ;;  %2587 = vmatpush.msrb.mxu2 %v2504_v18  ;;  %v2393_v13 = vld [vmem:[#allocation16 + $0x468] sm:$0xff] }
 0x32d   : > { %v2457_v18 = vld [vmem:[#allocation16 + $0x668] sm:$0xff] }
 0x32e   : > { %2565 = vmatpush.msrb.mxu1 %v2436_v56  ;;  %2588 = vmatpush.msrb.mxu2 %v2500_v20  ;;  %v2389_v56 = vld [vmem:[#allocation16 + $0x448] sm:$0xff] }
 0x32f   : > { %v2453_v20 = vld [vmem:[#allocation16 + $0x648] sm:$0xff] }
 0x330   : > { %2566 = vmatpush.msrb.mxu1 %v2432_v21  ;;  %2589 = vmatpush.msrb.mxu2 %v2496_v9  ;;  %v2385_v21 = vld [vmem:[#allocation16 + $0x428] sm:$0xff] }
 0x331   : > { %v2449_v9 = vld [vmem:[#allocation16 + $0x628] sm:$0xff] }
 0x332   : > { %2567 = vmatpush.msrb.mxu1 %v2428_v23  ;;  %2590 = vmatpush.msrb.mxu2 %v2492_v48  ;;  %v2381_v23 = vld [vmem:[#allocation16 + $0x408] sm:$0xff] }
 0x333   : > { %3318 = vmatmul.msk.f32.vlgmr.msra.gmra.mxu1 %vm2083_vm6, %v2065_v22  ;;  %3320 = vmatmul.msk.f32.vlgmr.msra.gmra.mxu2 %vm2083_vm6, %v2065_v22  ;;  %v2461_v22 = vld [vmem:[#allocation16 + $0x688] sm:$0xff] }
 0x334   : > { %2568 = vmatpush.msrb.mxu1 %v2424_v17  ;;  %2591 = vmatpush.msrb.mxu2 %v2488_v24  ;;  %v2445_v48 = vld [vmem:[#allocation16 + $0x608] sm:$0xff]  ;;  %v2442_v17 = vld [vmem:[#allocation16 + $0x5f0] sm:$0xff] }
 0x335   : > { %v2506_v24 = vld [vmem:[#allocation16 + $0x7f0] sm:$0xff] }
 0x336   : > { %2569 = vmatpush.msrb.mxu1 %v2420_v25  ;;  %2592 = vmatpush.msrb.mxu2 %v2484_v27  ;;  %v2438_v25 = vld [vmem:[#allocation16 + $0x5d0] sm:$0xff] }
 0x337   : > { %v2502_v27 = vld [vmem:[#allocation16 + $0x7d0] sm:$0xff] }
 0x338   : > { %2570 = vmatpush.msrb.mxu1 %v2416_v31  ;;  %2593 = vmatpush.msrb.mxu2 %v2480_v32  ;;  %v2434_v31 = vld [vmem:[#allocation16 + $0x5b0] sm:$0xff] }
 0x339   : > { %v2498_v32 = vld [vmem:[#allocation16 + $0x7b0] sm:$0xff] }
 0x33a   : > { %2571 = vmatpush.msrb.mxu1 %v2412_v38  ;;  %2594 = vmatpush.msrb.mxu2 %v2476_v40  ;;  %v2430_v38 = vld [vmem:[#allocation16 + $0x590] sm:$0xff] }
 0x33b   : > { %v2494_v40 = vld [vmem:[#allocation16 + $0x790] sm:$0xff] }
 0x33c   : > { %2572 = vmatpush.msrb.mxu1 %v2408_v3  ;;  %2595 = vmatpush.msrb.mxu2 %v2472_v4  ;;  %v2426_v3 = vld [vmem:[#allocation16 + $0x570] sm:$0xff] }
 0x33d   : > { %v2490_v4 = vld [vmem:[#allocation16 + $0x770] sm:$0xff] }
 0x33e   : > { %2573 = vmatpush.msrb.mxu1 %v2404_v19  ;;  %2596 = vmatpush.msrb.mxu2 %v2468_v42  ;;  %v2422_v19 = vld [vmem:[#allocation16 + $0x550] sm:$0xff] }
 0x33f   : > { %v2486_v42 = vld [vmem:[#allocation16 + $0x750] sm:$0xff] }
 0x340   : > { %2574 = vmatpush.msrb.mxu1 %v2400_v11  ;;  %2597 = vmatpush.msrb.mxu2 %v2464_v44  ;;  %v2418_v11 = vld [vmem:[#allocation16 + $0x530] sm:$0xff] }
 0x341   : > { %v2482_v44 = vld [vmem:[#allocation16 + $0x730] sm:$0xff] }
 0x342   : > { %2575 = vmatpush.msrb.mxu1 %v2396_v16  ;;  %2598 = vmatpush.msrb.mxu2 %v2460_v7  ;;  %v2414_v16 = vld [vmem:[#allocation16 + $0x510] sm:$0xff] }
 0x343   : > { %v2478_v7 = vld [vmem:[#allocation16 + $0x710] sm:$0xff] }
 0x344   : > { %2576 = vmatpush.msrb.mxu1 %v2392_v43  ;;  %2599 = vmatpush.msrb.mxu2 %v2456_v46  ;;  %v2410_v43 = vld [vmem:[#allocation16 + $0x4f0] sm:$0xff] }
 0x345   : > { %v2474_v46 = vld [vmem:[#allocation16 + $0x6f0] sm:$0xff] }
 0x346   : > { %2577 = vmatpush.msrb.mxu1 %v2388_v49  ;;  %2600 = vmatpush.msrb.mxu2 %v2452_v52  ;;  %v2406_v49 = vld [vmem:[#allocation16 + $0x4d0] sm:$0xff] }
 0x347   : > { %v2470_v52 = vld [vmem:[#allocation16 + $0x6d0] sm:$0xff] }
 0x348   : > { %2578 = vmatpush.msrb.mxu1 %v2384_v53  ;;  %2601 = vmatpush.msrb.mxu2 %v2448_v54  ;;  %v2402_v53 = vld [vmem:[#allocation16 + $0x4b0] sm:$0xff] }
 0x349   : > { %v2466_v54 = vld [vmem:[#allocation16 + $0x6b0] sm:$0xff] }
 0x34a   : > { %2579 = vmatpush.msrb.mxu1 %v2380_v39  ;;  %2602 = vmatpush.msrb.mxu2 %v2444_v50  ;;  %v2398_v39 = vld [vmem:[#allocation16 + $0x490] sm:$0xff] }
 0x34b   : > { %2580 = vmatmul.f32.vlgmr.msrb.gmra.mxu1 %v4610_v36  ;;  %2603 = vmatmul.f32.vlgmr.msrb.gmra.mxu2 %v4616_v5  ;;  %v2462_v50 = vld [vmem:[#allocation16 + $0x690] sm:$0xff] }
 0x34c   : > { %2656 = vmatpush.msra.mxu1 %v2441_v33  ;;  %2679 = vmatpush.msra.mxu2 %v2505_v57  ;;  %v2394_v33 = vld [vmem:[#allocation16 + $0x470] sm:$0xff] }
 0x34d   : > { %v2458_v57 = vld [vmem:[#allocation16 + $0x670] sm:$0xff] }
 0x34e   : > { %2657 = vmatpush.msra.mxu1 %v2437_v26  ;;  %2680 = vmatpush.msra.mxu2 %v2501_v10  ;;  %v2390_v26 = vld [vmem:[#allocation16 + $0x450] sm:$0xff] }
 0x34f   : > { %v2454_v10 = vld [vmem:[#allocation16 + $0x650] sm:$0xff] }
 0x350   : > { %2658 = vmatpush.msra.mxu1 %v2433_v63  ;;  %2681 = vmatpush.msra.mxu2 %v2497_v60  ;;  %v2386_v63 = vld [vmem:[#allocation16 + $0x430] sm:$0xff] }
 0x351   : > { %v2450_v60 = vld [vmem:[#allocation16 + $0x630] sm:$0xff] }
 0x352   : > { %2659 = vmatpush.msra.mxu1 %v2429_v35  ;;  %2682 = vmatpush.msra.mxu2 %v2493_v61  ;;  %v2382_v35 = vld [vmem:[#allocation16 + $0x410] sm:$0xff] }
 0x353   : > { %2583 = vmatmul.f32.gmra.mxu1 %v4612_v34  ;;  %2606 = vmatmul.f32.gmra.mxu2 %v4618_v1  ;;  %v2446_v61 = vld [vmem:[#allocation16 + $0x610] sm:$0xff] }
 0x354   : > { %2660 = vmatpush.msra.mxu1 %v2425_v29  ;;  %2683 = vmatpush.msra.mxu2 %v2489_v62  ;;  %v2443_v29 = vld [vmem:[#allocation16 + $0x5f8] sm:$0xff] }
 0x355   : > { %v2507_v62 = vld [vmem:[#allocation16 + $0x7f8] sm:$0xff] }
 0x356   : > { %2661 = vmatpush.msra.mxu1 %v2421_v14  ;;  %2684 = vmatpush.msra.mxu2 %v2485_v30  ;;  %v2439_v14 = vld [vmem:[#allocation16 + $0x5d8] sm:$0xff] }
 0x357   : > { %v2503_v30 = vld [vmem:[#allocation16 + $0x7d8] sm:$0xff] }
 0x358   : > { %2662 = vmatpush.msra.mxu1 %v2417_v2  ;;  %2685 = vmatpush.msra.mxu2 %v2481_v6  ;;  %v2435_v2 = vld [vmem:[#allocation16 + $0x5b8] sm:$0xff] }
 0x359   : > { %v2499_v6 = vld [vmem:[#allocation16 + $0x7b8] sm:$0xff] }
 0x35a   : > { %2663 = vmatpush.msra.mxu1 %v2413_v55  ;;  %2686 = vmatpush.msra.mxu2 %v2477_v28  ;;  %v2431_v55 = vld [vmem:[#allocation16 + $0x598] sm:$0xff] }
 0x35b   : > { %v2495_v28 = vld [vmem:[#allocation16 + $0x798] sm:$0xff] }
 0x35c   : > { %2664 = vmatpush.msra.mxu1 %v2409_v58  ;;  %2687 = vmatpush.msra.mxu2 %v2473_v51  ;;  %v2427_v58 = vld [vmem:[#allocation16 + $0x578] sm:$0xff] }
 0x35d   : > { %v2491_v51 = vld [vmem:[#allocation16 + $0x778] sm:$0xff] }
 0x35e   : > { %2665 = vmatpush.msra.mxu1 %v2405_v47  ;;  %2688 = vmatpush.msra.mxu2 %v2469_v8  ;;  %v2423_v47 = vld [vmem:[#allocation16 + $0x558] sm:$0xff] }
 0x35f   : > { %v2487_v8 = vld [vmem:[#allocation16 + $0x758] sm:$0xff] }
 0x360   : > { %2666 = vmatpush.msra.mxu1 %v2401_v12  ;;  %2689 = vmatpush.msra.mxu2 %v2465_v59  ;;  %v2419_v12 = vld [vmem:[#allocation16 + $0x538] sm:$0xff] }
 0x361   : > { %v2483_v59 = vld [vmem:[#allocation16 + $0x738] sm:$0xff] }
 0x362   : > { %2667 = vmatpush.msra.mxu1 %v2397_v15  ;;  %2690 = vmatpush.msra.mxu2 %v2461_v22  ;;  %v2415_v15 = vld [vmem:[#allocation16 + $0x518] sm:$0xff] }
 0x363   : > { %v2479_v22 = vld [vmem:[#allocation16 + $0x718] sm:$0xff] }
 0x364   : > { %2668 = vmatpush.msra.mxu1 %v2393_v13  ;;  %2691 = vmatpush.msra.mxu2 %v2457_v18  ;;  %v2411_v13 = vld [vmem:[#allocation16 + $0x4f8] sm:$0xff] }
 0x365   : > { %v2475_v18 = vld [vmem:[#allocation16 + $0x6f8] sm:$0xff] }
 0x366   : > { %2669 = vmatpush.msra.mxu1 %v2389_v56  ;;  %2692 = vmatpush.msra.mxu2 %v2453_v20  ;;  %v2407_v56 = vld [vmem:[#allocation16 + $0x4d8] sm:$0xff] }
 0x367   : > { %v2471_v20 = vld [vmem:[#allocation16 + $0x6d8] sm:$0xff] }
 0x368   : > { %2670 = vmatpush.msra.mxu1 %v2385_v21  ;;  %2693 = vmatpush.msra.mxu2 %v2449_v9  ;;  %v2403_v21 = vld [vmem:[#allocation16 + $0x4b8] sm:$0xff] }
 0x369   : > { %v2467_v9 = vld [vmem:[#allocation16 + $0x6b8] sm:$0xff] }
 0x36a   : > { %2671 = vmatpush.msra.mxu1 %v2381_v23  ;;  %2694 = vmatpush.msra.mxu2 %v2445_v48  ;;  %v2399_v23 = vld [vmem:[#allocation16 + $0x498] sm:$0xff] }
 0x36b   : > { %2672 = vmatmul.f32.vlgmr.msra.gmra.mxu1 %v4610_v36  ;;  %2695 = vmatmul.f32.vlgmr.msra.gmra.mxu2 %v4616_v5  ;;  %v2463_v48 = vld [vmem:[#allocation16 + $0x698] sm:$0xff] }
 0x36c   : > { %2748 = vmatpush.msrb.mxu1 %v2442_v17  ;;  %2771 = vmatpush.msrb.mxu2 %v2506_v24  ;;  %v2395_v17 = vld [vmem:[#allocation16 + $0x478] sm:$0xff] }
 0x36d   : > { %v2459_v24 = vld [vmem:[#allocation16 + $0x678] sm:$0xff] }
 0x36e   : > { %2749 = vmatpush.msrb.mxu1 %v2438_v25  ;;  %2772 = vmatpush.msrb.mxu2 %v2502_v27  ;;  %v2391_v25 = vld [vmem:[#allocation16 + $0x458] sm:$0xff] }
 0x36f   : > { %v2455_v27 = vld [vmem:[#allocation16 + $0x658] sm:$0xff] }
 0x370   : > { %2750 = vmatpush.msrb.mxu1 %v2434_v31  ;;  %2773 = vmatpush.msrb.mxu2 %v2498_v32  ;;  %v2387_v31 = vld [vmem:[#allocation16 + $0x438] sm:$0xff] }
 0x371   : > { %v2451_v32 = vld [vmem:[#allocation16 + $0x638] sm:$0xff] }
 0x372   : > { %2751 = vmatpush.msrb.mxu1 %v2430_v38  ;;  %2774 = vmatpush.msrb.mxu2 %v2494_v40  ;;  %v2383_v38 = vld [vmem:[#allocation16 + $0x418] sm:$0xff] }
 0x373   : > { %2675 = vmatmul.f32.gmra.mxu1 %v4612_v34  ;;  %2698 = vmatmul.f32.gmra.mxu2 %v4618_v1  ;;  %v2447_v40 = vld [vmem:[#allocation16 + $0x618] sm:$0xff] }
 0x374   : > { %2752 = vmatpush.msrb.mxu1 %v2426_v3  ;;  %2775 = vmatpush.msrb.mxu2 %v2490_v4  ;;  %v2067_v4 = vld [vmem:[#allocation14] sm:$0xf] }
 0x376   : > { %2753 = vmatpush.msrb.mxu1 %v2422_v19  ;;  %2776 = vmatpush.msrb.mxu2 %v2486_v42  ;;  %v2077_v19 = vperm.slane %v2067_v4, 2 }
 0x378   : > { %2754 = vmatpush.msrb.mxu1 %v2418_v11  ;;  %2777 = vmatpush.msrb.mxu2 %v2482_v44 }
 0x37a   : > { %2755 = vmatpush.msrb.mxu1 %v2414_v16  ;;  %2778 = vmatpush.msrb.mxu2 %v2478_v7  ;;  %v2075_v16 = vperm.slane %v2067_v4, 0  ;;  %v2078_v7 = vperm.slane %v2067_v4, 3 }
 0x37c   : > { %2756 = vmatpush.msrb.mxu1 %v2410_v43  ;;  %2779 = vmatpush.msrb.mxu2 %v2474_v46 }
 0x37e   : > { %2757 = vmatpush.msrb.mxu1 %v2406_v49  ;;  %2780 = vmatpush.msrb.mxu2 %v2470_v52 }
 0x380   : > { %2758 = vmatpush.msrb.mxu1 %v2402_v53  ;;  %2781 = vmatpush.msrb.mxu2 %v2466_v54  ;;  %v4662_v53 = vld [vmem:[#allocation17] sm:$0xf]  ;;  %v2535_v54 = vpop.f32.mrf.mxu3 }
 0x382   : > { %2759 = vmatpush.msrb.mxu1 %v2398_v39  ;;  %2782 = vmatpush.msrb.mxu2 %v2462_v50  ;;  %v2510_v39 = vperm.slane %v4662_v53, 0 }
 0x384   : > { %2760 = vmatpush.msrb.mxu1 %v2394_v33  ;;  %2783 = vmatpush.msrb.mxu2 %v2458_v57  ;;  %v2536_v33 = vadd.f32 %v2535_v54, %v2510_v39  ;;  %v2558_v57 = vpop.f32.mrf.mxu0 }
 0x386   : > { %2761 = vmatpush.msrb.mxu1 %v2390_v26  ;;  %2784 = vmatpush.msrb.mxu2 %v2454_v10 }
 0x388   : > { %2762 = vmatpush.msrb.mxu1 %v2386_v63  ;;  %2785 = vmatpush.msrb.mxu2 %v2450_v60  ;;  %v2559_v63 = vadd.f32 %v2558_v57, %v2536_v33  ;;  %v2538_v60 = vpop.f32.mrf.mxu3 }
 0x38a   : > { %2763 = vmatpush.msrb.mxu1 %v2382_v35  ;;  %2786 = vmatpush.msrb.mxu2 %v2446_v61 }
 0x38b   : > { %2764 = vmatmul.f32.vlgmr.msrb.gmra.mxu1 %v4610_v36  ;;  %2787 = vmatmul.f32.vlgmr.msrb.gmra.mxu2 %v4616_v5 }
 0x38c   : > { %2840 = vmatpush.msra.mxu1 %v2443_v29  ;;  %2863 = vmatpush.msra.mxu2 %v2507_v62  ;;  %v2539_v29 = vadd.f32 %v2538_v60, %v2510_v39 }
 0x38e   : > { %2841 = vmatpush.msra.mxu1 %v2439_v14  ;;  %2864 = vmatpush.msra.mxu2 %v2503_v30 }
 0x390   : > { %2842 = vmatpush.msra.mxu1 %v2435_v2  ;;  %2865 = vmatpush.msra.mxu2 %v2499_v6  ;;  %v2561_v2 = vpop.f32.mrf.mxu0 }
 0x392   : > { %2843 = vmatpush.msra.mxu1 %v2431_v55  ;;  %2866 = vmatpush.msra.mxu2 %v2495_v28  ;;  %v2562_v55 = vadd.f32 %v2561_v2, %v2539_v29  ;;  %v2076_v28 = vperm.slane %v2067_v4, 1 }
 0x393   : > { %2767 = vmatmul.f32.gmra.mxu1 %v4612_v34  ;;  %2790 = vmatmul.f32.gmra.mxu2 %v4618_v1 }
 0x394   : > { %2844 = vmatpush.msra.mxu1 %v2427_v58  ;;  %2867 = vmatpush.msra.mxu2 %v2491_v51 }
 0x396   : > { %2845 = vmatpush.msra.mxu1 %v2423_v47  ;;  %2868 = vmatpush.msra.mxu2 %v2487_v8 }
 0x398   : > { %2846 = vmatpush.msra.mxu1 %v2419_v12  ;;  %2869 = vmatpush.msra.mxu2 %v2483_v59 }
 0x39a   : > { %2847 = vmatpush.msra.mxu1 %v2415_v15  ;;  %2870 = vmatpush.msra.mxu2 %v2479_v22 }
 0x39c   : > { %2848 = vmatpush.msra.mxu1 %v2411_v13  ;;  %2871 = vmatpush.msra.mxu2 %v2475_v18 }
 0x39e   : > { %2849 = vmatpush.msra.mxu1 %v2407_v56  ;;  %2872 = vmatpush.msra.mxu2 %v2471_v20 }
 0x3a0   : > { %2850 = vmatpush.msra.mxu1 %v2403_v21  ;;  %2873 = vmatpush.msra.mxu2 %v2467_v9  ;;  %v2627_v21 = vpop.f32.mrf.mxu3 }
 0x3a2   : > { %2851 = vmatpush.msra.mxu1 %v2399_v23  ;;  %2874 = vmatpush.msra.mxu2 %v2463_v48  ;;  %v2511_v48 = vperm.slane %v4662_v53, 1 }
 0x3a4   : > { %2852 = vmatpush.msra.mxu1 %v2395_v17  ;;  %2875 = vmatpush.msra.mxu2 %v2459_v24 }
 0x3a6   : > { %2853 = vmatpush.msra.mxu1 %v2391_v25  ;;  %2876 = vmatpush.msra.mxu2 %v2455_v27 }
 0x3a8   : > { %2854 = vmatpush.msra.mxu1 %v2387_v31  ;;  %2877 = vmatpush.msra.mxu2 %v2451_v32  ;;  %v2113_v3 = vpop.f32.mrf.mxu1 }
 0x3a9   : > { %v2114_v46 = vadd.f32 %v2113_v3, %v2075_v16 }
 0x3aa   : > { %2855 = vmatpush.msra.mxu1 %v2383_v38  ;;  %2878 = vmatpush.msra.mxu2 %v2447_v40  ;;  %v2628_v40 = vadd.f32 %v2627_v21, %v2511_v48 }
 0x3ab   : > { %2856 = vmatmul.f32.vlgmr.msra.gmra.mxu1 %v4610_v36  ;;  %2879 = vmatmul.f32.vlgmr.msra.gmra.mxu2 %v4616_v5  ;;  %v3321_v52 = vmul.f32 -1.442695, %v2114_v46 }
 0x3ad   : > { %3482 = vpow2.f32 %v3321_v52 }
 0x3ae   : > { %v2133_v42 = vpop.f32.mrf.mxu2 }
 0x3af   : > { %v2134_v8 = vadd.f32 %v2133_v42, %v2076_v28 }
 0x3b0   : > { %v2153_v11 = vpop.f32.mrf.mxu1 }
 0x3b1   : > { %v4656_v44 = vadd.f32 %v2153_v11, %v2077_v19  ;;  %v3322_v18 = vmul.f32 -1.442695, %v2134_v8  ;;  %v2650_v11 = vpop.f32.mrf.mxu0 }
 0x3b2   : > { %v2651_v54 = vadd.f32 %v2650_v11, %v2628_v40 }
 0x3b3   : > { %2859 = vmatmul.f32.gmra.mxu1 %v4612_v34  ;;  %2882 = vmatmul.f32.gmra.mxu2 %v4618_v1  ;;  %v3483_v50 = vpop.eup %3482 }
 0x3b4   : > { %v2188_v26 = vadd.f32 1.0, %v3483_v50  ;;  %v2630_v50 = vpop.f32.mrf.mxu3 }
 0x3b6   : > { %v2173_v43 = vpop.f32.mrf.mxu2  ;;  %3484 = vrcp.f32 %v2188_v26  ;;  %v2203_v17 = vand.u32 2147483648, %v2188_v26  ;;  %vm2197_vm8 = vweird.f32 %v2188_v26  ;;  %v2201_v25 = vand.u32 2147483647, %v2188_v26 }
 0x3b7   : > { %v4660_v49 = vadd.f32 %v2173_v43, %v2078_v7 }
 0x3b8   : > { %v2204_v3 = vor.u32 1.1754944e-38, %v2203_v17  ;;  %vm2202_vm10 = vcmp.eq.f32.partialorder %v2201_v25, 8.507059e+37  ;;  %v3323_v17 = vmul.f32 -1.442695, %v4656_v44 }
 0x3bc   : > { %v3485_v30 = vpop.eup %3484 }
 0x3bd   : > { %v2193_v58 = vmul.f32 %v3485_v30, %v2188_v26  ;;  %vm2198_vm7 = vweird.f32 %v3485_v30 }
 0x3be   : > { %vm2199_vm9 = vmor %vm2197_vm8, %vm2198_vm7 }
 0x3bf   : > { %v2194_v15 = vsub.f32 1.0, %v2193_v58 }
 0x3c1   : > { %v2195_v56 = vmul.f32 %v3485_v30, %v2194_v15 }
 0x3c3   : > { %v2196_v9 = vadd.f32 %v3485_v30, %v2195_v56 }
 0x3c5   : > { %v2200_v32 = vsel %vm2199_vm9, %v3485_v30, %v2196_v9 }
 0x3c6   : > { %v2205_v16 = vsel %vm2202_vm10, %v2204_v3, %v2200_v32 }
 0x3c7   : > { %v3038_v33 = vperm.slane %v2205_v16, 0 }
 0x3c8   : > { %v2581_v10 = vpop.f32.mrf.mxu1 }
 0x3c9   : > { %v2582_v35 = vadd.f32 %v2581_v10, %v2559_v63 }
 0x3ce   : > { %v2604_v61 = vpop.f32.mrf.mxu2 }
 0x3cf   : > { %v2605_v62 = vadd.f32 %v2604_v61, %v2582_v35  ;;  %v2631_v61 = vadd.f32 %v2630_v50, %v2511_v48 }
 0x3d0   : > { %v2584_v6 = vpop.f32.mrf.mxu1 }
 0x3d1   : > { %v3325_v14 = vmul.f32 -1.442695, %v2605_v62  ;;  %v2585_v51 = vadd.f32 %v2584_v6, %v2562_v55 }
 0x3d3   : > { %3486 = vpow2.f32 %v3325_v14 }
 0x3d6   : > { %v2607_v47 = vpop.f32.mrf.mxu2 }
 0x3d7   : > { %v2608_v12 = vadd.f32 %v2607_v47, %v2585_v51  ;;  %v2653_v51 = vpop.f32.mrf.mxu0 }
 0x3d9   : > { %v3487_v59 = vpop.eup %3486  ;;  %v3329_v22 = vmul.f32 -1.442695, %v2608_v12  ;;  %v2654_v12 = vadd.f32 %v2653_v51, %v2631_v61 }
 0x3da   : > { %v2910_v13 = vadd.f32 1.0, %v3487_v59 }
 0x3db   : > { %3488 = vpow2.f32 %v3329_v22 }
 0x3dc   : > { %3490 = vrcp.f32 %v2910_v13  ;;  %v2929_v4 = vand.u32 2147483648, %v2910_v13  ;;  %v2927_v42 = vand.u32 2147483647, %v2910_v13  ;;  %vm2923_vm12 = vweird.f32 %v2910_v13 }
 0x3dd   : > { %3492 = vpow2.f32 %v3322_v18 }
 0x3de   : > { %v2930_v39 = vor.u32 1.1754944e-38, %v2929_v4  ;;  %vm2928_vm14 = vcmp.eq.f32.partialorder %v2927_v42, 8.507059e+37 }
 0x3e1   : > { %v3489_v20 = vpop.eup %3488 }
 0x3e2   : > { %v3491_v23 = vpop.eup %3490  ;;  %v2914_v24 = vadd.f32 1.0, %v3489_v20 }
 0x3e3   : > { %v2919_v27 = vmul.f32 %v3491_v23, %v2910_v13  ;;  %v3493_v31 = vpop.eup %3492  ;;  %vm2924_vm11 = vweird.f32 %v3491_v23 }
 0x3e4   : > { %3494 = vrcp.f32 %v2914_v24  ;;  %v4666_v7 = vadd.f32 1.0, %v3493_v31  ;;  %vm2925_vm13 = vmor %vm2923_vm12, %vm2924_vm11  ;;  %v2987_v29 = vand.u32 2147483647, %v2914_v24  ;;  %v2989_v62 = vand.u32 2147483648, %v2914_v24 }
 0x3e5   : > { %v2920_v38 = vsub.f32 1.0, %v2919_v27  ;;  %vm2983_vm0 = vweird.f32 %v2914_v24  ;;  %v2719_v27 = vpop.f32.mrf.mxu3 }
 0x3e6   : > { %3496 = vrcp.f32 %v4666_v7  ;;  %v2990_v47 = vor.u32 1.1754944e-38, %v2989_v62  ;;  %vm2988_vm2 = vcmp.eq.f32.partialorder %v2987_v29, 8.507059e+37  ;;  %vm2212_vm4 = vweird.f32 %v4666_v7 }
 0x3e7   : > { %v2921_v19 = vmul.f32 %v3491_v23, %v2920_v38  ;;  %v2512_v38 = vperm.slane %v4662_v53, 2  ;;  %v2216_v3 = vand.u32 2147483647, %v4666_v7 }
 0x3e8   : > { %v2673_v43 = vpop.f32.mrf.mxu1 }
 0x3e9   : > { %v2922_v46 = vadd.f32 %v3491_v23, %v2921_v19  ;;  %v2674_v35 = vadd.f32 %v2673_v43, %v2651_v54  ;;  %v2720_v11 = vadd.f32 %v2719_v27, %v2512_v38  ;;  %vm2217_vm6 = vcmp.eq.f32.partialorder %v2216_v3, 8.507059e+37  ;;  %v2742_v54 = vpop.f32.mrf.mxu0 }
 0x3ea   : > { %v3495_v52 = vpop.eup %3494 }
 0x3eb   : > { %v2926_v57 = vsel %vm2925_vm13, %v3491_v23, %v2922_v46  ;;  %v2979_v26 = vmul.f32 %v3495_v52, %v2914_v24  ;;  %vm2984_vm15 = vweird.f32 %v3495_v52 }
 0x3ec   : > { %v2931_v10 = vsel %vm2928_vm14, %v2930_v39, %v2926_v57  ;;  %v3497_v58 = vpop.eup %3496  ;;  %vm2985_vm1 = vmor %vm2983_vm0, %vm2984_vm15 }
 0x3ed   : > { %v3042_v63 = vadd.f32 %v3038_v33, %v2931_v10  ;;  %v2980_v60 = vsub.f32 1.0, %v2979_v26  ;;  %v2208_v15 = vmul.f32 %v3497_v58, %v4666_v7  ;;  %vm2213_vm3 = vweird.f32 %v3497_v58 }
 0x3ee   : > { %v2696_v14 = vpop.f32.mrf.mxu2  ;;  %vm2214_vm5 = vmor %vm2212_vm4, %vm2213_vm3  ;;  %v2743_v26 = vadd.f32 %v2742_v54, %v2720_v11 }
 0x3ef   : > { %v3050_v30 = vmul.f32 %v3042_v63, %v4584_v45  ;;  %v2981_v2 = vmul.f32 %v3495_v52, %v2980_v60  ;;  %v2697_v6 = vadd.f32 %v2696_v14, %v2674_v35  ;;  %v2209_v9 = vsub.f32 1.0, %v2208_v15  ;;  %v2722_v63 = vpop.f32.mrf.mxu3 }
 0x3f0   : > { %v2676_v8 = vpop.f32.mrf.mxu1 }
 0x3f1   : > { %3058 = vst [vmem:[%s4671_s20] sm:$0xff] %v3050_v30  ;;  %v2982_v55 = vadd.f32 %v3495_v52, %v2981_v2  ;;  %v3326_v28 = vmul.f32 -1.442695, %v2697_v6  ;;  %v2677_v13 = vadd.f32 %v2676_v8, %v2654_v12  ;;  %v2210_v24 = vmul.f32 %v3497_v58, %v2209_v9 }
 0x3f2   : > { %v2723_v2 = vadd.f32 %v2722_v63, %v2512_v38 }
 0x3f3   : > { %v2986_v59 = vsel %vm2985_vm1, %v3495_v52, %v2982_v55  ;;  %3498 = vpow2.f32 %v3326_v28  ;;  %v2211_v31 = vadd.f32 %v3497_v58, %v2210_v24 }
 0x3f4   : > { %v2991_v45 = vsel %vm2988_vm2, %v2990_v47, %v2986_v59 }
 0x3f5   : > { %v3046_v22 = vadd.f32 %v3038_v33, %v2991_v45  ;;  %v2215_v19 = vsel %vm2214_vm5, %v3497_v58, %v2211_v31  ;;  %v2745_v45 = vpop.f32.mrf.mxu0  ;;  %v3324_v31 = vmul.f32 -1.442695, %v4660_v49 }
 0x3f6   : > { %v2699_v18 = vpop.f32.mrf.mxu2 }
 0x3f7   : > { %v3054_v56 = vmul.f32 %v3046_v22, %v4586_v37  ;;  %v2700_v20 = vadd.f32 %v2699_v18, %v2677_v13  ;;  %v2218_v37 = vand.u32 2147483648, %v4666_v7  ;;  %v2746_v13 = vadd.f32 %v2745_v45, %v2723_v2 }
 0x3f9   : > { %v3499_v21 = vpop.eup %3498  ;;  %3062 = vst [vmem:[%s4671_s20 + $0x20] sm:$0xff] %v3054_v56  ;;  %v3330_v23 = vmul.f32 -1.442695, %v2700_v20  ;;  %v2219_v16 = vor.u32 1.1754944e-38, %v2218_v37  ;;  %v2811_v37 = vpop.f32.mrf.mxu3 }
 0x3fa   : > { %v2911_v48 = vadd.f32 1.0, %v3499_v21 }
 0x3fb   : > { %3500 = vpow2.f32 %v3330_v23  ;;  %v2220_v39 = vsel %vm2217_vm6, %v2219_v16, %v2215_v19 }
 0x3fc   : > { %3502 = vrcp.f32 %v2911_v48  ;;  %v2944_v43 = vand.u32 2147483648, %v2911_v48  ;;  %v2942_v52 = vand.u32 2147483647, %v2911_v48  ;;  %vm2938_vm8 = vweird.f32 %v2911_v48 }
 0x3fd   : > { %3504 = vpow2.f32 %v3323_v17  ;;  %v3039_v60 = vperm.slane %v2220_v39, 0  ;;  %v2834_v39 = vpop.f32.mrf.mxu0 }
 0x3fe   : > { %v2945_v10 = vor.u32 1.1754944e-38, %v2944_v43  ;;  %vm2943_vm10 = vcmp.eq.f32.partialorder %v2942_v52, 8.507059e+37 }
 0x401   : > { %v3501_v25 = vpop.eup %3500 }
 0x402   : > { %v3503_v32 = vpop.eup %3502  ;;  %v2915_v40 = vadd.f32 1.0, %v3501_v25 }
 0x403   : > { %v2934_v4 = vmul.f32 %v3503_v32, %v2911_v48  ;;  %v3505_v44 = vpop.eup %3504  ;;  %vm2939_vm7 = vweird.f32 %v3503_v32 }
 0x404   : > { %3506 = vrcp.f32 %v2915_v40  ;;  %v4682_v50 = vadd.f32 1.0, %v3505_v44  ;;  %vm2940_vm9 = vmor %vm2938_vm8, %vm2939_vm7  ;;  %v3002_v6 = vand.u32 2147483647, %v2915_v40  ;;  %v3004_v55 = vand.u32 2147483648, %v2915_v40 }
 0x405   : > { %v2935_v42 = vsub.f32 1.0, %v2934_v4  ;;  %vm2998_vm12 = vweird.f32 %v2915_v40  ;;  %v2513_v4 = vperm.slane %v4662_v53, 3 }
 0x406   : > { %3508 = vrcp.f32 %v4682_v50  ;;  %v3005_v15 = vor.u32 1.1754944e-38, %v3004_v55  ;;  %vm3003_vm14 = vcmp.eq.f32.partialorder %v3002_v6, 8.507059e+37  ;;  %vm2227_vm0 = vweird.f32 %v4682_v50 }
 0x407   : > { %v2936_v46 = vmul.f32 %v3503_v32, %v2935_v42  ;;  %v2231_v19 = vand.u32 2147483647, %v4682_v50  ;;  %v2812_v43 = vadd.f32 %v2811_v37, %v2513_v4 }
 0x408   : > { %v2765_v33 = vpop.f32.mrf.mxu1 }
 0x409   : > { %v2937_v57 = vadd.f32 %v3503_v32, %v2936_v46  ;;  %v2766_v30 = vadd.f32 %v2765_v33, %v2743_v26  ;;  %vm2232_vm2 = vcmp.eq.f32.partialorder %v2231_v19, 8.507059e+37 }
 0x40a   : > { %v3507_v7 = vpop.eup %3506 }
 0x40b   : > { %v2941_v35 = vsel %vm2940_vm9, %v3503_v32, %v2937_v57  ;;  %v2994_v61 = vmul.f32 %v3507_v7, %v2915_v40  ;;  %vm2999_vm11 = vweird.f32 %v3507_v7 }
 0x40c   : > { %v2946_v29 = vsel %vm2943_vm10, %v2945_v10, %v2941_v35  ;;  %v3509_v59 = vpop.eup %3508  ;;  %vm3000_vm13 = vmor %vm2998_vm12, %vm2999_vm11  ;;  %v2835_v10 = vadd.f32 %v2834_v39, %v2812_v43 }
 0x40d   : > { %v3043_v62 = vadd.f32 %v3039_v60, %v2946_v29  ;;  %v2995_v14 = vsub.f32 1.0, %v2994_v61  ;;  %vm2228_vm15 = vweird.f32 %v3509_v59 }
 0x40e   : > { %v2788_v28 = vpop.f32.mrf.mxu2  ;;  %vm2229_vm1 = vmor %vm2227_vm0, %vm2228_vm15 }
 0x40f   : > { %v3051_v58 = vmul.f32 %v3043_v62, %v4590_v41  ;;  %v2996_v51 = vmul.f32 %v3507_v7, %v2995_v14  ;;  %v2789_v47 = vadd.f32 %v2788_v28, %v2766_v30  ;;  %v2223_v41 = vmul.f32 %v3509_v59, %v4682_v50 }
 0x410   : > { %v2768_v22 = vpop.f32.mrf.mxu1 }
 0x411   : > { %3059 = vst [vmem:[%s4671_s20 + $0x8] sm:$0xff] %v3051_v58  ;;  %v2997_v8 = vadd.f32 %v3507_v7, %v2996_v51  ;;  %v3327_v12 = vmul.f32 -1.442695, %v2789_v47  ;;  %v2769_v21 = vadd.f32 %v2768_v22, %v2746_v13  ;;  %v2224_v24 = vsub.f32 1.0, %v2223_v41 }
 0x413   : > { %v3001_v18 = vsel %vm3000_vm13, %v3507_v7, %v2997_v8  ;;  %3510 = vpow2.f32 %v3327_v12  ;;  %v2225_v32 = vmul.f32 %v3509_v59, %v2224_v24 }
 0x414   : > { %v3006_v56 = vsel %vm3003_vm14, %v3005_v15, %v3001_v18  ;;  %v2837_v15 = vpop.f32.mrf.mxu0 }
 0x415   : > { %v3047_v20 = vadd.f32 %v3039_v60, %v3006_v56  ;;  %v2226_v40 = vadd.f32 %v3509_v59, %v2225_v32  ;;  %v2814_v60 = vpop.f32.mrf.mxu3 }
 0x416   : > { %v2791_v9 = vpop.f32.mrf.mxu2  ;;  %v2815_v6 = vadd.f32 %v2814_v60, %v2513_v4 }
 0x417   : > { %v3055_v23 = vmul.f32 %v3047_v20, %v4592_v0  ;;  %v2792_v48 = vadd.f32 %v2791_v9, %v2769_v21  ;;  %v2233_v0 = vand.u32 2147483648, %v4682_v50  ;;  %v2230_v11 = vsel %vm2229_vm1, %v3509_v59, %v2226_v40 }
 0x418   : > { %v2838_v18 = vadd.f32 %v2837_v15, %v2815_v6 }
 0x419   : > { %v3511_v17 = vpop.eup %3510  ;;  %3063 = vst [vmem:[%s4671_s20 + $0x28] sm:$0xff] %v3055_v23  ;;  %v3331_v25 = vmul.f32 -1.442695, %v2792_v48  ;;  %v2234_v46 = vor.u32 1.1754944e-38, %v2233_v0 }
 0x41a   : > { %v2912_v27 = vadd.f32 1.0, %v3511_v17 }
 0x41b   : > { %3512 = vpow2.f32 %v3331_v25  ;;  %v2235_v33 = vsel %vm2232_vm2, %v2234_v46, %v2230_v11 }
 0x41c   : > { %3514 = vrcp.f32 %v2912_v27  ;;  %v2959_v52 = vand.u32 2147483648, %v2912_v27  ;;  %v2957_v53 = vand.u32 2147483647, %v2912_v27  ;;  %vm2953_vm4 = vweird.f32 %v2912_v27 }
 0x41d   : > { %3516 = vpow2.f32 %v3324_v31  ;;  %v3040_v35 = vperm.slane %v2235_v33, 0 }
 0x41e   : > { %v2960_v63 = vor.u32 1.1754944e-38, %v2959_v52  ;;  %vm2958_vm6 = vcmp.eq.f32.partialorder %v2957_v53, 8.507059e+37 }
 0x421   : > { %v3513_v38 = vpop.eup %3512 }
 0x422   : > { %v3515_v3 = vpop.eup %3514  ;;  %v2916_v44 = vadd.f32 1.0, %v3513_v38 }
 0x423   : > { %v2949_v42 = vmul.f32 %v3515_v3, %v2912_v27  ;;  %v3517_v49 = vpop.eup %3516  ;;  %vm2954_vm3 = vweird.f32 %v3515_v3 }
 0x424   : > { %3518 = vrcp.f32 %v2916_v44  ;;  %v4695_v57 = vadd.f32 1.0, %v3517_v49  ;;  %vm2955_vm5 = vmor %vm2953_vm4, %vm2954_vm3  ;;  %v3017_v55 = vand.u32 2147483647, %v2916_v44  ;;  %v3019_v28 = vand.u32 2147483648, %v2916_v44 }
 0x425   : > { %v2950_v16 = vsub.f32 1.0, %v2949_v42  ;;  %vm3013_vm8 = vweird.f32 %v2916_v44 }
 0x426   : > { %3520 = vrcp.f32 %v4695_v57  ;;  %v3020_v22 = vor.u32 1.1754944e-38, %v3019_v28  ;;  %vm3018_vm10 = vcmp.eq.f32.partialorder %v3017_v55, 8.507059e+37  ;;  %v2248_v40 = vand.u32 2147483648, %v4695_v57 }
 0x427   : > { %v2951_v54 = vmul.f32 %v3515_v3, %v2950_v16  ;;  %vm2242_vm12 = vweird.f32 %v4695_v57 }
 0x428   : > { %v2857_v7 = vpop.f32.mrf.mxu1  ;;  %v2249_v19 = vor.u32 1.1754944e-38, %v2248_v40 }
 0x429   : > { %v2952_v26 = vadd.f32 %v3515_v3, %v2951_v54  ;;  %v2858_v2 = vadd.f32 %v2857_v7, %v2835_v10 }
 0x42a   : > { %v3519_v50 = vpop.eup %3518 }
 0x42b   : > { %v2956_v61 = vsel %vm2955_vm5, %v3515_v3, %v2952_v26  ;;  %v3009_v29 = vmul.f32 %v3519_v50, %v2916_v44  ;;  %vm3014_vm7 = vweird.f32 %v3519_v50 }
 0x42c   : > { %v2961_v62 = vsel %vm2958_vm6, %v2960_v63, %v2956_v61  ;;  %v3521_v45 = vpop.eup %3520  ;;  %vm3015_vm9 = vmor %vm3013_vm8, %vm3014_vm7 }
 0x42d   : > { %v3044_v14 = vadd.f32 %v3040_v35, %v2961_v62  ;;  %v3010_v30 = vsub.f32 1.0, %v3009_v29  ;;  %vm2243_vm11 = vweird.f32 %v3521_v45 }
 0x42e   : > { %v2880_v58 = vpop.f32.mrf.mxu2  ;;  %vm2244_vm13 = vmor %vm2242_vm12, %vm2243_vm11 }
 0x42f   : > { %v3052_v51 = vmul.f32 %v3044_v14, %v4610_v36  ;;  %v3011_v47 = vmul.f32 %v3519_v50, %v3010_v30  ;;  %v2881_v8 = vadd.f32 %v2880_v58, %v2858_v2  ;;  %v2238_v36 = vmul.f32 %v3521_v45, %v4695_v57 }
 0x430   : > { %v2860_v13 = vpop.f32.mrf.mxu1 }
 0x431   : > { %3060 = vst [vmem:[%s4671_s20 + $0x10] sm:$0xff] %v3052_v51  ;;  %v3012_v12 = vadd.f32 %v3519_v50, %v3011_v47  ;;  %v3328_v59 = vmul.f32 -1.442695, %v2881_v8  ;;  %v2861_v21 = vadd.f32 %v2860_v13, %v2838_v18  ;;  %v2239_v24 = vsub.f32 1.0, %v2238_v36 }
 0x433   : > { %v3016_v56 = vsel %vm3015_vm9, %v3519_v50, %v3012_v12  ;;  %3522 = vpow2.f32 %v3328_v59  ;;  %v2240_v31 = vmul.f32 %v3521_v45, %v2239_v24 }
 0x434   : > { %v3021_v41 = vsel %vm3018_vm10, %v3020_v22, %v3016_v56 }
 0x435   : > { %v3048_v20 = vadd.f32 %v3040_v35, %v3021_v41  ;;  %v2241_v38 = vadd.f32 %v3521_v45, %v2240_v31 }
 0x436   : > { %v2883_v9 = vpop.f32.mrf.mxu2 }
 0x437   : > { %v3056_v23 = vmul.f32 %v3048_v20, %v4612_v34  ;;  %v2884_v48 = vadd.f32 %v2883_v9, %v2861_v21  ;;  %v2246_v34 = vand.u32 2147483647, %v4695_v57  ;;  %v2245_v0 = vsel %vm2244_vm13, %v3521_v45, %v2241_v38 }
 0x439   : > { %v3523_v17 = vpop.eup %3522  ;;  %3064 = vst [vmem:[%s4671_s20 + $0x30] sm:$0xff] %v3056_v23  ;;  %v3332_v25 = vmul.f32 -1.442695, %v2884_v48  ;;  %vm2247_vm14 = vcmp.eq.f32.partialorder %v2246_v34, 8.507059e+37 }
 0x43a   : > { %v2913_v27 = vadd.f32 1.0, %v3523_v17  ;;  %v2250_v16 = vsel %vm2247_vm14, %v2249_v19, %v2245_v0 }
 0x43b   : > { %3524 = vpow2.f32 %v3332_v25  ;;  %v3041_v54 = vperm.slane %v2250_v16, 0 }
 0x43c   : > { %3526 = vrcp.f32 %v2913_v27  ;;  %v2974_v42 = vand.u32 2147483648, %v2913_v27  ;;  %v2972_v11 = vand.u32 2147483647, %v2913_v27  ;;  %vm2968_vm0 = vweird.f32 %v2913_v27 }
 0x43e   : > { %v2975_v52 = vor.u32 1.1754944e-38, %v2974_v42  ;;  %vm2973_vm2 = vcmp.eq.f32.partialorder %v2972_v11, 8.507059e+37 }
 0x441   : > { %v3525_v32 = vpop.eup %3524 }
 0x442   : > { %v3527_v37 = vpop.eup %3526  ;;  %v2917_v3 = vadd.f32 1.0, %v3525_v32 }
 0x443   : > { %v2964_v4 = vmul.f32 %v3527_v37, %v2913_v27  ;;  %vm2969_vm15 = vweird.f32 %v3527_v37 }
 0x444   : > { %3528 = vrcp.f32 %v2917_v3  ;;  %vm2970_vm1 = vmor %vm2968_vm0, %vm2969_vm15  ;;  %v3034_v26 = vand.u32 2147483648, %v2917_v3  ;;  %v3032_v63 = vand.u32 2147483647, %v2917_v3  ;;  %vm3028_vm4 = vweird.f32 %v2917_v3 }
 0x445   : > { %v2965_v44 = vsub.f32 1.0, %v2964_v4 }
 0x446   : > { %v3035_v35 = vor.u32 1.1754944e-38, %v3034_v26  ;;  %vm3033_vm6 = vcmp.eq.f32.partialorder %v3032_v63, 8.507059e+37 }
 0x447   : > { %v2966_v49 = vmul.f32 %v3527_v37, %v2965_v44 }
 0x449   : > { %v2967_v43 = vadd.f32 %v3527_v37, %v2966_v49 }
 0x44a   : > { %v3529_v46 = vpop.eup %3528 }
 0x44b   : > { %v2971_v53 = vsel %vm2970_vm1, %v3527_v37, %v2967_v43  ;;  %v3024_v39 = vmul.f32 %v3529_v46, %v2917_v3  ;;  %vm3029_vm3 = vweird.f32 %v3529_v46 }
 0x44c   : > { %v2976_v33 = vsel %vm2973_vm2, %v2975_v52, %v2971_v53  ;;  %vm3030_vm5 = vmor %vm3028_vm4, %vm3029_vm3 }
 0x44d   : > { %v3045_v57 = vadd.f32 %v3041_v54, %v2976_v33  ;;  %v3025_v7 = vsub.f32 1.0, %v3024_v39 }
 0x44f   : > { %v3053_v50 = vmul.f32 %v3045_v57, %v4616_v5  ;;  %v3026_v10 = vmul.f32 %v3529_v46, %v3025_v7 }
 0x451   : > { %3061 = vst [vmem:[%s4671_s20 + $0x18] sm:$0xff] %v3053_v50  ;;  %v3027_v60 = vadd.f32 %v3529_v46, %v3026_v10 }
 0x453   : > { %v3031_v61 = vsel %vm3030_vm5, %v3529_v46, %v3027_v60 }
 0x454   : > { %v3036_v5 = vsel %vm3033_vm6, %v3035_v35, %v3031_v61 }
 0x455   : > { %v3049_v29 = vadd.f32 %v3041_v54, %v3036_v5 }
 0x457   : > { %v3057_v62 = vmul.f32 %v3049_v29, %v4618_v1 }
 0x459   : > { %3065 = vst [vmem:[%s4671_s20 + $0x38] sm:$0xff] %v3057_v62 }
 0x45a   : > { %3857 = shalt.err (!%p3854_p9)
}
 0x45b   : > { %s3931_s4 = smov 512   ;;  %s3932_s20 = smov 32  }
 0x45c   : > { %3377 = dma.vmem_to_hbm [thread:$0]  (%p4110_p13), %s3080_s28, 1024, %s3082_s6, %s3067_s25, %s3931_s4, %s3931_s4, %s3932_s20  }
 0x45d PF: > { %s3096_s5 = sand.u32 1, %s3904_s21   ;;  %p4779_p10 = scmp.ge.s32.totalorder %s3916_s24, 2 }
 0x45e   : > { %s3097_s17 = scalar_lea.sflag [#allocation4], %s3096_s5 }
 0x45f   : > { %p3412_p11 = pnand %p4779_p10, %p4115_p4 }
 0x461   : > { %p3413_p0 = pneg %p3412_p11 }
 0x463   : > { %3899 = dma.done.wait (%p3413_p0), %s3097_s17, 1024  }
 0x464   : > { %3901 = vsyncadd (%p3413_p0), %s3097_s17, 4294966272  ;;  %p30_p2 = scmp.ge.s32.totalorder %s4090_s13, 4   ;;  %s4780_s21 = smov %s3908_s22 }
 0x465   : > { %s4781_s22 = smov %s3912_s23  ;;  %s4782_s23 = smov %s4102_s26 }
 0x466   : > { %s4783_s24 = smov %s4090_s13  ;;  %32 = sbr.rel (!%p30_p2) target bundleno = 17 (0x11), region = 155 }
 0x46b   :  { %3103 = vsyncpa [#allocation3], 1 }
 0x46c   :  { %3105 = vsyncpa [#allocation3 + $0x1], 1 }
 0x46d   :  { %3106 = vsyncpa [#allocation6], 1 }
 0x46e   :  { %3107 = vsyncpa [#allocation9], 1 }
 0x46f   :  { %3108 = vsyncpa [#allocation12], 1 }
 0x470   :  { %3109 = vsyncpa [#allocation15], 1 }
 0x471   :  { %3110 = vsyncpa [#allocation18], 1 }
 0x472   :  { %3111 = vsyncpa [#allocation4], 1 }
 0x473   :  { %3113 = vsyncpa [#allocation4 + $0x1], 1 }

</bundles_post_ra>
